<compile_context>
chip_gen: v7x
topology: tpu7x:2x2x1
jax: 0.10.0
libtpu: 0.0.40
codegen_flags: <defaults>
</compile_context>

<pallas_src>
import math

import numpy as np

import jax
import jax.numpy as jnp
from jax.experimental import pallas as pl
from jax.experimental.pallas import tpu as pltpu

# ----------------------------- config -----------------------------
HIDDEN = 32      # config.bert_config.hidden_size == C_in
C = 8            # config.init_channels
NODES = 3        # of intermediate nodes (must be 3 for the C*3 shape consistency)
LAYERS = 2       # config.layers
N_CLASSES = 3
N_OPS = 5        # synthetic primitives: [none, skip, avg_pool3, max_pool3, relu+conv1x1]
TEMP = 1.0       # config._temp
VOCAB = 100
MAX_POS = 64
N_TYPES = 2
LN_EPS = 1e-12

D3 = NODES * C   # per-cell output channels (3C)

# edge enumeration (matches alpha_normal row order: node i has sources j = 0..i+1)
EDGES = [(i, j) for i in range(NODES) for j in range(i + 2)]
EDGE_IDX = {e: k for k, e in enumerate(EDGES)}
N_EDGES = len(EDGES)


# ----------------------------- fused Pallas kernel -----------------------------
def _kernel(*refs):
    # scalar-prefetch ref first, then inputs, then the output ref
    (alpha_r, emb_r, mask_r, escat_r, stg_r, stb_r) = refs[:6]
    cell_refs = [refs[6 + 8 * c: 6 + 8 * (c + 1)] for c in range(LAYERS)]
    linw_r, linb_r = refs[6 + 8 * LAYERS: 8 + 8 * LAYERS]
    o_ref = refs[8 + 8 * LAYERS]

    f32 = jnp.float32
    L = emb_r.shape[1]

    def mm(a, b):
        return jnp.dot(a, b, preferred_element_type=f32)

    def layernorm(x, g, b):
        # BertLayerNorm (biased variance); single-pass stats so the two cross-lane
        # reductions issue without a serial dependency.
        mu = jnp.mean(x, axis=-1, keepdims=True)
        ms = jnp.mean(x * x, axis=-1, keepdims=True)
        var = ms - mu * mu
        return (x - mu) * jax.lax.rsqrt(var + LN_EPS) * g + b

    # per-sequence boundary masks for the kernel-size-3 poolings (one sequence per block)
    row = jax.lax.broadcasted_iota(jnp.int32, (L, 1), 0)
    not_first = (row != 0).astype(f32)           # 0 at position 0
    not_last = (row != L - 1).astype(f32)        # 0 at position L-1
    neg_first = (1.0 - not_first) * (-1e30)      # -inf pad for MaxPool at the left edge
    neg_last = (1.0 - not_last) * (-1e30)        # -inf pad for MaxPool at the right edge

    # ---- alpha-weighted mixed-op matrices, built once (sep_alpha=False) ----
    # For every source state j, all ops of all edges leaving j are applied by ONE matmul:
    #   LHS = [x | avg | max | relu]  (L, 4C)   RHS = [m_skip; m_avg; m_max; w_conv] (4C, 3C)
    # where each block of RHS places its result into the target node's channel block.
    rhs = [[None] * (NODES + 1) for _ in range(LAYERS)]
    bias = [[None] * (NODES + 1) for _ in range(LAYERS)]
    for j in range(NODES + 1):
        targets = [i for i in range(NODES) if j < i + 2]
        m_skip = jnp.zeros((C, D3), f32)
        m_avg = jnp.zeros((C, D3), f32)
        m_max = jnp.zeros((C, D3), f32)
        for i in targets:
            e = EDGE_IDX[(i, j)]
            sel = escat_r[i]                              # (C, 3C) block-i selector
            m_skip = m_skip + alpha_r[e * N_OPS + 1] * sel
            m_avg = m_avg + alpha_r[e * N_OPS + 2] * sel
            m_max = m_max + alpha_r[e * N_OPS + 3] * sel
            # alpha_r[e*N_OPS + 0] ('none') multiplies zeros -> skipped (forward-exact)
        sel_top = jnp.concatenate([m_skip, m_avg, m_max], axis=0)    # (3C, 3C), cell-shared
        for c in range(LAYERS):
            ew_r, eb_r = cell_refs[c][4], cell_refs[c][5]
            wc = jnp.zeros((C, D3), f32)
            bc = jnp.zeros((1, D3), f32)
            for i in targets:
                e = EDGE_IDX[(i, j)]
                a_cnv = alpha_r[e * N_OPS + 4]
                wc = wc + a_cnv * ew_r[e]                 # pre-placed wide conv weight
                bc = bc + a_cnv * eb_r[e]                 # pre-placed conv bias
            rhs[c][j] = jnp.concatenate([sel_top, wc], axis=0)       # (4C, 3C)
            bias[c][j] = bc

    # ---- stem: BertEmbeddings LayerNorm (embedding gathers done in XLA) ----
    s_stem = layernorm(emb_r[0], stg_r[...], stb_r[...])             # (L, HIDDEN)
    s0, s1 = s_stem, s_stem

    # ---- search cells (sep_alpha=False -> shared alphas) ----
    for c in range(LAYERS):
        p0w_r, p0b_r, w1_r, b1_r, _ew, _eb, lng_r, lnb_r = cell_refs[c]

        y1 = mm(s1, w1_r[...]) + b1_r[...]       # fused [preproc1 | concat_conv1]: (L, C+3C)
        x1 = y1[:, :C]
        s1_cat = y1[:, C:]
        x0 = mm(s0, p0w_r[...]) + p0b_r[...]     # preproc0: (L, C)

        states = [x0, x1]
        wide = jnp.zeros((L, D3), f32)           # node i occupies lanes [i*C, (i+1)*C)
        for j in range(NODES + 1):               # source states 0..NODES
            x = states[j]
            prev = pltpu.roll(x, shift=1, axis=0)        # row r <- x[r-1]   (XLU slot)
            nxt = pltpu.roll(x, shift=L - 1, axis=0)     # row r <- x[r+1]   (XLU slot)
            # AvgPool1d(3,1,1) count_include_pad: zero the wrapped boundary row, /3
            avg = (prev * not_first + x + nxt * not_last) * (1.0 / 3.0)
            # MaxPool1d(3,1,1): -inf at the padded boundary positions
            mx = jnp.maximum(jnp.maximum(prev + neg_first, x), nxt + neg_last)
            rel = jnp.maximum(x, 0.0)

            lhs = jnp.concatenate([x, avg, mx, rel], axis=-1)        # (L, 4C)
            wide = wide + mm(lhs, rhs[c][j]) + bias[c][j]

            # node (j-1) is complete once source j has been applied; extract it via a
            # static lane slice if a later source needs it
            if 1 <= j <= NODES - 1:
                states.append(wide[:, (j - 1) * C: j * C])           # (L, C)

        # s_out = cat(node outputs, channel dim) == wide ; LN over channels
        s_out = layernorm(wide + s1_cat, lng_r[...], lnb_r[...])     # (L, 3C)
        s0, s1 = s1, s_out

    # ---- masked max / mean pooling over L + final Linear (this sequence only) ----
    msk = mask_r[0]                                                  # (L, 1)
    s_for_max = s1 * msk + (-10000000.0) * (1.0 - msk)               # replace_masked(..., -1e7)
    mx_row = jnp.max(s_for_max, axis=0, keepdims=True)               # (1, 3C)
    sm_row = jnp.sum(s1 * msk, axis=0, keepdims=True)                # (1, 3C)
    cnt = jnp.sum(msk, axis=0, keepdims=True)                        # (1, 1) == sum(mask)
    mean_row = sm_row / cnt                                          # exact reference denom
    feat = jnp.concatenate([mx_row, mean_row], axis=-1)              # (1, 2*3C)
    o_ref[0] = mm(feat, linw_r[...]) + linb_r[...]                   # (1, N_CLASSES)


def _selector_const():
    """(NODES, C, 3C) constant: identity placed at node i's channel block."""
    escat = np.zeros((NODES, C, D3), np.float32)
    for i in range(NODES):
        escat[i, np.arange(C), i * C + np.arange(C)] = 1.0
    return jnp.asarray(escat)


# ----------------------------- forward (wrapper) -----------------------------
@jax.jit
def controller_forward(params, input_ids, mask, segment_ids, seq_lengths):
    del seq_lengths  # mask already encodes valid positions
    B, L = input_ids.shape

    # default controller path (train=True, not one_step/random_sample/...): plain softmax.
    # sep_alpha=False -> the same alphas are used by every cell.
    w_alpha = jnp.concatenate(
        [jax.nn.softmax(a / TEMP, axis=-1) for a in params['alpha']], axis=0
    ).reshape(-1)                                                    # (N_EDGES * N_OPS,)

    # att_mask of the reference is only used when mul_att_out/all_return are set -> skipped.

    # BERT-style embedding stem (gathers stay in XLA; its LayerNorm is inside the kernel)
    sp = params['stem']
    emb = (sp['word'][input_ids] + sp['pos'][jnp.arange(L)][None, :, :]
           + sp['tok'][segment_ids])                                 # (B, L, HIDDEN)
    mask3 = mask[:, :, None]                                         # (B, L, 1)
    escat = _selector_const()

    flat = [w_alpha, emb, mask3, escat, sp['ln_g'], sp['ln_b']]
    for cp in params['cells']:
        flat += [cp['pre0_w'], cp['pre0_b'], cp['w1cat'], cp['b1cat'],
                 cp['edge_w'], cp['edge_b'], cp['ln_g'], cp['ln_b']]
    flat += [params['lin_w'], params['lin_b']]

    def _rep(shape):                                     # full-array block, grid-invariant
        n = len(shape)
        return pl.BlockSpec(shape, lambda b, _a, n=n: (0,) * n)

    in_specs = ([pl.BlockSpec((1, L, HIDDEN), lambda b, _a: (b, 0, 0)),   # emb   (per seq)
                 pl.BlockSpec((1, L, 1), lambda b, _a: (b, 0, 0))]        # mask  (per seq)
                + [_rep(x.shape) for x in flat[3:]])                      # weights/consts

    # advisory cost estimate (no O(L^2) terms any more)
    flops = 0
    c_pp, c_p = HIDDEN, HIDDEN
    for _ in range(LAYERS):
        flops += 2 * L * c_pp * C + 2 * L * c_p * (C + D3)
        flops += (NODES + 1) * 2 * L * (4 * C) * D3
        c_pp, c_p = c_p, D3
    flops += 2 * (2 * D3) * N_CLASSES
    flops *= B
    bytes_accessed = int(sum(int(np.prod(x.shape)) * 4 for x in flat) + B * N_CLASSES * 4)

    out = pl.pallas_call(
        _kernel,
        out_shape=jax.ShapeDtypeStruct((B, 1, N_CLASSES), jnp.float32),
        grid_spec=pltpu.PrefetchScalarGridSpec(
            num_scalar_prefetch=1,                       # softmaxed alphas -> SMEM scalars
            grid=(B,),                                   # one sequence per grid step
            in_specs=in_specs,
            out_specs=pl.BlockSpec((1, 1, N_CLASSES), lambda b, _a: (b, 0, 0)),
        ),
        compiler_params=pltpu.CompilerParams(dimension_semantics=("parallel",)),
        cost_estimate=pl.CostEstimate(flops=int(flops),
                                      transcendentals=int(B * L * (LAYERS + 1)),
                                      bytes_accessed=bytes_accessed),
    )(*flat)
    return out.reshape(B, N_CLASSES)


# ----------------------------- deterministic parameter init -----------------------------
def _xavier(key, shape):
    limit = math.sqrt(6.0 / (shape[0] + shape[1]))
    return jax.random.uniform(key, shape, jnp.float32, -limit, limit)


def init_params(key):
    keys = iter(jax.random.split(key, 256))
    p = {}
    p['stem'] = {
        'word': 0.02 * jax.random.normal(next(keys), (VOCAB, HIDDEN), jnp.float32),
        'pos': 0.02 * jax.random.normal(next(keys), (MAX_POS, HIDDEN), jnp.float32),
        'tok': 0.02 * jax.random.normal(next(keys), (N_TYPES, HIDDEN), jnp.float32),
        'ln_g': jnp.ones((1, HIDDEN), jnp.float32),
        'ln_b': jnp.zeros((1, HIDDEN), jnp.float32),
    }
    cells = []
    c_pp, c_p = HIDDEN, HIDDEN
    for _ in range(LAYERS):
        # per-edge Conv1d(C, C, 1): weight stored transposed (C_in, C_out) and pre-placed at
        # its target node's channel block; the (nonzero) bias is pre-placed at the SAME block
        # so the alpha-weighted sum over edges cannot bleed into other nodes' channels.
        ew = jnp.zeros((N_EDGES, C, D3), jnp.float32)
        eb = jnp.zeros((N_EDGES, 1, D3), jnp.float32)
        bnd = 1.0 / math.sqrt(C)
        for e, (i, _j) in enumerate(EDGES):
            w = _xavier(next(keys), (C, C))
            b = jax.random.uniform(next(keys), (1, C), jnp.float32, -bnd, bnd)
            ew = ew.at[e, :, i * C:(i + 1) * C].set(w)
            eb = eb.at[e, :, i * C:(i + 1) * C].set(b)
        pre1_w = _xavier(next(keys), (c_p, C))
        cat_w = _xavier(next(keys), (c_p, D3))
        b_p = 1.0 / math.sqrt(c_p)
        pre1_b = jax.random.uniform(next(keys), (1, C), jnp.float32, -b_p, b_p)
        cat_b = jax.random.uniform(next(keys), (1, D3), jnp.float32, -b_p, b_p)
        b_pp = 1.0 / math.sqrt(c_pp)
        cp = {
            'pre0_w': _xavier(next(keys), (c_pp, C)),
            'pre0_b': jax.random.uniform(next(keys), (1, C), jnp.float32, -b_pp, b_pp),
            # preproc1 and concat_conv1 folded into ONE matmul: s1 @ [p1w | cat_w]
            'w1cat': jnp.concatenate([pre1_w, cat_w], axis=1),       # (c_p, C + 3C)
            'b1cat': jnp.concatenate([pre1_b, cat_b], axis=1),       # (1, C + 3C)
            'edge_w': ew,
            'edge_b': eb,
            'ln_g': jnp.ones((1, D3), jnp.float32),
            'ln_b': jnp.zeros((1, D3), jnp.float32),
        }
        cells.append(cp)
        c_pp, c_p = c_p, D3
    p['cells'] = cells
    # Linear(C_p*2, n_classes), stored transposed so cat([max, mean]) @ W_t == reference
    lin_w = _xavier(next(keys), (N_CLASSES, 2 * D3))
    p['lin_w'] = jnp.transpose(lin_w)                                # (2*3C, n_classes)
    p['lin_b'] = 0.01 * jnp.ones((1, N_CLASSES), jnp.float32)
    # alpha_normal: 0.001 * ones(i+2, n_ops)  (sep_alpha=False)
    p['alpha'] = [0.001 * jnp.ones((i + 2, N_OPS), jnp.float32) for i in range(NODES)]
    return p


# ----------------------------- main -----------------------------
if __name__ == "__main__":
    key = jax.random.PRNGKey(0)
    pkey, k1, k2 = jax.random.split(key, 3)
    params = init_params(pkey)

    B, L = 2, 16
    input_ids = jax.random.randint(k1, (B, L), 0, VOCAB, dtype=jnp.int32)
    segment_ids = jax.random.randint(k2, (B, L), 0, N_TYPES, dtype=jnp.int32)
    seq_lengths = jnp.array([16, 10], dtype=jnp.int32)
    mask = (jnp.arange(L)[None, :] < seq_lengths[:, None]).astype(jnp.float32)

    logits = controller_forward(params, input_ids, mask, segment_ids, seq_lengths)
    logits = jax.block_until_ready(logits)
    assert logits.shape == (B, N_CLASSES), logits.shape
    assert bool(jnp.all(jnp.isfinite(logits)))
    print("KERNEL_OK")
</pallas_src>

<mosaic_0001>
module attributes {stable_mosaic.version = 11 : i64} {
  func.func @_kernel(%arg0: i32, %arg1: memref<45xf32, #tpu.memory_space<smem>>, %arg2: memref<1x16x32xf32, #tpu.memory_space<vmem>>, %arg3: memref<1x16x1xf32, #tpu.memory_space<vmem>>, %arg4: memref<3x8x24xf32, #tpu.memory_space<vmem>>, %arg5: memref<1x32xf32, #tpu.memory_space<vmem>>, %arg6: memref<1x32xf32, #tpu.memory_space<vmem>>, %arg7: memref<32x8xf32, #tpu.memory_space<vmem>>, %arg8: memref<1x8xf32, #tpu.memory_space<vmem>>, %arg9: memref<32x32xf32, #tpu.memory_space<vmem>>, %arg10: memref<1x32xf32, #tpu.memory_space<vmem>>, %arg11: memref<9x8x24xf32, #tpu.memory_space<vmem>>, %arg12: memref<9x1x24xf32, #tpu.memory_space<vmem>>, %arg13: memref<1x24xf32, #tpu.memory_space<vmem>>, %arg14: memref<1x24xf32, #tpu.memory_space<vmem>>, %arg15: memref<32x8xf32, #tpu.memory_space<vmem>>, %arg16: memref<1x8xf32, #tpu.memory_space<vmem>>, %arg17: memref<24x32xf32, #tpu.memory_space<vmem>>, %arg18: memref<1x32xf32, #tpu.memory_space<vmem>>, %arg19: memref<9x8x24xf32, #tpu.memory_space<vmem>>, %arg20: memref<9x1x24xf32, #tpu.memory_space<vmem>>, %arg21: memref<1x24xf32, #tpu.memory_space<vmem>>, %arg22: memref<1x24xf32, #tpu.memory_space<vmem>>, %arg23: memref<48x3xf32, #tpu.memory_space<vmem>>, %arg24: memref<1x3xf32, #tpu.memory_space<vmem>>, %arg25: memref<1x1x3xf32, #tpu.memory_space<vmem>>) attributes {dimension_semantics = [#tpu.dimension_semantics<parallel>], iteration_bounds = array<i64: 2>, scalar_prefetch = 1 : i64, scratch_operands = 0 : i64, tpu.core_type = #tpu.core_type<tc>, window_params = [{transform_indices = @transform_0, window_bounds = array<i64: 1, 16, 32>}, {transform_indices = @transform_1, window_bounds = array<i64: 1, 16, 1>}, {pipeline_mode = #tpu.pipeline_mode<synchronous>, transform_indices = @transform_2, window_bounds = array<i64: 3, 8, 24>}, {pipeline_mode = #tpu.pipeline_mode<synchronous>, transform_indices = @transform_3, window_bounds = array<i64: 1, 32>}, {pipeline_mode = #tpu.pipeline_mode<synchronous>, transform_indices = @transform_4, window_bounds = array<i64: 1, 32>}, {pipeline_mode = #tpu.pipeline_mode<synchronous>, transform_indices = @transform_5, window_bounds = array<i64: 32, 8>}, {pipeline_mode = #tpu.pipeline_mode<synchronous>, transform_indices = @transform_6, window_bounds = array<i64: 1, 8>}, {pipeline_mode = #tpu.pipeline_mode<synchronous>, transform_indices = @transform_7, window_bounds = array<i64: 32, 32>}, {pipeline_mode = #tpu.pipeline_mode<synchronous>, transform_indices = @transform_8, window_bounds = array<i64: 1, 32>}, {pipeline_mode = #tpu.pipeline_mode<synchronous>, transform_indices = @transform_9, window_bounds = array<i64: 9, 8, 24>}, {pipeline_mode = #tpu.pipeline_mode<synchronous>, transform_indices = @transform_10, window_bounds = array<i64: 9, 1, 24>}, {pipeline_mode = #tpu.pipeline_mode<synchronous>, transform_indices = @transform_11, window_bounds = array<i64: 1, 24>}, {pipeline_mode = #tpu.pipeline_mode<synchronous>, transform_indices = @transform_12, window_bounds = array<i64: 1, 24>}, {pipeline_mode = #tpu.pipeline_mode<synchronous>, transform_indices = @transform_13, window_bounds = array<i64: 32, 8>}, {pipeline_mode = #tpu.pipeline_mode<synchronous>, transform_indices = @transform_14, window_bounds = array<i64: 1, 8>}, {pipeline_mode = #tpu.pipeline_mode<synchronous>, transform_indices = @transform_15, window_bounds = array<i64: 24, 32>}, {pipeline_mode = #tpu.pipeline_mode<synchronous>, transform_indices = @transform_16, window_bounds = array<i64: 1, 32>}, {pipeline_mode = #tpu.pipeline_mode<synchronous>, transform_indices = @transform_17, window_bounds = array<i64: 9, 8, 24>}, {pipeline_mode = #tpu.pipeline_mode<synchronous>, transform_indices = @transform_18, window_bounds = array<i64: 9, 1, 24>}, {pipeline_mode = #tpu.pipeline_mode<synchronous>, transform_indices = @transform_19, window_bounds = array<i64: 1, 24>}, {pipeline_mode = #tpu.pipeline_mode<synchronous>, transform_indices = @transform_20, window_bounds = array<i64: 1, 24>}, {pipeline_mode = #tpu.pipeline_mode<synchronous>, transform_indices = @transform_21, window_bounds = array<i64: 48, 3>}, {pipeline_mode = #tpu.pipeline_mode<synchronous>, transform_indices = @transform_22, window_bounds = array<i64: 1, 3>}, {transform_indices = @transform_23, window_bounds = array<i64: 1, 1, 3>}]} {
    %0 = tpu.iota {dimensions = array<i32: 0>} : vector<16x1xi32>
    %c0_i32 = arith.constant 0 : i32
    %1 = vector.broadcast %c0_i32 : i32 to vector<16x1xi32>
    %2 = arith.cmpi ne, %0, %1 : vector<16x1xi32>
    %3 = arith.extui %2 : vector<16x1xi1> to vector<16x1xi32>
    %4 = arith.sitofp %3 : vector<16x1xi32> to vector<16x1xf32>
    %c15_i32 = arith.constant 15 : i32
    %5 = vector.broadcast %c15_i32 : i32 to vector<16x1xi32>
    %6 = arith.cmpi ne, %0, %5 : vector<16x1xi32>
    %7 = arith.extui %6 : vector<16x1xi1> to vector<16x1xi32>
    %8 = arith.sitofp %7 : vector<16x1xi32> to vector<16x1xf32>
    %cst = arith.constant 1.000000e+00 : f32
    %9 = vector.broadcast %cst : f32 to vector<16x1xf32>
    %10 = arith.subf %9, %4 : vector<16x1xf32>
    %cst_0 = arith.constant -1.000000e+30 : f32
    %11 = vector.broadcast %cst_0 : f32 to vector<16x1xf32>
    %12 = arith.mulf %10, %11 : vector<16x1xf32>
    %cst_1 = arith.constant 1.000000e+00 : f32
    %13 = vector.broadcast %cst_1 : f32 to vector<16x1xf32>
    %14 = arith.subf %13, %8 : vector<16x1xf32>
    %cst_2 = arith.constant -1.000000e+30 : f32
    %15 = vector.broadcast %cst_2 : f32 to vector<16x1xf32>
    %16 = arith.mulf %14, %15 : vector<16x1xf32>
    %cst_3 = arith.constant 0.000000e+00 : f32
    %17 = vector.broadcast %cst_3 : f32 to vector<8x24xf32>
    %cst_4 = arith.constant 0.000000e+00 : f32
    %18 = vector.broadcast %cst_4 : f32 to vector<8x24xf32>
    %cst_5 = arith.constant 0.000000e+00 : f32
    %19 = vector.broadcast %cst_5 : f32 to vector<8x24xf32>
    %c0 = arith.constant 0 : index
    %c0_6 = arith.constant 0 : index
    %c0_7 = arith.constant 0 : index
    %20 = vector.load %arg4[%c0, %c0_6, %c0_7] : memref<3x8x24xf32, #tpu.memory_space<vmem>>, vector<1x8x24xf32>
    %21 = vector.shape_cast %20 : vector<1x8x24xf32> to vector<8x24xf32>
    %c1 = arith.constant 1 : index
    %22 = memref.load %arg1[%c1] : memref<45xf32, #tpu.memory_space<smem>>
    %23 = vector.broadcast %22 : f32 to vector<8x24xf32>
    %24 = arith.mulf %23, %21 : vector<8x24xf32>
    %25 = arith.addf %17, %24 : vector<8x24xf32>
    %c2 = arith.constant 2 : index
    %26 = memref.load %arg1[%c2] : memref<45xf32, #tpu.memory_space<smem>>
    %27 = vector.broadcast %26 : f32 to vector<8x24xf32>
    %28 = arith.mulf %27, %21 : vector<8x24xf32>
    %29 = arith.addf %18, %28 : vector<8x24xf32>
    %c3 = arith.constant 3 : index
    %30 = memref.load %arg1[%c3] : memref<45xf32, #tpu.memory_space<smem>>
    %31 = vector.broadcast %30 : f32 to vector<8x24xf32>
    %32 = arith.mulf %31, %21 : vector<8x24xf32>
    %33 = arith.addf %19, %32 : vector<8x24xf32>
    %c1_8 = arith.constant 1 : index
    %c0_9 = arith.constant 0 : index
    %c0_10 = arith.constant 0 : index
    %34 = vector.load %arg4[%c1_8, %c0_9, %c0_10] : memref<3x8x24xf32, #tpu.memory_space<vmem>>, vector<1x8x24xf32>
    %35 = vector.shape_cast %34 : vector<1x8x24xf32> to vector<8x24xf32>
    %c11 = arith.constant 11 : index
    %36 = memref.load %arg1[%c11] : memref<45xf32, #tpu.memory_space<smem>>
    %37 = vector.broadcast %36 : f32 to vector<8x24xf32>
    %38 = arith.mulf %37, %35 : vector<8x24xf32>
    %39 = arith.addf %25, %38 : vector<8x24xf32>
    %c12 = arith.constant 12 : index
    %40 = memref.load %arg1[%c12] : memref<45xf32, #tpu.memory_space<smem>>
    %41 = vector.broadcast %40 : f32 to vector<8x24xf32>
    %42 = arith.mulf %41, %35 : vector<8x24xf32>
    %43 = arith.addf %29, %42 : vector<8x24xf32>
    %c13 = arith.constant 13 : index
    %44 = memref.load %arg1[%c13] : memref<45xf32, #tpu.memory_space<smem>>
    %45 = vector.broadcast %44 : f32 to vector<8x24xf32>
    %46 = arith.mulf %45, %35 : vector<8x24xf32>
    %47 = arith.addf %33, %46 : vector<8x24xf32>
    %c2_11 = arith.constant 2 : index
    %c0_12 = arith.constant 0 : index
    %c0_13 = arith.constant 0 : index
    %48 = vector.load %arg4[%c2_11, %c0_12, %c0_13] : memref<3x8x24xf32, #tpu.memory_space<vmem>>, vector<1x8x24xf32>
    %49 = vector.shape_cast %48 : vector<1x8x24xf32> to vector<8x24xf32>
    %c26 = arith.constant 26 : index
    %50 = memref.load %arg1[%c26] : memref<45xf32, #tpu.memory_space<smem>>
    %51 = vector.broadcast %50 : f32 to vector<8x24xf32>
    %52 = arith.mulf %51, %49 : vector<8x24xf32>
    %53 = arith.addf %39, %52 : vector<8x24xf32>
    %c27 = arith.constant 27 : index
    %54 = memref.load %arg1[%c27] : memref<45xf32, #tpu.memory_space<smem>>
    %55 = vector.broadcast %54 : f32 to vector<8x24xf32>
    %56 = arith.mulf %55, %49 : vector<8x24xf32>
    %57 = arith.addf %43, %56 : vector<8x24xf32>
    %c28 = arith.constant 28 : index
    %58 = memref.load %arg1[%c28] : memref<45xf32, #tpu.memory_space<smem>>
    %59 = vector.broadcast %58 : f32 to vector<8x24xf32>
    %60 = arith.mulf %59, %49 : vector<8x24xf32>
    %61 = arith.addf %47, %60 : vector<8x24xf32>
    %62 = tpu.concatenate %53, %57, %61 in 0 : vector<8x24xf32>, vector<8x24xf32>, vector<8x24xf32> -> vector<24x24xf32>
    %cst_14 = arith.constant 0.000000e+00 : f32
    %63 = vector.broadcast %cst_14 : f32 to vector<8x24xf32>
    %cst_15 = arith.constant 0.000000e+00 : f32
    %64 = vector.broadcast %cst_15 : f32 to vector<1x24xf32>
    %c4 = arith.constant 4 : index
    %65 = memref.load %arg1[%c4] : memref<45xf32, #tpu.memory_space<smem>>
    %c0_16 = arith.constant 0 : index
    %c0_17 = arith.constant 0 : index
    %c0_18 = arith.constant 0 : index
    %66 = vector.load %arg11[%c0_16, %c0_17, %c0_18] : memref<9x8x24xf32, #tpu.memory_space<vmem>>, vector<1x8x24xf32>
    %67 = vector.shape_cast %66 : vector<1x8x24xf32> to vector<8x24xf32>
    %68 = vector.broadcast %65 : f32 to vector<8x24xf32>
    %69 = arith.mulf %68, %67 : vector<8x24xf32>
    %70 = arith.addf %63, %69 : vector<8x24xf32>
    %c0_19 = arith.constant 0 : index
    %c0_20 = arith.constant 0 : index
    %c0_21 = arith.constant 0 : index
    %71 = vector.load %arg12[%c0_19, %c0_20, %c0_21] : memref<9x1x24xf32, #tpu.memory_space<vmem>>, vector<1x1x24xf32>
    %72 = vector.shape_cast %71 : vector<1x1x24xf32> to vector<1x24xf32>
    %73 = vector.broadcast %65 : f32 to vector<1x24xf32>
    %74 = arith.mulf %73, %72 : vector<1x24xf32>
    %75 = arith.addf %64, %74 : vector<1x24xf32>
    %c14 = arith.constant 14 : index
    %76 = memref.load %arg1[%c14] : memref<45xf32, #tpu.memory_space<smem>>
    %c2_22 = arith.constant 2 : index
    %c0_23 = arith.constant 0 : index
    %c0_24 = arith.constant 0 : index
    %77 = vector.load %arg11[%c2_22, %c0_23, %c0_24] : memref<9x8x24xf32, #tpu.memory_space<vmem>>, vector<1x8x24xf32>
    %78 = vector.shape_cast %77 : vector<1x8x24xf32> to vector<8x24xf32>
    %79 = vector.broadcast %76 : f32 to vector<8x24xf32>
    %80 = arith.mulf %79, %78 : vector<8x24xf32>
    %81 = arith.addf %70, %80 : vector<8x24xf32>
    %c2_25 = arith.constant 2 : index
    %c0_26 = arith.constant 0 : index
    %c0_27 = arith.constant 0 : index
    %82 = vector.load %arg12[%c2_25, %c0_26, %c0_27] : memref<9x1x24xf32, #tpu.memory_space<vmem>>, vector<1x1x24xf32>
    %83 = vector.shape_cast %82 : vector<1x1x24xf32> to vector<1x24xf32>
    %84 = vector.broadcast %76 : f32 to vector<1x24xf32>
    %85 = arith.mulf %84, %83 : vector<1x24xf32>
    %86 = arith.addf %75, %85 : vector<1x24xf32>
    %c29 = arith.constant 29 : index
    %87 = memref.load %arg1[%c29] : memref<45xf32, #tpu.memory_space<smem>>
    %c5 = arith.constant 5 : index
    %c0_28 = arith.constant 0 : index
    %c0_29 = arith.constant 0 : index
    %88 = vector.load %arg11[%c5, %c0_28, %c0_29] : memref<9x8x24xf32, #tpu.memory_space<vmem>>, vector<1x8x24xf32>
    %89 = vector.shape_cast %88 : vector<1x8x24xf32> to vector<8x24xf32>
    %90 = vector.broadcast %87 : f32 to vector<8x24xf32>
    %91 = arith.mulf %90, %89 : vector<8x24xf32>
    %92 = arith.addf %81, %91 : vector<8x24xf32>
    %c5_30 = arith.constant 5 : index
    %c0_31 = arith.constant 0 : index
    %c0_32 = arith.constant 0 : index
    %93 = vector.load %arg12[%c5_30, %c0_31, %c0_32] : memref<9x1x24xf32, #tpu.memory_space<vmem>>, vector<1x1x24xf32>
    %94 = vector.shape_cast %93 : vector<1x1x24xf32> to vector<1x24xf32>
    %95 = vector.broadcast %87 : f32 to vector<1x24xf32>
    %96 = arith.mulf %95, %94 : vector<1x24xf32>
    %97 = arith.addf %86, %96 : vector<1x24xf32>
    %98 = tpu.concatenate %62, %92 in 0 : vector<24x24xf32>, vector<8x24xf32> -> vector<32x24xf32>
    %cst_33 = arith.constant 0.000000e+00 : f32
    %99 = vector.broadcast %cst_33 : f32 to vector<8x24xf32>
    %cst_34 = arith.constant 0.000000e+00 : f32
    %100 = vector.broadcast %cst_34 : f32 to vector<1x24xf32>
    %c4_35 = arith.constant 4 : index
    %101 = memref.load %arg1[%c4_35] : memref<45xf32, #tpu.memory_space<smem>>
    %c0_36 = arith.constant 0 : index
    %c0_37 = arith.constant 0 : index
    %c0_38 = arith.constant 0 : index
    %102 = vector.load %arg19[%c0_36, %c0_37, %c0_38] : memref<9x8x24xf32, #tpu.memory_space<vmem>>, vector<1x8x24xf32>
    %103 = vector.shape_cast %102 : vector<1x8x24xf32> to vector<8x24xf32>
    %104 = vector.broadcast %101 : f32 to vector<8x24xf32>
    %105 = arith.mulf %104, %103 : vector<8x24xf32>
    %106 = arith.addf %99, %105 : vector<8x24xf32>
    %c0_39 = arith.constant 0 : index
    %c0_40 = arith.constant 0 : index
    %c0_41 = arith.constant 0 : index
    %107 = vector.load %arg20[%c0_39, %c0_40, %c0_41] : memref<9x1x24xf32, #tpu.memory_space<vmem>>, vector<1x1x24xf32>
    %108 = vector.shape_cast %107 : vector<1x1x24xf32> to vector<1x24xf32>
    %109 = vector.broadcast %101 : f32 to vector<1x24xf32>
    %110 = arith.mulf %109, %108 : vector<1x24xf32>
    %111 = arith.addf %100, %110 : vector<1x24xf32>
    %c14_42 = arith.constant 14 : index
    %112 = memref.load %arg1[%c14_42] : memref<45xf32, #tpu.memory_space<smem>>
    %c2_43 = arith.constant 2 : index
    %c0_44 = arith.constant 0 : index
    %c0_45 = arith.constant 0 : index
    %113 = vector.load %arg19[%c2_43, %c0_44, %c0_45] : memref<9x8x24xf32, #tpu.memory_space<vmem>>, vector<1x8x24xf32>
    %114 = vector.shape_cast %113 : vector<1x8x24xf32> to vector<8x24xf32>
    %115 = vector.broadcast %112 : f32 to vector<8x24xf32>
    %116 = arith.mulf %115, %114 : vector<8x24xf32>
    %117 = arith.addf %106, %116 : vector<8x24xf32>
    %c2_46 = arith.constant 2 : index
    %c0_47 = arith.constant 0 : index
    %c0_48 = arith.constant 0 : index
    %118 = vector.load %arg20[%c2_46, %c0_47, %c0_48] : memref<9x1x24xf32, #tpu.memory_space<vmem>>, vector<1x1x24xf32>
    %119 = vector.shape_cast %118 : vector<1x1x24xf32> to vector<1x24xf32>
    %120 = vector.broadcast %112 : f32 to vector<1x24xf32>
    %121 = arith.mulf %120, %119 : vector<1x24xf32>
    %122 = arith.addf %111, %121 : vector<1x24xf32>
    %c29_49 = arith.constant 29 : index
    %123 = memref.load %arg1[%c29_49] : memref<45xf32, #tpu.memory_space<smem>>
    %c5_50 = arith.constant 5 : index
    %c0_51 = arith.constant 0 : index
    %c0_52 = arith.constant 0 : index
    %124 = vector.load %arg19[%c5_50, %c0_51, %c0_52] : memref<9x8x24xf32, #tpu.memory_space<vmem>>, vector<1x8x24xf32>
    %125 = vector.shape_cast %124 : vector<1x8x24xf32> to vector<8x24xf32>
    %126 = vector.broadcast %123 : f32 to vector<8x24xf32>
    %127 = arith.mulf %126, %125 : vector<8x24xf32>
    %128 = arith.addf %117, %127 : vector<8x24xf32>
    %c5_53 = arith.constant 5 : index
    %c0_54 = arith.constant 0 : index
    %c0_55 = arith.constant 0 : index
    %129 = vector.load %arg20[%c5_53, %c0_54, %c0_55] : memref<9x1x24xf32, #tpu.memory_space<vmem>>, vector<1x1x24xf32>
    %130 = vector.shape_cast %129 : vector<1x1x24xf32> to vector<1x24xf32>
    %131 = vector.broadcast %123 : f32 to vector<1x24xf32>
    %132 = arith.mulf %131, %130 : vector<1x24xf32>
    %133 = arith.addf %122, %132 : vector<1x24xf32>
    %134 = tpu.concatenate %62, %128 in 0 : vector<24x24xf32>, vector<8x24xf32> -> vector<32x24xf32>
    %cst_56 = arith.constant 0.000000e+00 : f32
    %135 = vector.broadcast %cst_56 : f32 to vector<8x24xf32>
    %cst_57 = arith.constant 0.000000e+00 : f32
    %136 = vector.broadcast %cst_57 : f32 to vector<8x24xf32>
    %cst_58 = arith.constant 0.000000e+00 : f32
    %137 = vector.broadcast %cst_58 : f32 to vector<8x24xf32>
    %c0_59 = arith.constant 0 : index
    %c0_60 = arith.constant 0 : index
    %c0_61 = arith.constant 0 : index
    %138 = vector.load %arg4[%c0_59, %c0_60, %c0_61] : memref<3x8x24xf32, #tpu.memory_space<vmem>>, vector<1x8x24xf32>
    %139 = vector.shape_cast %138 : vector<1x8x24xf32> to vector<8x24xf32>
    %c6 = arith.constant 6 : index
    %140 = memref.load %arg1[%c6] : memref<45xf32, #tpu.memory_space<smem>>
    %141 = vector.broadcast %140 : f32 to vector<8x24xf32>
    %142 = arith.mulf %141, %139 : vector<8x24xf32>
    %143 = arith.addf %135, %142 : vector<8x24xf32>
    %c7 = arith.constant 7 : index
    %144 = memref.load %arg1[%c7] : memref<45xf32, #tpu.memory_space<smem>>
    %145 = vector.broadcast %144 : f32 to vector<8x24xf32>
    %146 = arith.mulf %145, %139 : vector<8x24xf32>
    %147 = arith.addf %136, %146 : vector<8x24xf32>
    %c8 = arith.constant 8 : index
    %148 = memref.load %arg1[%c8] : memref<45xf32, #tpu.memory_space<smem>>
    %149 = vector.broadcast %148 : f32 to vector<8x24xf32>
    %150 = arith.mulf %149, %139 : vector<8x24xf32>
    %151 = arith.addf %137, %150 : vector<8x24xf32>
    %c1_62 = arith.constant 1 : index
    %c0_63 = arith.constant 0 : index
    %c0_64 = arith.constant 0 : index
    %152 = vector.load %arg4[%c1_62, %c0_63, %c0_64] : memref<3x8x24xf32, #tpu.memory_space<vmem>>, vector<1x8x24xf32>
    %153 = vector.shape_cast %152 : vector<1x8x24xf32> to vector<8x24xf32>
    %c16 = arith.constant 16 : index
    %154 = memref.load %arg1[%c16] : memref<45xf32, #tpu.memory_space<smem>>
    %155 = vector.broadcast %154 : f32 to vector<8x24xf32>
    %156 = arith.mulf %155, %153 : vector<8x24xf32>
    %157 = arith.addf %143, %156 : vector<8x24xf32>
    %c17 = arith.constant 17 : index
    %158 = memref.load %arg1[%c17] : memref<45xf32, #tpu.memory_space<smem>>
    %159 = vector.broadcast %158 : f32 to vector<8x24xf32>
    %160 = arith.mulf %159, %153 : vector<8x24xf32>
    %161 = arith.addf %147, %160 : vector<8x24xf32>
    %c18 = arith.constant 18 : index
    %162 = memref.load %arg1[%c18] : memref<45xf32, #tpu.memory_space<smem>>
    %163 = vector.broadcast %162 : f32 to vector<8x24xf32>
    %164 = arith.mulf %163, %153 : vector<8x24xf32>
    %165 = arith.addf %151, %164 : vector<8x24xf32>
    %c2_65 = arith.constant 2 : index
    %c0_66 = arith.constant 0 : index
    %c0_67 = arith.constant 0 : index
    %166 = vector.load %arg4[%c2_65, %c0_66, %c0_67] : memref<3x8x24xf32, #tpu.memory_space<vmem>>, vector<1x8x24xf32>
    %167 = vector.shape_cast %166 : vector<1x8x24xf32> to vector<8x24xf32>
    %c31 = arith.constant 31 : index
    %168 = memref.load %arg1[%c31] : memref<45xf32, #tpu.memory_space<smem>>
    %169 = vector.broadcast %168 : f32 to vector<8x24xf32>
    %170 = arith.mulf %169, %167 : vector<8x24xf32>
    %171 = arith.addf %157, %170 : vector<8x24xf32>
    %c32 = arith.constant 32 : index
    %172 = memref.load %arg1[%c32] : memref<45xf32, #tpu.memory_space<smem>>
    %173 = vector.broadcast %172 : f32 to vector<8x24xf32>
    %174 = arith.mulf %173, %167 : vector<8x24xf32>
    %175 = arith.addf %161, %174 : vector<8x24xf32>
    %c33 = arith.constant 33 : index
    %176 = memref.load %arg1[%c33] : memref<45xf32, #tpu.memory_space<smem>>
    %177 = vector.broadcast %176 : f32 to vector<8x24xf32>
    %178 = arith.mulf %177, %167 : vector<8x24xf32>
    %179 = arith.addf %165, %178 : vector<8x24xf32>
    %180 = tpu.concatenate %171, %175, %179 in 0 : vector<8x24xf32>, vector<8x24xf32>, vector<8x24xf32> -> vector<24x24xf32>
    %cst_68 = arith.constant 0.000000e+00 : f32
    %181 = vector.broadcast %cst_68 : f32 to vector<8x24xf32>
    %cst_69 = arith.constant 0.000000e+00 : f32
    %182 = vector.broadcast %cst_69 : f32 to vector<1x24xf32>
    %c9 = arith.constant 9 : index
    %183 = memref.load %arg1[%c9] : memref<45xf32, #tpu.memory_space<smem>>
    %c1_70 = arith.constant 1 : index
    %c0_71 = arith.constant 0 : index
    %c0_72 = arith.constant 0 : index
    %184 = vector.load %arg11[%c1_70, %c0_71, %c0_72] : memref<9x8x24xf32, #tpu.memory_space<vmem>>, vector<1x8x24xf32>
    %185 = vector.shape_cast %184 : vector<1x8x24xf32> to vector<8x24xf32>
    %186 = vector.broadcast %183 : f32 to vector<8x24xf32>
    %187 = arith.mulf %186, %185 : vector<8x24xf32>
    %188 = arith.addf %181, %187 : vector<8x24xf32>
    %c1_73 = arith.constant 1 : index
    %c0_74 = arith.constant 0 : index
    %c0_75 = arith.constant 0 : index
    %189 = vector.load %arg12[%c1_73, %c0_74, %c0_75] : memref<9x1x24xf32, #tpu.memory_space<vmem>>, vector<1x1x24xf32>
    %190 = vector.shape_cast %189 : vector<1x1x24xf32> to vector<1x24xf32>
    %191 = vector.broadcast %183 : f32 to vector<1x24xf32>
    %192 = arith.mulf %191, %190 : vector<1x24xf32>
    %193 = arith.addf %182, %192 : vector<1x24xf32>
    %c19 = arith.constant 19 : index
    %194 = memref.load %arg1[%c19] : memref<45xf32, #tpu.memory_space<smem>>
    %c3_76 = arith.constant 3 : index
    %c0_77 = arith.constant 0 : index
    %c0_78 = arith.constant 0 : index
    %195 = vector.load %arg11[%c3_76, %c0_77, %c0_78] : memref<9x8x24xf32, #tpu.memory_space<vmem>>, vector<1x8x24xf32>
    %196 = vector.shape_cast %195 : vector<1x8x24xf32> to vector<8x24xf32>
    %197 = vector.broadcast %194 : f32 to vector<8x24xf32>
    %198 = arith.mulf %197, %196 : vector<8x24xf32>
    %199 = arith.addf %188, %198 : vector<8x24xf32>
    %c3_79 = arith.constant 3 : index
    %c0_80 = arith.constant 0 : index
    %c0_81 = arith.constant 0 : index
    %200 = vector.load %arg12[%c3_79, %c0_80, %c0_81] : memref<9x1x24xf32, #tpu.memory_space<vmem>>, vector<1x1x24xf32>
    %201 = vector.shape_cast %200 : vector<1x1x24xf32> to vector<1x24xf32>
    %202 = vector.broadcast %194 : f32 to vector<1x24xf32>
    %203 = arith.mulf %202, %201 : vector<1x24xf32>
    %204 = arith.addf %193, %203 : vector<1x24xf32>
    %c34 = arith.constant 34 : index
    %205 = memref.load %arg1[%c34] : memref<45xf32, #tpu.memory_space<smem>>
    %c6_82 = arith.constant 6 : index
    %c0_83 = arith.constant 0 : index
    %c0_84 = arith.constant 0 : index
    %206 = vector.load %arg11[%c6_82, %c0_83, %c0_84] : memref<9x8x24xf32, #tpu.memory_space<vmem>>, vector<1x8x24xf32>
    %207 = vector.shape_cast %206 : vector<1x8x24xf32> to vector<8x24xf32>
    %208 = vector.broadcast %205 : f32 to vector<8x24xf32>
    %209 = arith.mulf %208, %207 : vector<8x24xf32>
    %210 = arith.addf %199, %209 : vector<8x24xf32>
    %c6_85 = arith.constant 6 : index
    %c0_86 = arith.constant 0 : index
    %c0_87 = arith.constant 0 : index
    %211 = vector.load %arg12[%c6_85, %c0_86, %c0_87] : memref<9x1x24xf32, #tpu.memory_space<vmem>>, vector<1x1x24xf32>
    %212 = vector.shape_cast %211 : vector<1x1x24xf32> to vector<1x24xf32>
    %213 = vector.broadcast %205 : f32 to vector<1x24xf32>
    %214 = arith.mulf %213, %212 : vector<1x24xf32>
    %215 = arith.addf %204, %214 : vector<1x24xf32>
    %216 = tpu.concatenate %180, %210 in 0 : vector<24x24xf32>, vector<8x24xf32> -> vector<32x24xf32>
    %cst_88 = arith.constant 0.000000e+00 : f32
    %217 = vector.broadcast %cst_88 : f32 to vector<8x24xf32>
    %cst_89 = arith.constant 0.000000e+00 : f32
    %218 = vector.broadcast %cst_89 : f32 to vector<1x24xf32>
    %c9_90 = arith.constant 9 : index
    %219 = memref.load %arg1[%c9_90] : memref<45xf32, #tpu.memory_space<smem>>
    %c1_91 = arith.constant 1 : index
    %c0_92 = arith.constant 0 : index
    %c0_93 = arith.constant 0 : index
    %220 = vector.load %arg19[%c1_91, %c0_92, %c0_93] : memref<9x8x24xf32, #tpu.memory_space<vmem>>, vector<1x8x24xf32>
    %221 = vector.shape_cast %220 : vector<1x8x24xf32> to vector<8x24xf32>
    %222 = vector.broadcast %219 : f32 to vector<8x24xf32>
    %223 = arith.mulf %222, %221 : vector<8x24xf32>
    %224 = arith.addf %217, %223 : vector<8x24xf32>
    %c1_94 = arith.constant 1 : index
    %c0_95 = arith.constant 0 : index
    %c0_96 = arith.constant 0 : index
    %225 = vector.load %arg20[%c1_94, %c0_95, %c0_96] : memref<9x1x24xf32, #tpu.memory_space<vmem>>, vector<1x1x24xf32>
    %226 = vector.shape_cast %225 : vector<1x1x24xf32> to vector<1x24xf32>
    %227 = vector.broadcast %219 : f32 to vector<1x24xf32>
    %228 = arith.mulf %227, %226 : vector<1x24xf32>
    %229 = arith.addf %218, %228 : vector<1x24xf32>
    %c19_97 = arith.constant 19 : index
    %230 = memref.load %arg1[%c19_97] : memref<45xf32, #tpu.memory_space<smem>>
    %c3_98 = arith.constant 3 : index
    %c0_99 = arith.constant 0 : index
    %c0_100 = arith.constant 0 : index
    %231 = vector.load %arg19[%c3_98, %c0_99, %c0_100] : memref<9x8x24xf32, #tpu.memory_space<vmem>>, vector<1x8x24xf32>
    %232 = vector.shape_cast %231 : vector<1x8x24xf32> to vector<8x24xf32>
    %233 = vector.broadcast %230 : f32 to vector<8x24xf32>
    %234 = arith.mulf %233, %232 : vector<8x24xf32>
    %235 = arith.addf %224, %234 : vector<8x24xf32>
    %c3_101 = arith.constant 3 : index
    %c0_102 = arith.constant 0 : index
    %c0_103 = arith.constant 0 : index
    %236 = vector.load %arg20[%c3_101, %c0_102, %c0_103] : memref<9x1x24xf32, #tpu.memory_space<vmem>>, vector<1x1x24xf32>
    %237 = vector.shape_cast %236 : vector<1x1x24xf32> to vector<1x24xf32>
    %238 = vector.broadcast %230 : f32 to vector<1x24xf32>
    %239 = arith.mulf %238, %237 : vector<1x24xf32>
    %240 = arith.addf %229, %239 : vector<1x24xf32>
    %c34_104 = arith.constant 34 : index
    %241 = memref.load %arg1[%c34_104] : memref<45xf32, #tpu.memory_space<smem>>
    %c6_105 = arith.constant 6 : index
    %c0_106 = arith.constant 0 : index
    %c0_107 = arith.constant 0 : index
    %242 = vector.load %arg19[%c6_105, %c0_106, %c0_107] : memref<9x8x24xf32, #tpu.memory_space<vmem>>, vector<1x8x24xf32>
    %243 = vector.shape_cast %242 : vector<1x8x24xf32> to vector<8x24xf32>
    %244 = vector.broadcast %241 : f32 to vector<8x24xf32>
    %245 = arith.mulf %244, %243 : vector<8x24xf32>
    %246 = arith.addf %235, %245 : vector<8x24xf32>
    %c6_108 = arith.constant 6 : index
    %c0_109 = arith.constant 0 : index
    %c0_110 = arith.constant 0 : index
    %247 = vector.load %arg20[%c6_108, %c0_109, %c0_110] : memref<9x1x24xf32, #tpu.memory_space<vmem>>, vector<1x1x24xf32>
    %248 = vector.shape_cast %247 : vector<1x1x24xf32> to vector<1x24xf32>
    %249 = vector.broadcast %241 : f32 to vector<1x24xf32>
    %250 = arith.mulf %249, %248 : vector<1x24xf32>
    %251 = arith.addf %240, %250 : vector<1x24xf32>
    %252 = tpu.concatenate %180, %246 in 0 : vector<24x24xf32>, vector<8x24xf32> -> vector<32x24xf32>
    %cst_111 = arith.constant 0.000000e+00 : f32
    %253 = vector.broadcast %cst_111 : f32 to vector<8x24xf32>
    %cst_112 = arith.constant 0.000000e+00 : f32
    %254 = vector.broadcast %cst_112 : f32 to vector<8x24xf32>
    %cst_113 = arith.constant 0.000000e+00 : f32
    %255 = vector.broadcast %cst_113 : f32 to vector<8x24xf32>
    %c1_114 = arith.constant 1 : index
    %c0_115 = arith.constant 0 : index
    %c0_116 = arith.constant 0 : index
    %256 = vector.load %arg4[%c1_114, %c0_115, %c0_116] : memref<3x8x24xf32, #tpu.memory_space<vmem>>, vector<1x8x24xf32>
    %257 = vector.shape_cast %256 : vector<1x8x24xf32> to vector<8x24xf32>
    %c21 = arith.constant 21 : index
    %258 = memref.load %arg1[%c21] : memref<45xf32, #tpu.memory_space<smem>>
    %259 = vector.broadcast %258 : f32 to vector<8x24xf32>
    %260 = arith.mulf %259, %257 : vector<8x24xf32>
    %261 = arith.addf %253, %260 : vector<8x24xf32>
    %c22 = arith.constant 22 : index
    %262 = memref.load %arg1[%c22] : memref<45xf32, #tpu.memory_space<smem>>
    %263 = vector.broadcast %262 : f32 to vector<8x24xf32>
    %264 = arith.mulf %263, %257 : vector<8x24xf32>
    %265 = arith.addf %254, %264 : vector<8x24xf32>
    %c23 = arith.constant 23 : index
    %266 = memref.load %arg1[%c23] : memref<45xf32, #tpu.memory_space<smem>>
    %267 = vector.broadcast %266 : f32 to vector<8x24xf32>
    %268 = arith.mulf %267, %257 : vector<8x24xf32>
    %269 = arith.addf %255, %268 : vector<8x24xf32>
    %c2_117 = arith.constant 2 : index
    %c0_118 = arith.constant 0 : index
    %c0_119 = arith.constant 0 : index
    %270 = vector.load %arg4[%c2_117, %c0_118, %c0_119] : memref<3x8x24xf32, #tpu.memory_space<vmem>>, vector<1x8x24xf32>
    %271 = vector.shape_cast %270 : vector<1x8x24xf32> to vector<8x24xf32>
    %c36 = arith.constant 36 : index
    %272 = memref.load %arg1[%c36] : memref<45xf32, #tpu.memory_space<smem>>
    %273 = vector.broadcast %272 : f32 to vector<8x24xf32>
    %274 = arith.mulf %273, %271 : vector<8x24xf32>
    %275 = arith.addf %261, %274 : vector<8x24xf32>
    %c37 = arith.constant 37 : index
    %276 = memref.load %arg1[%c37] : memref<45xf32, #tpu.memory_space<smem>>
    %277 = vector.broadcast %276 : f32 to vector<8x24xf32>
    %278 = arith.mulf %277, %271 : vector<8x24xf32>
    %279 = arith.addf %265, %278 : vector<8x24xf32>
    %c38 = arith.constant 38 : index
    %280 = memref.load %arg1[%c38] : memref<45xf32, #tpu.memory_space<smem>>
    %281 = vector.broadcast %280 : f32 to vector<8x24xf32>
    %282 = arith.mulf %281, %271 : vector<8x24xf32>
    %283 = arith.addf %269, %282 : vector<8x24xf32>
    %284 = tpu.concatenate %275, %279, %283 in 0 : vector<8x24xf32>, vector<8x24xf32>, vector<8x24xf32> -> vector<24x24xf32>
    %cst_120 = arith.constant 0.000000e+00 : f32
    %285 = vector.broadcast %cst_120 : f32 to vector<8x24xf32>
    %cst_121 = arith.constant 0.000000e+00 : f32
    %286 = vector.broadcast %cst_121 : f32 to vector<1x24xf32>
    %c24 = arith.constant 24 : index
    %287 = memref.load %arg1[%c24] : memref<45xf32, #tpu.memory_space<smem>>
    %c4_122 = arith.constant 4 : index
    %c0_123 = arith.constant 0 : index
    %c0_124 = arith.constant 0 : index
    %288 = vector.load %arg11[%c4_122, %c0_123, %c0_124] : memref<9x8x24xf32, #tpu.memory_space<vmem>>, vector<1x8x24xf32>
    %289 = vector.shape_cast %288 : vector<1x8x24xf32> to vector<8x24xf32>
    %290 = vector.broadcast %287 : f32 to vector<8x24xf32>
    %291 = arith.mulf %290, %289 : vector<8x24xf32>
    %292 = arith.addf %285, %291 : vector<8x24xf32>
    %c4_125 = arith.constant 4 : index
    %c0_126 = arith.constant 0 : index
    %c0_127 = arith.constant 0 : index
    %293 = vector.load %arg12[%c4_125, %c0_126, %c0_127] : memref<9x1x24xf32, #tpu.memory_space<vmem>>, vector<1x1x24xf32>
    %294 = vector.shape_cast %293 : vector<1x1x24xf32> to vector<1x24xf32>
    %295 = vector.broadcast %287 : f32 to vector<1x24xf32>
    %296 = arith.mulf %295, %294 : vector<1x24xf32>
    %297 = arith.addf %286, %296 : vector<1x24xf32>
    %c39 = arith.constant 39 : index
    %298 = memref.load %arg1[%c39] : memref<45xf32, #tpu.memory_space<smem>>
    %c7_128 = arith.constant 7 : index
    %c0_129 = arith.constant 0 : index
    %c0_130 = arith.constant 0 : index
    %299 = vector.load %arg11[%c7_128, %c0_129, %c0_130] : memref<9x8x24xf32, #tpu.memory_space<vmem>>, vector<1x8x24xf32>
    %300 = vector.shape_cast %299 : vector<1x8x24xf32> to vector<8x24xf32>
    %301 = vector.broadcast %298 : f32 to vector<8x24xf32>
    %302 = arith.mulf %301, %300 : vector<8x24xf32>
    %303 = arith.addf %292, %302 : vector<8x24xf32>
    %c7_131 = arith.constant 7 : index
    %c0_132 = arith.constant 0 : index
    %c0_133 = arith.constant 0 : index
    %304 = vector.load %arg12[%c7_131, %c0_132, %c0_133] : memref<9x1x24xf32, #tpu.memory_space<vmem>>, vector<1x1x24xf32>
    %305 = vector.shape_cast %304 : vector<1x1x24xf32> to vector<1x24xf32>
    %306 = vector.broadcast %298 : f32 to vector<1x24xf32>
    %307 = arith.mulf %306, %305 : vector<1x24xf32>
    %308 = arith.addf %297, %307 : vector<1x24xf32>
    %309 = tpu.concatenate %284, %303 in 0 : vector<24x24xf32>, vector<8x24xf32> -> vector<32x24xf32>
    %cst_134 = arith.constant 0.000000e+00 : f32
    %310 = vector.broadcast %cst_134 : f32 to vector<8x24xf32>
    %cst_135 = arith.constant 0.000000e+00 : f32
    %311 = vector.broadcast %cst_135 : f32 to vector<1x24xf32>
    %c24_136 = arith.constant 24 : index
    %312 = memref.load %arg1[%c24_136] : memref<45xf32, #tpu.memory_space<smem>>
    %c4_137 = arith.constant 4 : index
    %c0_138 = arith.constant 0 : index
    %c0_139 = arith.constant 0 : index
    %313 = vector.load %arg19[%c4_137, %c0_138, %c0_139] : memref<9x8x24xf32, #tpu.memory_space<vmem>>, vector<1x8x24xf32>
    %314 = vector.shape_cast %313 : vector<1x8x24xf32> to vector<8x24xf32>
    %315 = vector.broadcast %312 : f32 to vector<8x24xf32>
    %316 = arith.mulf %315, %314 : vector<8x24xf32>
    %317 = arith.addf %310, %316 : vector<8x24xf32>
    %c4_140 = arith.constant 4 : index
    %c0_141 = arith.constant 0 : index
    %c0_142 = arith.constant 0 : index
    %318 = vector.load %arg20[%c4_140, %c0_141, %c0_142] : memref<9x1x24xf32, #tpu.memory_space<vmem>>, vector<1x1x24xf32>
    %319 = vector.shape_cast %318 : vector<1x1x24xf32> to vector<1x24xf32>
    %320 = vector.broadcast %312 : f32 to vector<1x24xf32>
    %321 = arith.mulf %320, %319 : vector<1x24xf32>
    %322 = arith.addf %311, %321 : vector<1x24xf32>
    %c39_143 = arith.constant 39 : index
    %323 = memref.load %arg1[%c39_143] : memref<45xf32, #tpu.memory_space<smem>>
    %c7_144 = arith.constant 7 : index
    %c0_145 = arith.constant 0 : index
    %c0_146 = arith.constant 0 : index
    %324 = vector.load %arg19[%c7_144, %c0_145, %c0_146] : memref<9x8x24xf32, #tpu.memory_space<vmem>>, vector<1x8x24xf32>
    %325 = vector.shape_cast %324 : vector<1x8x24xf32> to vector<8x24xf32>
    %326 = vector.broadcast %323 : f32 to vector<8x24xf32>
    %327 = arith.mulf %326, %325 : vector<8x24xf32>
    %328 = arith.addf %317, %327 : vector<8x24xf32>
    %c7_147 = arith.constant 7 : index
    %c0_148 = arith.constant 0 : index
    %c0_149 = arith.constant 0 : index
    %329 = vector.load %arg20[%c7_147, %c0_148, %c0_149] : memref<9x1x24xf32, #tpu.memory_space<vmem>>, vector<1x1x24xf32>
    %330 = vector.shape_cast %329 : vector<1x1x24xf32> to vector<1x24xf32>
    %331 = vector.broadcast %323 : f32 to vector<1x24xf32>
    %332 = arith.mulf %331, %330 : vector<1x24xf32>
    %333 = arith.addf %322, %332 : vector<1x24xf32>
    %334 = tpu.concatenate %284, %328 in 0 : vector<24x24xf32>, vector<8x24xf32> -> vector<32x24xf32>
    %cst_150 = arith.constant 0.000000e+00 : f32
    %335 = vector.broadcast %cst_150 : f32 to vector<8x24xf32>
    %cst_151 = arith.constant 0.000000e+00 : f32
    %336 = vector.broadcast %cst_151 : f32 to vector<8x24xf32>
    %cst_152 = arith.constant 0.000000e+00 : f32
    %337 = vector.broadcast %cst_152 : f32 to vector<8x24xf32>
    %c2_153 = arith.constant 2 : index
    %c0_154 = arith.constant 0 : index
    %c0_155 = arith.constant 0 : index
    %338 = vector.load %arg4[%c2_153, %c0_154, %c0_155] : memref<3x8x24xf32, #tpu.memory_space<vmem>>, vector<1x8x24xf32>
    %339 = vector.shape_cast %338 : vector<1x8x24xf32> to vector<8x24xf32>
    %c41 = arith.constant 41 : index
    %340 = memref.load %arg1[%c41] : memref<45xf32, #tpu.memory_space<smem>>
    %341 = vector.broadcast %340 : f32 to vector<8x24xf32>
    %342 = arith.mulf %341, %339 : vector<8x24xf32>
    %343 = arith.addf %335, %342 : vector<8x24xf32>
    %c42 = arith.constant 42 : index
    %344 = memref.load %arg1[%c42] : memref<45xf32, #tpu.memory_space<smem>>
    %345 = vector.broadcast %344 : f32 to vector<8x24xf32>
    %346 = arith.mulf %345, %339 : vector<8x24xf32>
    %347 = arith.addf %336, %346 : vector<8x24xf32>
    %c43 = arith.constant 43 : index
    %348 = memref.load %arg1[%c43] : memref<45xf32, #tpu.memory_space<smem>>
    %349 = vector.broadcast %348 : f32 to vector<8x24xf32>
    %350 = arith.mulf %349, %339 : vector<8x24xf32>
    %351 = arith.addf %337, %350 : vector<8x24xf32>
    %352 = tpu.concatenate %343, %347, %351 in 0 : vector<8x24xf32>, vector<8x24xf32>, vector<8x24xf32> -> vector<24x24xf32>
    %cst_156 = arith.constant 0.000000e+00 : f32
    %353 = vector.broadcast %cst_156 : f32 to vector<8x24xf32>
    %cst_157 = arith.constant 0.000000e+00 : f32
    %354 = vector.broadcast %cst_157 : f32 to vector<1x24xf32>
    %c44 = arith.constant 44 : index
    %355 = memref.load %arg1[%c44] : memref<45xf32, #tpu.memory_space<smem>>
    %c8_158 = arith.constant 8 : index
    %c0_159 = arith.constant 0 : index
    %c0_160 = arith.constant 0 : index
    %356 = vector.load %arg11[%c8_158, %c0_159, %c0_160] : memref<9x8x24xf32, #tpu.memory_space<vmem>>, vector<1x8x24xf32>
    %357 = vector.shape_cast %356 : vector<1x8x24xf32> to vector<8x24xf32>
    %358 = vector.broadcast %355 : f32 to vector<8x24xf32>
    %359 = arith.mulf %358, %357 : vector<8x24xf32>
    %360 = arith.addf %353, %359 : vector<8x24xf32>
    %c8_161 = arith.constant 8 : index
    %c0_162 = arith.constant 0 : index
    %c0_163 = arith.constant 0 : index
    %361 = vector.load %arg12[%c8_161, %c0_162, %c0_163] : memref<9x1x24xf32, #tpu.memory_space<vmem>>, vector<1x1x24xf32>
    %362 = vector.shape_cast %361 : vector<1x1x24xf32> to vector<1x24xf32>
    %363 = vector.broadcast %355 : f32 to vector<1x24xf32>
    %364 = arith.mulf %363, %362 : vector<1x24xf32>
    %365 = arith.addf %354, %364 : vector<1x24xf32>
    %366 = tpu.concatenate %352, %360 in 0 : vector<24x24xf32>, vector<8x24xf32> -> vector<32x24xf32>
    %cst_164 = arith.constant 0.000000e+00 : f32
    %367 = vector.broadcast %cst_164 : f32 to vector<8x24xf32>
    %cst_165 = arith.constant 0.000000e+00 : f32
    %368 = vector.broadcast %cst_165 : f32 to vector<1x24xf32>
    %c44_166 = arith.constant 44 : index
    %369 = memref.load %arg1[%c44_166] : memref<45xf32, #tpu.memory_space<smem>>
    %c8_167 = arith.constant 8 : index
    %c0_168 = arith.constant 0 : index
    %c0_169 = arith.constant 0 : index
    %370 = vector.load %arg19[%c8_167, %c0_168, %c0_169] : memref<9x8x24xf32, #tpu.memory_space<vmem>>, vector<1x8x24xf32>
    %371 = vector.shape_cast %370 : vector<1x8x24xf32> to vector<8x24xf32>
    %372 = vector.broadcast %369 : f32 to vector<8x24xf32>
    %373 = arith.mulf %372, %371 : vector<8x24xf32>
    %374 = arith.addf %367, %373 : vector<8x24xf32>
    %c8_170 = arith.constant 8 : index
    %c0_171 = arith.constant 0 : index
    %c0_172 = arith.constant 0 : index
    %375 = vector.load %arg20[%c8_170, %c0_171, %c0_172] : memref<9x1x24xf32, #tpu.memory_space<vmem>>, vector<1x1x24xf32>
    %376 = vector.shape_cast %375 : vector<1x1x24xf32> to vector<1x24xf32>
    %377 = vector.broadcast %369 : f32 to vector<1x24xf32>
    %378 = arith.mulf %377, %376 : vector<1x24xf32>
    %379 = arith.addf %368, %378 : vector<1x24xf32>
    %380 = tpu.concatenate %352, %374 in 0 : vector<24x24xf32>, vector<8x24xf32> -> vector<32x24xf32>
    %c0_173 = arith.constant 0 : index
    %c0_174 = arith.constant 0 : index
    %c0_175 = arith.constant 0 : index
    %381 = vector.load %arg2[%c0_173, %c0_174, %c0_175] : memref<1x16x32xf32, #tpu.memory_space<vmem>>, vector<1x16x32xf32>
    %382 = vector.shape_cast %381 : vector<1x16x32xf32> to vector<16x32xf32>
    %c0_176 = arith.constant 0 : index
    %c0_177 = arith.constant 0 : index
    %383 = vector.load %arg5[%c0_176, %c0_177] : memref<1x32xf32, #tpu.memory_space<vmem>>, vector<1x32xf32>
    %c0_178 = arith.constant 0 : index
    %c0_179 = arith.constant 0 : index
    %384 = vector.load %arg6[%c0_178, %c0_179] : memref<1x32xf32, #tpu.memory_space<vmem>>, vector<1x32xf32>
    %cst_180 = arith.constant dense<0.000000e+00> : vector<16xf32>
    %385 = vector.multi_reduction <add>, %382, %cst_180 [1] : vector<16x32xf32> to vector<16xf32>
    %386 = vector.shape_cast %385 : vector<16xf32> to vector<16x1xf32>
    %cst_181 = arith.constant 3.200000e+01 : f32
    %387 = vector.broadcast %cst_181 : f32 to vector<16x1xf32>
    %388 = arith.divf %386, %387 : vector<16x1xf32>
    %389 = arith.mulf %382, %382 : vector<16x32xf32>
    %cst_182 = arith.constant dense<0.000000e+00> : vector<16xf32>
    %390 = vector.multi_reduction <add>, %389, %cst_182 [1] : vector<16x32xf32> to vector<16xf32>
    %391 = vector.shape_cast %390 : vector<16xf32> to vector<16x1xf32>
    %cst_183 = arith.constant 3.200000e+01 : f32
    %392 = vector.broadcast %cst_183 : f32 to vector<16x1xf32>
    %393 = arith.divf %391, %392 : vector<16x1xf32>
    %394 = arith.mulf %388, %388 : vector<16x1xf32>
    %395 = arith.subf %393, %394 : vector<16x1xf32>
    %396 = vector.broadcast %388 : vector<16x1xf32> to vector<16x32xf32>
    %397 = arith.subf %382, %396 : vector<16x32xf32>
    %cst_184 = arith.constant 9.99999996E-13 : f32
    %398 = vector.broadcast %cst_184 : f32 to vector<16x1xf32>
    %399 = arith.addf %395, %398 : vector<16x1xf32>
    %400 = math.rsqrt %399 : vector<16x1xf32>
    %401 = vector.broadcast %400 : vector<16x1xf32> to vector<16x32xf32>
    %402 = arith.mulf %397, %401 : vector<16x32xf32>
    %403 = vector.broadcast %383 : vector<1x32xf32> to vector<16x32xf32>
    %404 = arith.mulf %402, %403 : vector<16x32xf32>
    %405 = vector.broadcast %384 : vector<1x32xf32> to vector<16x32xf32>
    %406 = arith.addf %404, %405 : vector<16x32xf32>
    %c0_185 = arith.constant 0 : index
    %c0_186 = arith.constant 0 : index
    %407 = vector.load %arg9[%c0_185, %c0_186] : memref<32x32xf32, #tpu.memory_space<vmem>>, vector<32x32xf32>
    %cst_187 = arith.constant dense<0.000000e+00> : vector<16x32xf32>
    %408 = tpu.matmul %406, %407, %cst_187 {dimension_numbers = #tpu.dot_dimension_numbers<[1], [0], [0], [1], [0, 0, 1, 1], [], []>} : vector<16x32xf32>, vector<32x32xf32>, vector<16x32xf32> -> vector<16x32xf32>
    %c0_188 = arith.constant 0 : index
    %c0_189 = arith.constant 0 : index
    %409 = vector.load %arg10[%c0_188, %c0_189] : memref<1x32xf32, #tpu.memory_space<vmem>>, vector<1x32xf32>
    %410 = vector.broadcast %409 : vector<1x32xf32> to vector<16x32xf32>
    %411 = arith.addf %408, %410 : vector<16x32xf32>
    %412 = vector.extract_strided_slice %411 {offsets = [0, 0], sizes = [16, 8], strides = [1, 1]} : vector<16x32xf32> to vector<16x8xf32>
    %413 = vector.extract_strided_slice %411 {offsets = [0, 8], sizes = [16, 24], strides = [1, 1]} : vector<16x32xf32> to vector<16x24xf32>
    %c0_190 = arith.constant 0 : index
    %c0_191 = arith.constant 0 : index
    %414 = vector.load %arg7[%c0_190, %c0_191] : memref<32x8xf32, #tpu.memory_space<vmem>>, vector<32x8xf32>
    %cst_192 = arith.constant dense<0.000000e+00> : vector<16x8xf32>
    %415 = tpu.matmul %406, %414, %cst_192 {dimension_numbers = #tpu.dot_dimension_numbers<[1], [0], [0], [1], [0, 0, 1, 1], [], []>} : vector<16x32xf32>, vector<32x8xf32>, vector<16x8xf32> -> vector<16x8xf32>
    %c0_193 = arith.constant 0 : index
    %c0_194 = arith.constant 0 : index
    %416 = vector.load %arg8[%c0_193, %c0_194] : memref<1x8xf32, #tpu.memory_space<vmem>>, vector<1x8xf32>
    %417 = vector.broadcast %416 : vector<1x8xf32> to vector<16x8xf32>
    %418 = arith.addf %415, %417 : vector<16x8xf32>
    %cst_195 = arith.constant 0.000000e+00 : f32
    %419 = vector.broadcast %cst_195 : f32 to vector<16x24xf32>
    %c1_i32 = arith.constant 1 : i32
    %420 = tpu.dynamic_rotate %418 by %c1_i32 dim 0 : vector<16x8xf32>, i32 -> vector<16x8xf32>
    %c15_i32_196 = arith.constant 15 : i32
    %421 = tpu.dynamic_rotate %418 by %c15_i32_196 dim 0 : vector<16x8xf32>, i32 -> vector<16x8xf32>
    %422 = vector.broadcast %4 : vector<16x1xf32> to vector<16x8xf32>
    %423 = arith.mulf %420, %422 : vector<16x8xf32>
    %424 = arith.addf %423, %418 : vector<16x8xf32>
    %425 = vector.broadcast %8 : vector<16x1xf32> to vector<16x8xf32>
    %426 = arith.mulf %421, %425 : vector<16x8xf32>
    %427 = arith.addf %424, %426 : vector<16x8xf32>
    %cst_197 = arith.constant 0.333333343 : f32
    %428 = vector.broadcast %cst_197 : f32 to vector<16x8xf32>
    %429 = arith.mulf %427, %428 : vector<16x8xf32>
    %430 = vector.broadcast %12 : vector<16x1xf32> to vector<16x8xf32>
    %431 = arith.addf %420, %430 : vector<16x8xf32>
    %432 = arith.maximumf %431, %418 : vector<16x8xf32>
    %433 = vector.broadcast %16 : vector<16x1xf32> to vector<16x8xf32>
    %434 = arith.addf %421, %433 : vector<16x8xf32>
    %435 = arith.maximumf %432, %434 : vector<16x8xf32>
    %cst_198 = arith.constant 0.000000e+00 : f32
    %436 = vector.broadcast %cst_198 : f32 to vector<16x8xf32>
    %437 = arith.maximumf %418, %436 : vector<16x8xf32>
    %438 = tpu.concatenate %418, %429, %435, %437 in 1 : vector<16x8xf32>, vector<16x8xf32>, vector<16x8xf32>, vector<16x8xf32> -> vector<16x32xf32>
    %cst_199 = arith.constant dense<0.000000e+00> : vector<16x24xf32>
    %439 = tpu.matmul %438, %98, %cst_199 {dimension_numbers = #tpu.dot_dimension_numbers<[1], [0], [0], [1], [0, 0, 1, 1], [], []>} : vector<16x32xf32>, vector<32x24xf32>, vector<16x24xf32> -> vector<16x24xf32>
    %440 = arith.addf %419, %439 : vector<16x24xf32>
    %441 = vector.broadcast %97 : vector<1x24xf32> to vector<16x24xf32>
    %442 = arith.addf %440, %441 : vector<16x24xf32>
    %c1_i32_200 = arith.constant 1 : i32
    %443 = tpu.dynamic_rotate %412 by %c1_i32_200 dim 0 : vector<16x8xf32>, i32 -> vector<16x8xf32>
    %c15_i32_201 = arith.constant 15 : i32
    %444 = tpu.dynamic_rotate %412 by %c15_i32_201 dim 0 : vector<16x8xf32>, i32 -> vector<16x8xf32>
    %445 = vector.broadcast %4 : vector<16x1xf32> to vector<16x8xf32>
    %446 = arith.mulf %443, %445 : vector<16x8xf32>
    %447 = arith.addf %446, %412 : vector<16x8xf32>
    %448 = vector.broadcast %8 : vector<16x1xf32> to vector<16x8xf32>
    %449 = arith.mulf %444, %448 : vector<16x8xf32>
    %450 = arith.addf %447, %449 : vector<16x8xf32>
    %cst_202 = arith.constant 0.333333343 : f32
    %451 = vector.broadcast %cst_202 : f32 to vector<16x8xf32>
    %452 = arith.mulf %450, %451 : vector<16x8xf32>
    %453 = vector.broadcast %12 : vector<16x1xf32> to vector<16x8xf32>
    %454 = arith.addf %443, %453 : vector<16x8xf32>
    %455 = arith.maximumf %454, %412 : vector<16x8xf32>
    %456 = vector.broadcast %16 : vector<16x1xf32> to vector<16x8xf32>
    %457 = arith.addf %444, %456 : vector<16x8xf32>
    %458 = arith.maximumf %455, %457 : vector<16x8xf32>
    %cst_203 = arith.constant 0.000000e+00 : f32
    %459 = vector.broadcast %cst_203 : f32 to vector<16x8xf32>
    %460 = arith.maximumf %412, %459 : vector<16x8xf32>
    %461 = tpu.concatenate %412, %452, %458, %460 in 1 : vector<16x8xf32>, vector<16x8xf32>, vector<16x8xf32>, vector<16x8xf32> -> vector<16x32xf32>
    %cst_204 = arith.constant dense<0.000000e+00> : vector<16x24xf32>
    %462 = tpu.matmul %461, %216, %cst_204 {dimension_numbers = #tpu.dot_dimension_numbers<[1], [0], [0], [1], [0, 0, 1, 1], [], []>} : vector<16x32xf32>, vector<32x24xf32>, vector<16x24xf32> -> vector<16x24xf32>
    %463 = arith.addf %442, %462 : vector<16x24xf32>
    %464 = vector.broadcast %215 : vector<1x24xf32> to vector<16x24xf32>
    %465 = arith.addf %463, %464 : vector<16x24xf32>
    %466 = vector.extract_strided_slice %465 {offsets = [0, 0], sizes = [16, 8], strides = [1, 1]} : vector<16x24xf32> to vector<16x8xf32>
    %c1_i32_205 = arith.constant 1 : i32
    %467 = tpu.dynamic_rotate %466 by %c1_i32_205 dim 0 : vector<16x8xf32>, i32 -> vector<16x8xf32>
    %c15_i32_206 = arith.constant 15 : i32
    %468 = tpu.dynamic_rotate %466 by %c15_i32_206 dim 0 : vector<16x8xf32>, i32 -> vector<16x8xf32>
    %469 = vector.broadcast %4 : vector<16x1xf32> to vector<16x8xf32>
    %470 = arith.mulf %467, %469 : vector<16x8xf32>
    %471 = arith.addf %470, %466 : vector<16x8xf32>
    %472 = vector.broadcast %8 : vector<16x1xf32> to vector<16x8xf32>
    %473 = arith.mulf %468, %472 : vector<16x8xf32>
    %474 = arith.addf %471, %473 : vector<16x8xf32>
    %cst_207 = arith.constant 0.333333343 : f32
    %475 = vector.broadcast %cst_207 : f32 to vector<16x8xf32>
    %476 = arith.mulf %474, %475 : vector<16x8xf32>
    %477 = vector.broadcast %12 : vector<16x1xf32> to vector<16x8xf32>
    %478 = arith.addf %467, %477 : vector<16x8xf32>
    %479 = arith.maximumf %478, %466 : vector<16x8xf32>
    %480 = vector.broadcast %16 : vector<16x1xf32> to vector<16x8xf32>
    %481 = arith.addf %468, %480 : vector<16x8xf32>
    %482 = arith.maximumf %479, %481 : vector<16x8xf32>
    %cst_208 = arith.constant 0.000000e+00 : f32
    %483 = vector.broadcast %cst_208 : f32 to vector<16x8xf32>
    %484 = arith.maximumf %466, %483 : vector<16x8xf32>
    %485 = tpu.concatenate %466, %476, %482, %484 in 1 : vector<16x8xf32>, vector<16x8xf32>, vector<16x8xf32>, vector<16x8xf32> -> vector<16x32xf32>
    %cst_209 = arith.constant dense<0.000000e+00> : vector<16x24xf32>
    %486 = tpu.matmul %485, %309, %cst_209 {dimension_numbers = #tpu.dot_dimension_numbers<[1], [0], [0], [1], [0, 0, 1, 1], [], []>} : vector<16x32xf32>, vector<32x24xf32>, vector<16x24xf32> -> vector<16x24xf32>
    %487 = arith.addf %465, %486 : vector<16x24xf32>
    %488 = vector.broadcast %308 : vector<1x24xf32> to vector<16x24xf32>
    %489 = arith.addf %487, %488 : vector<16x24xf32>
    %490 = vector.extract_strided_slice %489 {offsets = [0, 8], sizes = [16, 8], strides = [1, 1]} : vector<16x24xf32> to vector<16x8xf32>
    %c1_i32_210 = arith.constant 1 : i32
    %491 = tpu.dynamic_rotate %490 by %c1_i32_210 dim 0 : vector<16x8xf32>, i32 -> vector<16x8xf32>
    %c15_i32_211 = arith.constant 15 : i32
    %492 = tpu.dynamic_rotate %490 by %c15_i32_211 dim 0 : vector<16x8xf32>, i32 -> vector<16x8xf32>
    %493 = vector.broadcast %4 : vector<16x1xf32> to vector<16x8xf32>
    %494 = arith.mulf %491, %493 : vector<16x8xf32>
    %495 = arith.addf %494, %490 : vector<16x8xf32>
    %496 = vector.broadcast %8 : vector<16x1xf32> to vector<16x8xf32>
    %497 = arith.mulf %492, %496 : vector<16x8xf32>
    %498 = arith.addf %495, %497 : vector<16x8xf32>
    %cst_212 = arith.constant 0.333333343 : f32
    %499 = vector.broadcast %cst_212 : f32 to vector<16x8xf32>
    %500 = arith.mulf %498, %499 : vector<16x8xf32>
    %501 = vector.broadcast %12 : vector<16x1xf32> to vector<16x8xf32>
    %502 = arith.addf %491, %501 : vector<16x8xf32>
    %503 = arith.maximumf %502, %490 : vector<16x8xf32>
    %504 = vector.broadcast %16 : vector<16x1xf32> to vector<16x8xf32>
    %505 = arith.addf %492, %504 : vector<16x8xf32>
    %506 = arith.maximumf %503, %505 : vector<16x8xf32>
    %cst_213 = arith.constant 0.000000e+00 : f32
    %507 = vector.broadcast %cst_213 : f32 to vector<16x8xf32>
    %508 = arith.maximumf %490, %507 : vector<16x8xf32>
    %509 = tpu.concatenate %490, %500, %506, %508 in 1 : vector<16x8xf32>, vector<16x8xf32>, vector<16x8xf32>, vector<16x8xf32> -> vector<16x32xf32>
    %cst_214 = arith.constant dense<0.000000e+00> : vector<16x24xf32>
    %510 = tpu.matmul %509, %366, %cst_214 {dimension_numbers = #tpu.dot_dimension_numbers<[1], [0], [0], [1], [0, 0, 1, 1], [], []>} : vector<16x32xf32>, vector<32x24xf32>, vector<16x24xf32> -> vector<16x24xf32>
    %511 = arith.addf %489, %510 : vector<16x24xf32>
    %512 = vector.broadcast %365 : vector<1x24xf32> to vector<16x24xf32>
    %513 = arith.addf %511, %512 : vector<16x24xf32>
    %514 = arith.addf %513, %413 : vector<16x24xf32>
    %c0_215 = arith.constant 0 : index
    %c0_216 = arith.constant 0 : index
    %515 = vector.load %arg13[%c0_215, %c0_216] : memref<1x24xf32, #tpu.memory_space<vmem>>, vector<1x24xf32>
    %c0_217 = arith.constant 0 : index
    %c0_218 = arith.constant 0 : index
    %516 = vector.load %arg14[%c0_217, %c0_218] : memref<1x24xf32, #tpu.memory_space<vmem>>, vector<1x24xf32>
    %cst_219 = arith.constant dense<0.000000e+00> : vector<16xf32>
    %517 = vector.multi_reduction <add>, %514, %cst_219 [1] : vector<16x24xf32> to vector<16xf32>
    %518 = vector.shape_cast %517 : vector<16xf32> to vector<16x1xf32>
    %cst_220 = arith.constant 2.400000e+01 : f32
    %519 = vector.broadcast %cst_220 : f32 to vector<16x1xf32>
    %520 = arith.divf %518, %519 : vector<16x1xf32>
    %521 = arith.mulf %514, %514 : vector<16x24xf32>
    %cst_221 = arith.constant dense<0.000000e+00> : vector<16xf32>
    %522 = vector.multi_reduction <add>, %521, %cst_221 [1] : vector<16x24xf32> to vector<16xf32>
    %523 = vector.shape_cast %522 : vector<16xf32> to vector<16x1xf32>
    %cst_222 = arith.constant 2.400000e+01 : f32
    %524 = vector.broadcast %cst_222 : f32 to vector<16x1xf32>
    %525 = arith.divf %523, %524 : vector<16x1xf32>
    %526 = arith.mulf %520, %520 : vector<16x1xf32>
    %527 = arith.subf %525, %526 : vector<16x1xf32>
    %528 = vector.broadcast %520 : vector<16x1xf32> to vector<16x24xf32>
    %529 = arith.subf %514, %528 : vector<16x24xf32>
    %cst_223 = arith.constant 9.99999996E-13 : f32
    %530 = vector.broadcast %cst_223 : f32 to vector<16x1xf32>
    %531 = arith.addf %527, %530 : vector<16x1xf32>
    %532 = math.rsqrt %531 : vector<16x1xf32>
    %533 = vector.broadcast %532 : vector<16x1xf32> to vector<16x24xf32>
    %534 = arith.mulf %529, %533 : vector<16x24xf32>
    %535 = vector.broadcast %515 : vector<1x24xf32> to vector<16x24xf32>
    %536 = arith.mulf %534, %535 : vector<16x24xf32>
    %537 = vector.broadcast %516 : vector<1x24xf32> to vector<16x24xf32>
    %538 = arith.addf %536, %537 : vector<16x24xf32>
    %c0_224 = arith.constant 0 : index
    %c0_225 = arith.constant 0 : index
    %539 = vector.load %arg17[%c0_224, %c0_225] : memref<24x32xf32, #tpu.memory_space<vmem>>, vector<24x32xf32>
    %cst_226 = arith.constant dense<0.000000e+00> : vector<16x32xf32>
    %540 = tpu.matmul %538, %539, %cst_226 {dimension_numbers = #tpu.dot_dimension_numbers<[1], [0], [0], [1], [0, 0, 1, 1], [], []>} : vector<16x24xf32>, vector<24x32xf32>, vector<16x32xf32> -> vector<16x32xf32>
    %c0_227 = arith.constant 0 : index
    %c0_228 = arith.constant 0 : index
    %541 = vector.load %arg18[%c0_227, %c0_228] : memref<1x32xf32, #tpu.memory_space<vmem>>, vector<1x32xf32>
    %542 = vector.broadcast %541 : vector<1x32xf32> to vector<16x32xf32>
    %543 = arith.addf %540, %542 : vector<16x32xf32>
    %544 = vector.extract_strided_slice %543 {offsets = [0, 0], sizes = [16, 8], strides = [1, 1]} : vector<16x32xf32> to vector<16x8xf32>
    %545 = vector.extract_strided_slice %543 {offsets = [0, 8], sizes = [16, 24], strides = [1, 1]} : vector<16x32xf32> to vector<16x24xf32>
    %c0_229 = arith.constant 0 : index
    %c0_230 = arith.constant 0 : index
    %546 = vector.load %arg15[%c0_229, %c0_230] : memref<32x8xf32, #tpu.memory_space<vmem>>, vector<32x8xf32>
    %cst_231 = arith.constant dense<0.000000e+00> : vector<16x8xf32>
    %547 = tpu.matmul %406, %546, %cst_231 {dimension_numbers = #tpu.dot_dimension_numbers<[1], [0], [0], [1], [0, 0, 1, 1], [], []>} : vector<16x32xf32>, vector<32x8xf32>, vector<16x8xf32> -> vector<16x8xf32>
    %c0_232 = arith.constant 0 : index
    %c0_233 = arith.constant 0 : index
    %548 = vector.load %arg16[%c0_232, %c0_233] : memref<1x8xf32, #tpu.memory_space<vmem>>, vector<1x8xf32>
    %549 = vector.broadcast %548 : vector<1x8xf32> to vector<16x8xf32>
    %550 = arith.addf %547, %549 : vector<16x8xf32>
    %cst_234 = arith.constant 0.000000e+00 : f32
    %551 = vector.broadcast %cst_234 : f32 to vector<16x24xf32>
    %c1_i32_235 = arith.constant 1 : i32
    %552 = tpu.dynamic_rotate %550 by %c1_i32_235 dim 0 : vector<16x8xf32>, i32 -> vector<16x8xf32>
    %c15_i32_236 = arith.constant 15 : i32
    %553 = tpu.dynamic_rotate %550 by %c15_i32_236 dim 0 : vector<16x8xf32>, i32 -> vector<16x8xf32>
    %554 = vector.broadcast %4 : vector<16x1xf32> to vector<16x8xf32>
    %555 = arith.mulf %552, %554 : vector<16x8xf32>
    %556 = arith.addf %555, %550 : vector<16x8xf32>
    %557 = vector.broadcast %8 : vector<16x1xf32> to vector<16x8xf32>
    %558 = arith.mulf %553, %557 : vector<16x8xf32>
    %559 = arith.addf %556, %558 : vector<16x8xf32>
    %cst_237 = arith.constant 0.333333343 : f32
    %560 = vector.broadcast %cst_237 : f32 to vector<16x8xf32>
    %561 = arith.mulf %559, %560 : vector<16x8xf32>
    %562 = vector.broadcast %12 : vector<16x1xf32> to vector<16x8xf32>
    %563 = arith.addf %552, %562 : vector<16x8xf32>
    %564 = arith.maximumf %563, %550 : vector<16x8xf32>
    %565 = vector.broadcast %16 : vector<16x1xf32> to vector<16x8xf32>
    %566 = arith.addf %553, %565 : vector<16x8xf32>
    %567 = arith.maximumf %564, %566 : vector<16x8xf32>
    %cst_238 = arith.constant 0.000000e+00 : f32
    %568 = vector.broadcast %cst_238 : f32 to vector<16x8xf32>
    %569 = arith.maximumf %550, %568 : vector<16x8xf32>
    %570 = tpu.concatenate %550, %561, %567, %569 in 1 : vector<16x8xf32>, vector<16x8xf32>, vector<16x8xf32>, vector<16x8xf32> -> vector<16x32xf32>
    %cst_239 = arith.constant dense<0.000000e+00> : vector<16x24xf32>
    %571 = tpu.matmul %570, %134, %cst_239 {dimension_numbers = #tpu.dot_dimension_numbers<[1], [0], [0], [1], [0, 0, 1, 1], [], []>} : vector<16x32xf32>, vector<32x24xf32>, vector<16x24xf32> -> vector<16x24xf32>
    %572 = arith.addf %551, %571 : vector<16x24xf32>
    %573 = vector.broadcast %133 : vector<1x24xf32> to vector<16x24xf32>
    %574 = arith.addf %572, %573 : vector<16x24xf32>
    %c1_i32_240 = arith.constant 1 : i32
    %575 = tpu.dynamic_rotate %544 by %c1_i32_240 dim 0 : vector<16x8xf32>, i32 -> vector<16x8xf32>
    %c15_i32_241 = arith.constant 15 : i32
    %576 = tpu.dynamic_rotate %544 by %c15_i32_241 dim 0 : vector<16x8xf32>, i32 -> vector<16x8xf32>
    %577 = vector.broadcast %4 : vector<16x1xf32> to vector<16x8xf32>
    %578 = arith.mulf %575, %577 : vector<16x8xf32>
    %579 = arith.addf %578, %544 : vector<16x8xf32>
    %580 = vector.broadcast %8 : vector<16x1xf32> to vector<16x8xf32>
    %581 = arith.mulf %576, %580 : vector<16x8xf32>
    %582 = arith.addf %579, %581 : vector<16x8xf32>
    %cst_242 = arith.constant 0.333333343 : f32
    %583 = vector.broadcast %cst_242 : f32 to vector<16x8xf32>
    %584 = arith.mulf %582, %583 : vector<16x8xf32>
    %585 = vector.broadcast %12 : vector<16x1xf32> to vector<16x8xf32>
    %586 = arith.addf %575, %585 : vector<16x8xf32>
    %587 = arith.maximumf %586, %544 : vector<16x8xf32>
    %588 = vector.broadcast %16 : vector<16x1xf32> to vector<16x8xf32>
    %589 = arith.addf %576, %588 : vector<16x8xf32>
    %590 = arith.maximumf %587, %589 : vector<16x8xf32>
    %cst_243 = arith.constant 0.000000e+00 : f32
    %591 = vector.broadcast %cst_243 : f32 to vector<16x8xf32>
    %592 = arith.maximumf %544, %591 : vector<16x8xf32>
    %593 = tpu.concatenate %544, %584, %590, %592 in 1 : vector<16x8xf32>, vector<16x8xf32>, vector<16x8xf32>, vector<16x8xf32> -> vector<16x32xf32>
    %cst_244 = arith.constant dense<0.000000e+00> : vector<16x24xf32>
    %594 = tpu.matmul %593, %252, %cst_244 {dimension_numbers = #tpu.dot_dimension_numbers<[1], [0], [0], [1], [0, 0, 1, 1], [], []>} : vector<16x32xf32>, vector<32x24xf32>, vector<16x24xf32> -> vector<16x24xf32>
    %595 = arith.addf %574, %594 : vector<16x24xf32>
    %596 = vector.broadcast %251 : vector<1x24xf32> to vector<16x24xf32>
    %597 = arith.addf %595, %596 : vector<16x24xf32>
    %598 = vector.extract_strided_slice %597 {offsets = [0, 0], sizes = [16, 8], strides = [1, 1]} : vector<16x24xf32> to vector<16x8xf32>
    %c1_i32_245 = arith.constant 1 : i32
    %599 = tpu.dynamic_rotate %598 by %c1_i32_245 dim 0 : vector<16x8xf32>, i32 -> vector<16x8xf32>
    %c15_i32_246 = arith.constant 15 : i32
    %600 = tpu.dynamic_rotate %598 by %c15_i32_246 dim 0 : vector<16x8xf32>, i32 -> vector<16x8xf32>
    %601 = vector.broadcast %4 : vector<16x1xf32> to vector<16x8xf32>
    %602 = arith.mulf %599, %601 : vector<16x8xf32>
    %603 = arith.addf %602, %598 : vector<16x8xf32>
    %604 = vector.broadcast %8 : vector<16x1xf32> to vector<16x8xf32>
    %605 = arith.mulf %600, %604 : vector<16x8xf32>
    %606 = arith.addf %603, %605 : vector<16x8xf32>
    %cst_247 = arith.constant 0.333333343 : f32
    %607 = vector.broadcast %cst_247 : f32 to vector<16x8xf32>
    %608 = arith.mulf %606, %607 : vector<16x8xf32>
    %609 = vector.broadcast %12 : vector<16x1xf32> to vector<16x8xf32>
    %610 = arith.addf %599, %609 : vector<16x8xf32>
    %611 = arith.maximumf %610, %598 : vector<16x8xf32>
    %612 = vector.broadcast %16 : vector<16x1xf32> to vector<16x8xf32>
    %613 = arith.addf %600, %612 : vector<16x8xf32>
    %614 = arith.maximumf %611, %613 : vector<16x8xf32>
    %cst_248 = arith.constant 0.000000e+00 : f32
    %615 = vector.broadcast %cst_248 : f32 to vector<16x8xf32>
    %616 = arith.maximumf %598, %615 : vector<16x8xf32>
    %617 = tpu.concatenate %598, %608, %614, %616 in 1 : vector<16x8xf32>, vector<16x8xf32>, vector<16x8xf32>, vector<16x8xf32> -> vector<16x32xf32>
    %cst_249 = arith.constant dense<0.000000e+00> : vector<16x24xf32>
    %618 = tpu.matmul %617, %334, %cst_249 {dimension_numbers = #tpu.dot_dimension_numbers<[1], [0], [0], [1], [0, 0, 1, 1], [], []>} : vector<16x32xf32>, vector<32x24xf32>, vector<16x24xf32> -> vector<16x24xf32>
    %619 = arith.addf %597, %618 : vector<16x24xf32>
    %620 = vector.broadcast %333 : vector<1x24xf32> to vector<16x24xf32>
    %621 = arith.addf %619, %620 : vector<16x24xf32>
    %622 = vector.extract_strided_slice %621 {offsets = [0, 8], sizes = [16, 8], strides = [1, 1]} : vector<16x24xf32> to vector<16x8xf32>
    %c1_i32_250 = arith.constant 1 : i32
    %623 = tpu.dynamic_rotate %622 by %c1_i32_250 dim 0 : vector<16x8xf32>, i32 -> vector<16x8xf32>
    %c15_i32_251 = arith.constant 15 : i32
    %624 = tpu.dynamic_rotate %622 by %c15_i32_251 dim 0 : vector<16x8xf32>, i32 -> vector<16x8xf32>
    %625 = vector.broadcast %4 : vector<16x1xf32> to vector<16x8xf32>
    %626 = arith.mulf %623, %625 : vector<16x8xf32>
    %627 = arith.addf %626, %622 : vector<16x8xf32>
    %628 = vector.broadcast %8 : vector<16x1xf32> to vector<16x8xf32>
    %629 = arith.mulf %624, %628 : vector<16x8xf32>
    %630 = arith.addf %627, %629 : vector<16x8xf32>
    %cst_252 = arith.constant 0.333333343 : f32
    %631 = vector.broadcast %cst_252 : f32 to vector<16x8xf32>
    %632 = arith.mulf %630, %631 : vector<16x8xf32>
    %633 = vector.broadcast %12 : vector<16x1xf32> to vector<16x8xf32>
    %634 = arith.addf %623, %633 : vector<16x8xf32>
    %635 = arith.maximumf %634, %622 : vector<16x8xf32>
    %636 = vector.broadcast %16 : vector<16x1xf32> to vector<16x8xf32>
    %637 = arith.addf %624, %636 : vector<16x8xf32>
    %638 = arith.maximumf %635, %637 : vector<16x8xf32>
    %cst_253 = arith.constant 0.000000e+00 : f32
    %639 = vector.broadcast %cst_253 : f32 to vector<16x8xf32>
    %640 = arith.maximumf %622, %639 : vector<16x8xf32>
    %641 = tpu.concatenate %622, %632, %638, %640 in 1 : vector<16x8xf32>, vector<16x8xf32>, vector<16x8xf32>, vector<16x8xf32> -> vector<16x32xf32>
    %cst_254 = arith.constant dense<0.000000e+00> : vector<16x24xf32>
    %642 = tpu.matmul %641, %380, %cst_254 {dimension_numbers = #tpu.dot_dimension_numbers<[1], [0], [0], [1], [0, 0, 1, 1], [], []>} : vector<16x32xf32>, vector<32x24xf32>, vector<16x24xf32> -> vector<16x24xf32>
    %643 = arith.addf %621, %642 : vector<16x24xf32>
    %644 = vector.broadcast %379 : vector<1x24xf32> to vector<16x24xf32>
    %645 = arith.addf %643, %644 : vector<16x24xf32>
    %646 = arith.addf %645, %545 : vector<16x24xf32>
    %c0_255 = arith.constant 0 : index
    %c0_256 = arith.constant 0 : index
    %647 = vector.load %arg21[%c0_255, %c0_256] : memref<1x24xf32, #tpu.memory_space<vmem>>, vector<1x24xf32>
    %c0_257 = arith.constant 0 : index
    %c0_258 = arith.constant 0 : index
    %648 = vector.load %arg22[%c0_257, %c0_258] : memref<1x24xf32, #tpu.memory_space<vmem>>, vector<1x24xf32>
    %cst_259 = arith.constant dense<0.000000e+00> : vector<16xf32>
    %649 = vector.multi_reduction <add>, %646, %cst_259 [1] : vector<16x24xf32> to vector<16xf32>
    %650 = vector.shape_cast %649 : vector<16xf32> to vector<16x1xf32>
    %cst_260 = arith.constant 2.400000e+01 : f32
    %651 = vector.broadcast %cst_260 : f32 to vector<16x1xf32>
    %652 = arith.divf %650, %651 : vector<16x1xf32>
    %653 = arith.mulf %646, %646 : vector<16x24xf32>
    %cst_261 = arith.constant dense<0.000000e+00> : vector<16xf32>
    %654 = vector.multi_reduction <add>, %653, %cst_261 [1] : vector<16x24xf32> to vector<16xf32>
    %655 = vector.shape_cast %654 : vector<16xf32> to vector<16x1xf32>
    %cst_262 = arith.constant 2.400000e+01 : f32
    %656 = vector.broadcast %cst_262 : f32 to vector<16x1xf32>
    %657 = arith.divf %655, %656 : vector<16x1xf32>
    %658 = arith.mulf %652, %652 : vector<16x1xf32>
    %659 = arith.subf %657, %658 : vector<16x1xf32>
    %660 = vector.broadcast %652 : vector<16x1xf32> to vector<16x24xf32>
    %661 = arith.subf %646, %660 : vector<16x24xf32>
    %cst_263 = arith.constant 9.99999996E-13 : f32
    %662 = vector.broadcast %cst_263 : f32 to vector<16x1xf32>
    %663 = arith.addf %659, %662 : vector<16x1xf32>
    %664 = math.rsqrt %663 : vector<16x1xf32>
    %665 = vector.broadcast %664 : vector<16x1xf32> to vector<16x24xf32>
    %666 = arith.mulf %661, %665 : vector<16x24xf32>
    %667 = vector.broadcast %647 : vector<1x24xf32> to vector<16x24xf32>
    %668 = arith.mulf %666, %667 : vector<16x24xf32>
    %669 = vector.broadcast %648 : vector<1x24xf32> to vector<16x24xf32>
    %670 = arith.addf %668, %669 : vector<16x24xf32>
    %c0_264 = arith.constant 0 : index
    %c0_265 = arith.constant 0 : index
    %c0_266 = arith.constant 0 : index
    %671 = vector.load %arg3[%c0_264, %c0_265, %c0_266] : memref<1x16x1xf32, #tpu.memory_space<vmem>>, vector<1x16x1xf32>
    %672 = vector.shape_cast %671 : vector<1x16x1xf32> to vector<16x1xf32>
    %673 = vector.broadcast %672 : vector<16x1xf32> to vector<16x24xf32>
    %674 = arith.mulf %670, %673 : vector<16x24xf32>
    %cst_267 = arith.constant 1.000000e+00 : f32
    %675 = vector.broadcast %cst_267 : f32 to vector<16x1xf32>
    %676 = arith.subf %675, %672 : vector<16x1xf32>
    %cst_268 = arith.constant -1.000000e+07 : f32
    %677 = vector.broadcast %cst_268 : f32 to vector<16x1xf32>
    %678 = arith.mulf %677, %676 : vector<16x1xf32>
    %679 = vector.broadcast %678 : vector<16x1xf32> to vector<16x24xf32>
    %680 = arith.addf %674, %679 : vector<16x24xf32>
    %cst_269 = arith.constant dense<0xFF800000> : vector<24xf32>
    %681 = vector.multi_reduction <maximumf>, %680, %cst_269 [0] : vector<16x24xf32> to vector<24xf32>
    %682 = vector.shape_cast %681 : vector<24xf32> to vector<1x24xf32>
    %683 = vector.broadcast %672 : vector<16x1xf32> to vector<16x24xf32>
    %684 = arith.mulf %670, %683 : vector<16x24xf32>
    %cst_270 = arith.constant dense<0.000000e+00> : vector<24xf32>
    %685 = vector.multi_reduction <add>, %684, %cst_270 [0] : vector<16x24xf32> to vector<24xf32>
    %686 = vector.shape_cast %685 : vector<24xf32> to vector<1x24xf32>
    %cst_271 = arith.constant dense<0.000000e+00> : vector<1xf32>
    %687 = vector.multi_reduction <add>, %672, %cst_271 [0] : vector<16x1xf32> to vector<1xf32>
    %688 = vector.shape_cast %687 : vector<1xf32> to vector<1x1xf32>
    %689 = vector.broadcast %688 : vector<1x1xf32> to vector<1x24xf32>
    %690 = arith.divf %686, %689 : vector<1x24xf32>
    %691 = tpu.concatenate %682, %690 in 1 : vector<1x24xf32>, vector<1x24xf32> -> vector<1x48xf32>
    %c0_272 = arith.constant 0 : index
    %c0_273 = arith.constant 0 : index
    %692 = vector.load %arg23[%c0_272, %c0_273] : memref<48x3xf32, #tpu.memory_space<vmem>>, vector<48x3xf32>
    %cst_274 = arith.constant dense<0.000000e+00> : vector<1x3xf32>
    %693 = tpu.matmul %691, %692, %cst_274 {dimension_numbers = #tpu.dot_dimension_numbers<[1], [0], [0], [1], [0, 0, 1, 1], [], []>} : vector<1x48xf32>, vector<48x3xf32>, vector<1x3xf32> -> vector<1x3xf32>
    %c0_275 = arith.constant 0 : index
    %c0_276 = arith.constant 0 : index
    %694 = vector.load %arg24[%c0_275, %c0_276] : memref<1x3xf32, #tpu.memory_space<vmem>>, vector<1x3xf32>
    %695 = arith.addf %693, %694 : vector<1x3xf32>
    %c0_277 = arith.constant 0 : index
    %c0_278 = arith.constant 0 : index
    %c0_279 = arith.constant 0 : index
    %696 = vector.load %arg25[%c0_277, %c0_278, %c0_279] : memref<1x1x3xf32, #tpu.memory_space<vmem>>, vector<1x1x3xf32>
    %697 = vector.shape_cast %696 : vector<1x1x3xf32> to vector<1x3xf32>
    %698 = vector.shape_cast %695 : vector<1x3xf32> to vector<1x1x3xf32>
    tpu.vector_store %arg25[%c0_277, %c0_278, %c0_279], %698 {strides = array<i32>} : memref<1x1x3xf32, #tpu.memory_space<vmem>>, vector<1x1x3xf32>,
    return
  }
  func.func @transform_0(%arg0: i32, %arg1: memref<45xf32, #tpu.memory_space<smem>>) -> (i32, i32, i32) {
    %c0_i32 = arith.constant 0 : i32
    %c0_i32_0 = arith.constant 0 : i32
    %c0_i32_1 = arith.constant 0 : i32
    return %arg0, %c0_i32, %c0_i32_0 : i32, i32, i32
  }
  func.func @transform_1(%arg0: i32, %arg1: memref<45xf32, #tpu.memory_space<smem>>) -> (i32, i32, i32) {
    %c0_i32 = arith.constant 0 : i32
    %c0_i32_0 = arith.constant 0 : i32
    %c0_i32_1 = arith.constant 0 : i32
    return %arg0, %c0_i32, %c0_i32_0 : i32, i32, i32
  }
  func.func @transform_2(%arg0: i32, %arg1: memref<45xf32, #tpu.memory_space<smem>>) -> (i32, i32, i32) {
    %c0_i32 = arith.constant 0 : i32
    %c0_i32_0 = arith.constant 0 : i32
    %c0_i32_1 = arith.constant 0 : i32
    %c0_i32_2 = arith.constant 0 : i32
    return %c0_i32, %c0_i32_0, %c0_i32_1 : i32, i32, i32
  }
  func.func @transform_3(%arg0: i32, %arg1: memref<45xf32, #tpu.memory_space<smem>>) -> (i32, i32) {
    %c0_i32 = arith.constant 0 : i32
    %c0_i32_0 = arith.constant 0 : i32
    %c0_i32_1 = arith.constant 0 : i32
    return %c0_i32, %c0_i32_0 : i32, i32
  }
  func.func @transform_4(%arg0: i32, %arg1: memref<45xf32, #tpu.memory_space<smem>>) -> (i32, i32) {
    %c0_i32 = arith.constant 0 : i32
    %c0_i32_0 = arith.constant 0 : i32
    %c0_i32_1 = arith.constant 0 : i32
    return %c0_i32, %c0_i32_0 : i32, i32
  }
  func.func @transform_5(%arg0: i32, %arg1: memref<45xf32, #tpu.memory_space<smem>>) -> (i32, i32) {
    %c0_i32 = arith.constant 0 : i32
    %c0_i32_0 = arith.constant 0 : i32
    %c0_i32_1 = arith.constant 0 : i32
    return %c0_i32, %c0_i32_0 : i32, i32
  }
  func.func @transform_6(%arg0: i32, %arg1: memref<45xf32, #tpu.memory_space<smem>>) -> (i32, i32) {
    %c0_i32 = arith.constant 0 : i32
    %c0_i32_0 = arith.constant 0 : i32
    %c0_i32_1 = arith.constant 0 : i32
    return %c0_i32, %c0_i32_0 : i32, i32
  }
  func.func @transform_7(%arg0: i32, %arg1: memref<45xf32, #tpu.memory_space<smem>>) -> (i32, i32) {
    %c0_i32 = arith.constant 0 : i32
    %c0_i32_0 = arith.constant 0 : i32
    %c0_i32_1 = arith.constant 0 : i32
    return %c0_i32, %c0_i32_0 : i32, i32
  }
  func.func @transform_8(%arg0: i32, %arg1: memref<45xf32, #tpu.memory_space<smem>>) -> (i32, i32) {
    %c0_i32 = arith.constant 0 : i32
    %c0_i32_0 = arith.constant 0 : i32
    %c0_i32_1 = arith.constant 0 : i32
    return %c0_i32, %c0_i32_0 : i32, i32
  }
  func.func @transform_9(%arg0: i32, %arg1: memref<45xf32, #tpu.memory_space<smem>>) -> (i32, i32, i32) {
    %c0_i32 = arith.constant 0 : i32
    %c0_i32_0 = arith.constant 0 : i32
    %c0_i32_1 = arith.constant 0 : i32
    %c0_i32_2 = arith.constant 0 : i32
    return %c0_i32, %c0_i32_0, %c0_i32_1 : i32, i32, i32
  }
  func.func @transform_10(%arg0: i32, %arg1: memref<45xf32, #tpu.memory_space<smem>>) -> (i32, i32, i32) {
    %c0_i32 = arith.constant 0 : i32
    %c0_i32_0 = arith.constant 0 : i32
    %c0_i32_1 = arith.constant 0 : i32
    %c0_i32_2 = arith.constant 0 : i32
    return %c0_i32, %c0_i32_0, %c0_i32_1 : i32, i32, i32
  }
  func.func @transform_11(%arg0: i32, %arg1: memref<45xf32, #tpu.memory_space<smem>>) -> (i32, i32) {
    %c0_i32 = arith.constant 0 : i32
    %c0_i32_0 = arith.constant 0 : i32
    %c0_i32_1 = arith.constant 0 : i32
    return %c0_i32, %c0_i32_0 : i32, i32
  }
  func.func @transform_12(%arg0: i32, %arg1: memref<45xf32, #tpu.memory_space<smem>>) -> (i32, i32) {
    %c0_i32 = arith.constant 0 : i32
    %c0_i32_0 = arith.constant 0 : i32
    %c0_i32_1 = arith.constant 0 : i32
    return %c0_i32, %c0_i32_0 : i32, i32
  }
  func.func @transform_13(%arg0: i32, %arg1: memref<45xf32, #tpu.memory_space<smem>>) -> (i32, i32) {
    %c0_i32 = arith.constant 0 : i32
    %c0_i32_0 = arith.constant 0 : i32
    %c0_i32_1 = arith.constant 0 : i32
    return %c0_i32, %c0_i32_0 : i32, i32
  }
  func.func @transform_14(%arg0: i32, %arg1: memref<45xf32, #tpu.memory_space<smem>>) -> (i32, i32) {
    %c0_i32 = arith.constant 0 : i32
    %c0_i32_0 = arith.constant 0 : i32
    %c0_i32_1 = arith.constant 0 : i32
    return %c0_i32, %c0_i32_0 : i32, i32
  }
  func.func @transform_15(%arg0: i32, %arg1: memref<45xf32, #tpu.memory_space<smem>>) -> (i32, i32) {
    %c0_i32 = arith.constant 0 : i32
    %c0_i32_0 = arith.constant 0 : i32
    %c0_i32_1 = arith.constant 0 : i32
    return %c0_i32, %c0_i32_0 : i32, i32
  }
  func.func @transform_16(%arg0: i32, %arg1: memref<45xf32, #tpu.memory_space<smem>>) -> (i32, i32) {
    %c0_i32 = arith.constant 0 : i32
    %c0_i32_0 = arith.constant 0 : i32
    %c0_i32_1 = arith.constant 0 : i32
    return %c0_i32, %c0_i32_0 : i32, i32
  }
  func.func @transform_17(%arg0: i32, %arg1: memref<45xf32, #tpu.memory_space<smem>>) -> (i32, i32, i32) {
    %c0_i32 = arith.constant 0 : i32
    %c0_i32_0 = arith.constant 0 : i32
    %c0_i32_1 = arith.constant 0 : i32
    %c0_i32_2 = arith.constant 0 : i32
    return %c0_i32, %c0_i32_0, %c0_i32_1 : i32, i32, i32
  }
  func.func @transform_18(%arg0: i32, %arg1: memref<45xf32, #tpu.memory_space<smem>>) -> (i32, i32, i32) {
    %c0_i32 = arith.constant 0 : i32
    %c0_i32_0 = arith.constant 0 : i32
    %c0_i32_1 = arith.constant 0 : i32
    %c0_i32_2 = arith.constant 0 : i32
    return %c0_i32, %c0_i32_0, %c0_i32_1 : i32, i32, i32
  }
  func.func @transform_19(%arg0: i32, %arg1: memref<45xf32, #tpu.memory_space<smem>>) -> (i32, i32) {
    %c0_i32 = arith.constant 0 : i32
    %c0_i32_0 = arith.constant 0 : i32
    %c0_i32_1 = arith.constant 0 : i32
    return %c0_i32, %c0_i32_0 : i32, i32
  }
  func.func @transform_20(%arg0: i32, %arg1: memref<45xf32, #tpu.memory_space<smem>>) -> (i32, i32) {
    %c0_i32 = arith.constant 0 : i32
    %c0_i32_0 = arith.constant 0 : i32
    %c0_i32_1 = arith.constant 0 : i32
    return %c0_i32, %c0_i32_0 : i32, i32
  }
  func.func @transform_21(%arg0: i32, %arg1: memref<45xf32, #tpu.memory_space<smem>>) -> (i32, i32) {
    %c0_i32 = arith.constant 0 : i32
    %c0_i32_0 = arith.constant 0 : i32
    %c0_i32_1 = arith.constant 0 : i32
    return %c0_i32, %c0_i32_0 : i32, i32
  }
  func.func @transform_22(%arg0: i32, %arg1: memref<45xf32, #tpu.memory_space<smem>>) -> (i32, i32) {
    %c0_i32 = arith.constant 0 : i32
    %c0_i32_0 = arith.constant 0 : i32
    %c0_i32_1 = arith.constant 0 : i32
    return %c0_i32, %c0_i32_0 : i32, i32
  }
  func.func @transform_23(%arg0: i32, %arg1: memref<45xf32, #tpu.memory_space<smem>>) -> (i32, i32, i32) {
    %c0_i32 = arith.constant 0 : i32
    %c0_i32_0 = arith.constant 0 : i32
    %c0_i32_1 = arith.constant 0 : i32
    return %arg0, %c0_i32, %c0_i32_0 : i32, i32, i32
  }
}

</mosaic_0001>

<bundles_post_ra>
// kernel: controller_forward.1
= control target key start
LH: loop header
LB: loop body
LE: loop exit
PB: predicated region body
PF: predicated region fallthrough
CT: control target
= control target key end

     0   :  { %s4649_s0 = inlined_call_operand.vmem [shape: f32[45], index: 0, kind: input, shape index: {}]   ;;  %s4650_s1 = inlined_call_operand.vmem [shape: f32[2,16,32], index: 1, kind: input, shape index: {}]   ;;  %s4651_s2 = inlined_call_operand.vmem [shape: f32[2,16,1], index: 2, kind: input, shape index: {}]   ;;  %s4652_s3 = inlined_call_operand.vmem [shape: f32[3,8,24], index: 3, kind: input, shape index: {}]   ;;  %s4653_s4 = inlined_call_operand.vmem [shape: f32[1,32], index: 4, kind: input, shape index: {}]   ;;  %s4654_s5 = inlined_call_operand.vmem [shape: f32[1,32], index: 5, kind: input, shape index: {}]   ;;  %s4655_s6 = inlined_call_operand.vmem [shape: f32[32,8], index: 6, kind: input, shape index: {}]   ;;  %s4656_s7 = inlined_call_operand.vmem [shape: f32[1,8], index: 7, kind: input, shape index: {}]   ;;  %s4657_s8 = inlined_call_operand.vmem [shape: f32[32,32], index: 8, kind: input, shape index: {}]   ;;  %s4658_s9 = inlined_call_operand.vmem [shape: f32[1,32], index: 9, kind: input, shape index: {}]   ;;  %s4659_s10 = inlined_call_operand.vmem [shape: f32[9,8,24], index: 10, kind: input, shape index: {}]   ;;  %s4660_s11 = inlined_call_operand.vmem [shape: f32[9,1,24], index: 11, kind: input, shape index: {}]   ;;  %s4661_s12 = inlined_call_operand.vmem [shape: f32[1,24], index: 12, kind: input, shape index: {}]   ;;  %s4662_s13 = inlined_call_operand.vmem [shape: f32[1,24], index: 13, kind: input, shape index: {}]   ;;  %s4663_s14 = inlined_call_operand.vmem [shape: f32[32,8], index: 14, kind: input, shape index: {}]   ;;  %s4664_s15 = inlined_call_operand.vmem [shape: f32[1,8], index: 15, kind: input, shape index: {}]   ;;  %s4665_s16 = inlined_call_operand.vmem [shape: f32[24,32], index: 16, kind: input, shape index: {}]   ;;  %s4666_s17 = inlined_call_operand.vmem [shape: f32[1,32], index: 17, kind: input, shape index: {}]   ;;  %s4667_s18 = inlined_call_operand.vmem [shape: f32[9,8,24], index: 18, kind: input, shape index: {}]   ;;  %s4668_s19 = inlined_call_operand.vmem [shape: f32[9,1,24], index: 19, kind: input, shape index: {}]   ;;  %s4669_s20 = inlined_call_operand.vmem [shape: f32[1,24], index: 20, kind: input, shape index: {}]   ;;  %s4670_s21 = inlined_call_operand.vmem [shape: f32[1,24], index: 21, kind: input, shape index: {}]   ;;  %s4671_s22 = inlined_call_operand.vmem [shape: f32[48,3], index: 22, kind: input, shape index: {}]   ;;  %s4672_s23 = inlined_call_operand.vmem [shape: f32[1,3], index: 23, kind: input, shape index: {}]   ;;  %s4673_s24 = inlined_call_operand.hbm [shape: f32[2,1,3], index: 24, kind: output, shape index: {}]  }
   0x1   :  { %4696 = sst [smem:[#allocation16_spill]] %s4649_s0 }
   0x2   :  { %4697 = sst [smem:[#allocation17_spill]] %s4650_s1  ;;  %s4709_s27 = sld [smem:[#allocation16_spill]] }
   0x3   :  { %4698 = sst [smem:[#allocation18_spill]] %s4651_s2 }
   0x4   :  { %4699 = sst [smem:[#allocation19_spill]] %s4652_s3 }
   0x5   :  { %4700 = sst [smem:[#allocation20_spill]] %s4653_s4 }
   0x6   :  { %4701 = sst [smem:[#allocation21_spill]] %s4654_s5 }
   0x7   :  { %4702 = sst [smem:[#allocation22_spill]] %s4655_s6 }
   0x8   :  { %4703 = sst [smem:[#allocation23_spill]] %s4656_s7 }
   0x9   :  { %4704 = sst [smem:[#allocation24_spill]] %s4657_s8 }
   0xa   :  { %4705 = sst [smem:[#allocation25_spill]] %s4658_s9 }
   0xb   :  { %4706 = sst [smem:[#allocation26_spill]] %s4667_s18  ;;  %s29_s18 = sshll.u32 %s4709_s27, 4  ;;  %s30_s18 = int_to_ptr.vmem [resolvable:$true] %s29_s18 }
   0xc   :  { %4707 = sst [smem:[#allocation27_spill]] %s4672_s23  ;;  %s3507_s28 = scalar_lea.vmem %s30_s18, 16 }
   0xd   :  { %4708 = sst [smem:[#allocation28_spill]] %s4673_s24  ;;  %p3508_p0 = scmp.ne.s32.totalorder %s30_s18, %s3507_s28 }
   0xe   :  { %p3512_p1 = scmp.lt.s32.totalorder %s30_s18, %s30_s18  ;;  %p3513_p2 = scmp.lt.s32.totalorder %s3507_s28, %s3507_s28 }
  0x10   :  { %p3514_p3 = por %p3513_p2, %p3512_p1 }
  0x12   :  { %p3515_p4 = pnand %p3514_p3, %p3508_p0 }
  0x14   :  { %3518 = shalt.err (!%p3515_p4)  }
  0x15   :  { %s3585_s6 = smov [#allocation3]  }
  0x16   :  { %32 = dma.vmem_to_smem %s30_s18, 16, %s3585_s6, [#allocation2] }
  0x17   :  { %3563 = dma.done.wait [#allocation2], 16 }
  0x18   :  { %3564 = vsyncadd [#allocation2], 4294967280 }
  0x19   :  { %34 = sfence }
  0x1a   :  { %35 = vsyncpa [#allocation5], 0 }
  0x1b   :  { %37 = vsyncpa [#allocation5 + $0x1], 0  ;;  %s3723_s2 = smov 0   ;;  %s3725_s29 = smov 0  }
  0x1c   :  { %s3727_s0 = smov 0   ;;  %s3729_s7 = smov 0  }
  0x1d LB: > { %4710 = sst [smem:[#allocation8_spill]] %s3571_s2  ;;  %s3744_s18 = sadd.s32 4294967295, %s3583_s7   ;;  %s3583_s7 = sphi %s3729_s7, %s4742_s7   ;;  %s3579_s0 = sphi %s3727_s0, %s4744_s0   ;;  %s3575_s29 = sphi %s3725_s29, %s4746_s29   ;;  %s3571_s2 = sphi %s3723_s2, %s4745_s2  }
  0x1e   : > { %4711 = sst [smem:[#allocation9_spill]] %s3579_s0  ;;  %s2991_s30 = sadd.s32 4294967294, %s3583_s7  }
  0x1f   : > { %4712 = sst [smem:[#allocation10_spill]] %s3583_s7  ;;  %s3748_s3 = sadd.s32 1, %s3583_s7  }
  0x20   : > { %4713 = sst [smem:[#allocation11_spill]] %s3744_s18  ;;  %s543_s25 = sadd.s32 1, %s3579_s0 }
  0x21   : > { %4714 = sst [smem:[#allocation12_spill]] %s3748_s3  ;;  %s540_s8 = ssub.s32 %s3583_s7, %s3748_s3 }
  0x22   : > { %p553_p5 = scmp.ne.s32.totalorder %s3579_s0, %s3575_s29  ;;  %p541_p6 = scmp.eq.s32.totalorder %s540_s8, 0 }
  0x23   : > { %p554_p7 = scmp.eq.s32.totalorder %s3744_s18, 1  ;;  %p559_p8 = scmp.ne.s32.totalorder %s3575_s29, %s3571_s2 }
  0x24   : > { %p560_p9 = scmp.eq.s32.totalorder %s2991_s30, 1  ;;  %p2994_p12 = scmp.ge.s32.totalorder %s3583_s7, 1 }
  0x25   : > { %s3759_s4 = scalar_select %p541_p6, %s3579_s0, %s543_s25  }
  0x26   : > { %p3761_p10 = por %p554_p7, %p553_p5  ;;  %p3765_p11 = por %p560_p9, %p559_p8 }
  0x27   : > { %4715 = sst [smem:[#allocation13_spill]] %s3759_s4  ;;  %p657_p13 = scmp.lt.s32.totalorder %s3583_s7, 3 }
  0x28   : > { %s4716_s1 = scalar_select %p3761_p10, 1, 0 }
  0x29   : > { %s4718_s5 = scalar_select %p3765_p11, 1, 0 }
  0x2a   : > { %4717 = sst [smem:[#allocation14_spill]] %s4716_s1  ;;  %p658_p0 = pnand %p2994_p12, %p657_p13 }
  0x2b   : > { %4719 = sst [smem:[#allocation15_spill]] %s4718_s5  ;;  %p725_p1 = scmp.lt.s32.totalorder (!%p658_p0), %s3744_s18, 1  ;;  %vm1033_vm0 = vcmask (!%p658_p0), 261120   ;;  %v735_v46 = vlaneseq (!%p658_p0)  ;;  %v3586_v49 = vmov (!%p658_p0), 0.0   ;;  %vm1313_vm5 = vcmask (!%p658_p0), 64512  }
  0x2c   : > { %661 = sbr.rel (%p658_p0) target bundleno = 3735 (0xe97), region = 112  ;;  %s4720_s30 = sld [smem:[#allocation17_spill]] (!%p658_p0)  ;;  %vm1316_vm6 = vcmask (!%p658_p0), 130048   ;;  %vm1319_vm7 = vcmask (!%p658_p0), 195584   ;;  %vm2806_vm8 = vcmask (!%p658_p0), 7168   ;;  %vm3593_vm9 = vmmov (!%p658_p0), 0  }
  0x2d   : > { %s4721_s28 = sld [smem:[#allocation24_spill]] (!%p658_p0)  ;;  %s4722_s0 = sld [smem:[#allocation22_spill]] (!%p658_p0)  ;;  %v3827_v47 = vshrl.u32 (!%p658_p0), %v735_v46, 7  ;;  %vm2835_vm10 = vcmask (!%p658_p0), 392192   ;;  %vm2909_vm11 = vcmask (!%p658_p0), 16384  }
  0x2e   : > { %s4724_s7 = sld [smem:[#allocation20_spill]] (!%p658_p0)  ;;  %s3002_s4 = sld [smem:[#allocation3 + $0x2]] (!%p658_p0) }
  0x2f   : > { %v737_v48 = vadd.s32 (!%p658_p0), 8, %v3827_v47  ;;  %vm738_vm2 = vcmp.ne.s32.totalorder (!%p658_p0), %v3827_v47, 0  ;;  %s3009_s2 = sld [smem:[#allocation3 + $0x1a]] (!%p658_p0)  ;;  %s3838_s5 = sld [smem:[#allocation3 + $0x1b]] (!%p658_p0)  ;;  %vm1261_vm3 = vcmp.lt.s32.totalorder (!%p658_p0), %v3827_v47, 1  ;;  %vm1266_vm4 = vcmp.lt.s32.totalorder (!%p658_p0), %v3827_v47, 7 }
  0x30   : > { %v3835_v51 = vsel (!%p658_p0), %vm738_vm2, 1.0, %v3586_v49  ;;  %s4726_s9 = sld [smem:[#allocation25_spill]] (!%p658_p0)  ;;  %s4727_s6 = sld [smem:[#allocation19_spill]] (!%p658_p0) }
  0x31   : > { %vm745_vm1 = vcmp.ne.s32.totalorder (!%p658_p0), %v737_v48, 15  ;;  %v750_v53 = vsub.f32 (!%p658_p0), 1.0, %v3835_v51  ;;  %s3909_s1 = sld [smem:[#allocation3 + $0xd]] (!%p658_p0)  ;;  %s3949_s8 = sld [smem:[#allocation3 + $0x11]] (!%p658_p0) }
  0x32   : > { %v3832_v50 = vsel (!%p658_p0), %vm745_vm1, 1.0, %v3586_v49  ;;  %s3953_s23 = sld [smem:[#allocation3 + $0x20]] (!%p658_p0)  ;;  %s3048_s24 = sld [smem:[#allocation3 + $0x16]] (!%p658_p0) }
  0x33   : > { %s3773_s26 = scalar_select %p725_p1, %s3744_s18, 1  ;;  %v1081_v8 = vld [vmem:[%s4721_s28] sm:$0xff]  ;;  %v1082_v9 = vld [vmem:[%s4721_s28 + $0x8] sm:$0xff]  ;;  %v1083_v13 = vld [vmem:[%s4721_s28 + $0x10] sm:$0xff]  ;;  %v755_v52 = vsub.f32 1.0, %v3832_v50 }
  0x34   : > { %s4723_s3 = smov %s4722_s0  ;;  %v1173_v10 = vld [vmem:[%s4722_s0] sm:$0xff]  ;;  %v3334_v11 = vpack.c.bf16 %v1082_v9, %v1081_v8  ;;  %v1084_v14 = vld [vmem:[%s4721_s28 + $0x18] sm:$0xff]  ;;  %s3005_s0 = sld [smem:[#allocation3 + $0xb]]  ;;  %v764_v59 = vstv %s3002_s4 }
  0x35   : > { %s4678_s27 = sshll.u32 %s3773_s26, 4  ;;  %v1174_v12 = vld [vmem:[%s4723_s3 + $0x8] sm:$0xff]  ;;  %v3338_v16 = vpack.c.bf16 %v1084_v14, %v1083_v13  ;;  %v1175_v17 = vld [vmem:[%s4723_s3 + $0x10] sm:$0xff]  ;;  %v1176_v18 = vld [vmem:[%s4723_s3 + $0x18] sm:$0xff]  ;;  %s4728_s28 = sld [smem:[#allocation23_spill]] }
  0x36   : > { %s729_s25 = scalar_lea.vmem %s4720_s30, %s4678_s27  ;;  %v3342_v15 = vpack.c.bf16 %v1174_v12, %v1173_v10  ;;  %3335 = vmatprep.subr.bf16.mxu0 %v3334_v11  ;;  %v3346_v19 = vpack.c.bf16 %v1176_v18, %v1175_v17  ;;  %v3071_v36 = vld [vmem:[%s4724_s7] ss:$0 sm:$0xff]  ;;  %s4725_s30 = sld [smem:[#allocation21_spill]]  ;;  %v3852_v57 = vmul.f32 -1e+30, %v755_v52  ;;  %v3857_v60 = vld [vmem:[%s4727_s6 + $0x8] sm:$0xff] }
  0x37   : > { %v1029_v0 = vld [vmem:[%s729_s25] sm:$0xff]  ;;  %v1030_v1 = vld [vmem:[%s729_s25 + $0x8] sm:$0xff]  ;;  %3337 = vmatpush3.bf16.msra.mxu0 %v3334_v11  ;;  %s3001_s25 = sld [smem:[#allocation3 + $0x1]]  ;;  %s3006_s27 = sld [smem:[#allocation3 + $0xc]]  ;;  %v3864_v63 = vld [vmem:[%s4727_s6 + $0x10] sm:$0xff] }
  0x38   : > { %v1034_v2 = vsel %vm1033_vm0, %v1029_v0, 0.0  ;;  %v1043_v3 = vmul.f32 %v1029_v0, %v1029_v0  ;;  %v1044_v4 = vmul.f32 %v1030_v1, %v1030_v1  ;;  %v1037_v6 = vsel %vm1033_vm0, %v1030_v1, 0.0  ;;  %3343 = vmatprep.subr.bf16.mxu1 %v3342_v15  ;;  %3339 = vmatprep.subr.bf16.mxu0 %v3338_v16  ;;  %v3073_v54 = vld [vmem:[%s4726_s9] ss:$0 sm:$0xff]  ;;  %s4691_s18 = smov 24   ;;  %s3907_s3 = sld [smem:[#allocation3 + $0x3]] }
  0x39   : > { %1035 = vadd.xlane.f32.xlu0 %v1034_v2  ;;  %3345 = vmatpush3.bf16.msra.mxu1 %v3342_v15  ;;  %v3847_v55 = vld [vmem:[%s4727_s6] sm:$0xff]  ;;  %v3866_v2 = vmul.f32 -1e+30, %v750_v53  ;;  %v792_v15 = vstv %s3838_s5  ;;  %s3924_s4 = sld [smem:[#allocation3 + $0xe]]  ;;  %s3942_s5 = sld [smem:[#allocation3 + $0x7]] }
  0x3a   : > { %v1045_v5 = vsel %vm1033_vm0, %v1043_v3, 0.0  ;;  %v1048_v7 = vsel %vm1033_vm0, %v1044_v4, 0.0  ;;  %3347 = vmatprep.subr.bf16.mxu1 %v3346_v19  ;;  %v774_v61 = vstv %s3005_s0  ;;  %v765_v4 = vmul.f32 %v764_v59, %v3847_v55  ;;  %s3926_s0 = sld [smem:[#allocation3 + $0x1d]]  ;;  %s3944_s7 = sld [smem:[#allocation3 + $0x10]] }
  0x3b   : > { %1046 = vadd.xlane.f32.xlu1 %v1045_v5  ;;  %3341 = vmatpush3.bf16.msra.mxu0 %v3338_v16  ;;  %v3076_v56 = vld [vmem:[%s4728_s28] ss:$0 sm:$0xff]  ;;  %v788_v5 = vstv %s3009_s2  ;;  %v775_v10 = vmul.f32 %v3857_v60, %v774_v61  ;;  %s3917_s28 = sld [smem:[#allocation3 + $0x1c]]  ;;  %s4693_s2 = smov 16  }
  0x3c   : > { %v3072_v38 = vld [vmem:[%s4725_s30] ss:$0 sm:$0xff]  ;;  %v3881_v14 = vmul.f32 %v3864_v63, %v788_v5  ;;  %s3951_s30 = sld [smem:[#allocation3 + $0x1f]]  ;;  %s3589_s9 = smov 8  }
  0x3d   : > { %1038 = vadd.xlane.f32.xlu0 %v1037_v6  ;;  %3349 = vmatpush3.bf16.msra.mxu1 %v3346_v19  ;;  %v760_v58 = vstv %s3001_s25  ;;  %v778_v62 = vstv %s3006_s27  ;;  %s3919_s25 = sld [smem:[#allocation3 + $0x4]]  ;;  %s3935_s27 = sld [smem:[#allocation3 + $0x6]] }
  0x3e   : > { %v761_v3 = vmul.f32 %v760_v58, %v3847_v55  ;;  %v779_v11 = vmul.f32 %v3857_v60, %v778_v62  ;;  %s3050_s6 = sld [smem:[#allocation3 + $0x24]] }
  0x3f   : > { %1049 = vadd.xlane.f32.xlu1 %v1048_v7 }
  0xc6   : > { %v1036_v20 = vpop.xlane.xlu0 %1035 }
  0xc7   : > { %v1041_v21 = vmul.f32 0.03125, %v1036_v20 }
  0xc8   : > { %v1047_v22 = vpop.xlane.xlu1 %1046 }
  0xc9   : > { %v1053_v23 = vmul.f32 %v1041_v21, %v1041_v21  ;;  %v1051_v24 = vmul.f32 0.03125, %v1047_v22  ;;  %v1057_v34 = vsub.f32 %v1029_v0, %v1041_v21 }
  0xca   : > { %v1039_v25 = vpop.xlane.xlu0 %1038 }
  0xcb   : > { %v1055_v26 = vsub.f32 %v1051_v24, %v1053_v23  ;;  %v1042_v27 = vmul.f32 0.03125, %v1039_v25  ;;  %v776_v25 = vadd.f32 %v775_v10, %v761_v3 }
  0xcc   : > { %v1050_v28 = vpop.xlane.xlu1 %1049 }
  0xcd   : > { %v1059_v29 = vadd.f32 1e-12, %v1055_v26  ;;  %v1054_v30 = vmul.f32 %v1042_v27, %v1042_v27  ;;  %v1052_v31 = vmul.f32 0.03125, %v1050_v28  ;;  %v1058_v39 = vsub.f32 %v1030_v1, %v1042_v27 }
  0xce   : > { %v780_v26 = vadd.f32 %v779_v11, %v765_v4  ;;  %v793_v27 = vmul.f32 %v3864_v63, %v792_v15  ;;  %v800_v11 = vld [vmem:[%s4659_s10] sm:$0xff]  ;;  %v3014_v15 = vld [vmem:[%s4659_s10 + $0x10] sm:$0xff] }
  0xcf   : > { %3493 = vrsqrt.f32 %v1059_v29  ;;  %v1056_v32 = vsub.f32 %v1052_v31, %v1054_v30 }
  0xd0   : > { %v794_v10 = vadd.f32 %v793_v27, %v780_v26  ;;  %v3981_v26 = vstv %s3924_s4  ;;  %v3984_v27 = vstv %s3926_s0  ;;  %s3032_s4 = sld [smem:[#allocation3 + $0x9]]  ;;  %s3035_s0 = sld [smem:[#allocation3 + $0x13]] }
  0xd1   : > { %v1060_v33 = vadd.f32 1e-12, %v1056_v32 }
  0xd3   : > { %3495 = vrsqrt.f32 %v1060_v33 }
  0xd9   : > { %v3494_v35 = vpop.eup %3493 }
  0xda   : > { %v1063_v37 = vmul.f32 %v3494_v35, %v1057_v34 }
  0xdc   : > { %v1071_v40 = vmul.f32 %v3071_v36, %v1063_v37 }
  0xdd   : > { %v3496_v41 = vpop.eup %3495 }
  0xde   : > { %v1064_v42 = vmul.f32 %v3496_v41, %v1058_v39  ;;  %v3815_v43 = vadd.f32 %v3072_v38, %v1071_v40 }
  0xe0   : > { %v1072_v44 = vmul.f32 %v3071_v36, %v1064_v42  ;;  %3197 = vmatprep.mubr.msk.f32.mxu0 %vm1033_vm0, %v3815_v43  ;;  %3208 = vmatprep.mubr.msk.f32.mxu1 %vm1033_vm0, %v3815_v43 }
  0xe2   : > { %v3821_v45 = vadd.f32 %v3072_v38, %v1072_v44 }
  0xe4   : > { %3198 = vmatmul.mubr.msk.f32.vlgmr.msra.gmra.mrb[0].mxu0 %vm1033_vm0, %v3821_v45  ;;  %3209 = vmatmul.mubr.msk.f32.vlgmr.msra.gmra.mrb[0].mxu1 %vm1033_vm0, %v3821_v45 }
 0x1b7   : > { %v3199_v0 = vpop.f32.mrb[0].mxu0  ;;  %v3210_v1 = vpop.f32.mrb[0].mxu1 }
 0x1b8   : > { %v3870_v6 = vadd.f32 %v3199_v0, %v3073_v54  ;;  %v3872_v7 = vadd.f32 %v3210_v1, %v3076_v56  ;;  %v1164_v8 = vpop.f32.mrb[1].mxu0  ;;  %v1250_v9 = vpop.f32.mrb[1].mxu1 }
 0x1b9   : > { %v3876_v12 = vadd.f32 %v3073_v54, %v1164_v8  ;;  %v3878_v13 = vadd.f32 %v3076_v56, %v1250_v9  ;;  %v790_v9 = vadd.f32 %v3881_v14, %v776_v25  ;;  %v3978_v25 = vstv %s3919_s25  ;;  %s3028_s25 = sld [smem:[#allocation3 + $0x12]] }
 0x1ba   : > { %v1288_v16 = vmax.f32 %v3872_v7, 0.0  ;;  %v1260_v17 = vrot.slane %v3872_v7, 7  ;;  %v1265_v18 = vrot.slane %v3872_v7, 1  ;;  %v1410_v19 = vrot.slane %v3870_v6, 7 }
 0x1bb   : > { %v1287_v20 = vmax.f32 %v3878_v13, 0.0  ;;  %v1259_v21 = vrot.slane %v3878_v13, 7  ;;  %v1264_v22 = vrot.slane %v3878_v13, 1  ;;  %v1409_v23 = vrot.slane %v3876_v12, 7 }
 0x1bc   : > { %1309 = vrot.lane.b32.xlu1 %v1288_v16, %s4691_s18  ;;  %v1413_v24 = vrot.slane %v3876_v12, 1  ;;  %v1414_v31 = vrot.slane %v3870_v6, 1 }
 0x1bd   : > { %1307 = vrot.lane.b32.xlu0 %v1287_v20, %s4691_s18  ;;  %v1262_v28 = vsel %vm1261_vm3, %v1259_v21, %v1260_v17  ;;  %v1268_v29 = vsel %vm1266_vm4, %v1265_v18, %v1264_v22  ;;  %v1263_v30 = vsel %vm1261_vm3, %v1260_v17, %v1259_v21  ;;  %v1267_v36 = vsel %vm1266_vm4, %v1264_v22, %v1265_v18  ;;  %s3051_s18 = sld [smem:[#allocation3 + $0x25]] }
 0x1be   : > { %v1282_v32 = vmax.f32 %v1262_v28, %v3872_v7  ;;  %v1284_v33 = vadd.f32 %v1268_v29, %v3852_v57  ;;  %v1269_v34 = vmul.f32 %v3835_v51, %v1263_v30  ;;  %v1272_v35 = vadd.f32 %v1262_v28, %v3872_v7 }
 0x1bf   : > { %v1274_v37 = vmul.f32 %v3832_v50, %v1268_v29  ;;  %v1279_v38 = vadd.f32 %v1263_v30, %v3866_v2  ;;  %v1412_v39 = vsel %vm1261_vm3, %v1410_v19, %v1409_v23  ;;  %v3931_v52 = vsel %vm1261_vm3, %v1409_v23, %v1410_v19  ;;  %v3017_v23 = vld [vmem:[%s4659_s10 + $0x28] sm:$0xff] }
 0x1c0   : > { %v1286_v40 = vmax.f32 %v1282_v32, %v1284_v33  ;;  %v1271_v41 = vadd.f32 %v1269_v34, %v3878_v13  ;;  %v1427_v42 = vadd.f32 %v1412_v39, %v3866_v2  ;;  %v1417_v44 = vmul.f32 %v3835_v51, %v1412_v39 }
 0x1c1   : > { %v1276_v46 = vadd.f32 %v1274_v37, %v1272_v35  ;;  %v1281_v48 = vmax.f32 %v1279_v38, %v3878_v13  ;;  %v1416_v53 = vsel %vm1266_vm4, %v1414_v31, %v1413_v24  ;;  %v1420_v59 = vadd.f32 %v3931_v52, %v3870_v6 }
 0x1c2   : > { %1301 = vrot.lane.b32.xlu1 %v1286_v40, %s4693_s2  ;;  %v1275_v54 = vadd.f32 %v1271_v41, %v1267_v36  ;;  %v1429_v56 = vmax.f32 %v1427_v42, %v3876_v12  ;;  %v1419_v58 = vadd.f32 %v1417_v44, %v3876_v12  ;;  %v1415_v61 = vsel %vm1266_vm4, %v1413_v24, %v1414_v31  ;;  %s3038_s2 = sld [smem:[#allocation3 + $0x22]] }
 0x1c3   : > { %v1422_v62 = vmul.f32 %v3832_v50, %v1416_v53  ;;  %v1278_v1 = vmul.f32 0.33333334, %v1276_v46  ;;  %v1285_v3 = vmax.f32 %v1281_v48, %v1267_v36  ;;  %v1430_v8 = vmax.f32 %v3931_v52, %v3870_v6 }
 0x1c4   : > { %v1277_v0 = vmul.f32 0.33333334, %v1275_v54  ;;  %v1423_v4 = vadd.f32 %v1419_v58, %v1415_v61  ;;  %v1433_v5 = vmax.f32 %v1429_v56, %v1415_v61  ;;  %v1432_v14 = vadd.f32 %v1416_v53, %v3852_v57 }
 0x1c5   : > { %v1424_v16 = vadd.f32 %v1422_v62, %v1420_v59  ;;  %v768_v17 = vstv %s3907_s3  ;;  %v782_v18 = vstv %s3909_s1  ;;  %v3969_v20 = vpack.c.bf16 %v794_v10, %v790_v9  ;;  %s4729_s3 = smov 16   ;;  %s4730_s1 = smov 24  }
 0x1c6   : > { %1291 = vrot.lane.b32.xlu0 %v1277_v0, %s3589_s9  ;;  %1293 = vrot.lane.b32.xlu1 %v1278_v1, %s3589_s9  ;;  %v1425_v19 = vmul.f32 0.33333334, %v1423_v4  ;;  %v769_v21 = vmul.f32 %v768_v17, %v3847_v55  ;;  %v783_v22 = vmul.f32 %v3857_v60, %v782_v18  ;;  %v796_v24 = vstv %s3917_s28  ;;  %s3025_s28 = sld [smem:[#allocation3 + $0x8]] }
 0x1c7   : > { %3351 = vmatprep.subr.bf16.mxu0 %v3969_v20  ;;  %v797_v29 = vmul.f32 %v3864_v63, %v796_v24  ;;  %v802_v30 = vmul.f32 %v3978_v25, %v800_v11  ;;  %v811_v31 = vmul.f32 %v3014_v15, %v3981_v26  ;;  %v1426_v32 = vmul.f32 0.33333334, %v1424_v16 }
 0x1c8   : > { %v784_v28 = vadd.f32 %v783_v22, %v769_v21  ;;  %v821_v33 = vmul.f32 %v3017_v23, %v3984_v27  ;;  %v850_v34 = vstv %s3935_s27  ;;  %v854_v35 = vstv %s3942_s5  ;;  %3353 = vmatpush3.bf16.msra.mxu0 %v3969_v20  ;;  %s3031_s27 = sld [smem:[#allocation3 + $0x21]]  ;;  %v3039_v22 = vld [vmem:[%s4659_s10 + $0x30] sm:$0xff] }
 0x1c9   : > { %v812_v37 = vadd.f32 %v811_v31, %v802_v30  ;;  %v851_v38 = vmul.f32 %v850_v34, %v3847_v55  ;;  %v855_v39 = vmul.f32 %v854_v35, %v3847_v55  ;;  %v862_v40 = vstv %s3944_s7 }
 0x1ca   : > { %1299 = vrot.lane.b32.xlu1 %v1285_v3, %s4729_s3  ;;  %1447 = vrot.lane.b32.xlu0 %v1433_v5, %s4729_s3  ;;  %v3996_v36 = vadd.f32 %v797_v29, %v784_v28  ;;  %v866_v41 = vstv %s3949_s8  ;;  %v874_v42 = vstv %s3951_s30  ;;  %v863_v48 = vmul.f32 %v3857_v60, %v862_v40  ;;  %s723_s8 = sand.u32 1, %s3575_s29  }
 0x1cb   : > { %v878_v44 = vstv %s3953_s23  ;;  %v822_v46 = vadd.f32 %v821_v33, %v812_v37  ;;  %v867_v52 = vmul.f32 %v3857_v60, %v866_v41  ;;  %v875_v53 = vmul.f32 %v3864_v63, %v874_v42  ;;  %v3033_v5 = vld [vmem:[%s4659_s10 + $0x8] sm:$0xff]  ;;  %s3047_s23 = sld [smem:[#allocation3 + $0x15]] }
 0x1cc   : > { %v879_v54 = vmul.f32 %v3864_v63, %v878_v44  ;;  %v864_v58 = vadd.f32 %v863_v48, %v851_v38  ;;  %v1435_v61 = vmax.f32 %v3876_v12, 0.0  ;;  %v1434_v62 = vmax.f32 %v1430_v8, %v1432_v14  ;;  %v3036_v8 = vld [vmem:[%s4659_s10 + $0x18] sm:$0xff] }
 0x1cd   : > { %v3354_v56 = vpack.c.bf16 %v822_v46, %v3996_v36  ;;  %v868_v59 = vadd.f32 %v867_v52, %v855_v39  ;;  %v1436_v4 = vmax.f32 %v3870_v6, 0.0  ;;  %v858_v9 = vstv %s3025_s28  ;;  %s4095_s28 = sld [smem:[#allocation3 + $0x17]] }
 0x1ce   : > { %1439 = vrot.lane.b32.xlu0 %v1425_v19, %s3589_s9  ;;  %1441 = vrot.lane.b32.xlu1 %v1426_v32, %s3589_s9  ;;  %v876_v0 = vadd.f32 %v875_v53, %v864_v58  ;;  %v870_v10 = vstv %s3028_s25  ;;  %v4025_v11 = vstv %s3032_s4  ;;  %v859_v14 = vmul.f32 %v858_v9, %v3847_v55  ;;  %s4097_s25 = sld [smem:[#allocation3 + $0x26]]  ;;  %s4101_s4 = sld [smem:[#allocation3 + $0x18]] }
 0x1cf   : > { %3355 = vmatprep.subr.bf16.mxu0 %v3354_v56  ;;  %v880_v1 = vadd.f32 %v879_v54, %v868_v59  ;;  %v4027_v15 = vstv %s3035_s0  ;;  %v871_v17 = vmul.f32 %v3857_v60, %v870_v10  ;;  %v889_v18 = vmul.f32 %v3033_v5, %v4025_v11  ;;  %v3034_v5 = vld [vmem:[%s4660_s11 + $0x1] sm:$0x1]  ;;  %v3018_v10 = vld [vmem:[%s4660_s11 + $0x5] sm:$0x1]  ;;  %s4109_s0 = sld [smem:[#allocation3 + $0x27]] }
 0x1d0   : > { %3357 = vmatpush3.bf16.msra.mxu0 %v3354_v56  ;;  %v899_v19 = vmul.f32 %v3036_v8, %v4027_v15  ;;  %v882_v21 = vstv %s3031_s27  ;;  %v4036_v23 = vstv %s3038_s2  ;;  %v3037_v8 = vld [vmem:[%s4660_s11 + $0x3] sm:$0x1]  ;;  %s4731_s2 = sld [smem:[#allocation26_spill]] }
 0x1d1   : > { %v4014_v3 = vpack.c.bf16 %v880_v1, %v876_v0  ;;  %v872_v29 = vadd.f32 %v871_v17, %v859_v14  ;;  %v883_v30 = vmul.f32 %v3864_v63, %v882_v21  ;;  %v909_v31 = vmul.f32 %v3039_v22, %v4036_v23  ;;  %v804_v1 = vld [vmem:[%s4660_s11] sm:$0x1]  ;;  %v3040_v17 = vld [vmem:[%s4660_s11 + $0x6] sm:$0x1]  ;;  %s4734_s27 = sld [smem:[#allocation18_spill]] }
 0x1d2   : > { %1455 = vrot.lane.b32.xlu0 %v1435_v61, %s4730_s1  ;;  %1449 = vrot.lane.b32.xlu1 %v1434_v62, %s4729_s3  ;;  %v900_v55 = vadd.f32 %v899_v19, %v889_v18  ;;  %v805_v9 = vmul.f32 %v804_v1, %v3978_v25  ;;  %v903_v14 = vmul.f32 %v3037_v8, %v4027_v15 }
 0x1d3   : > { %3359 = vmatprep.subr.bf16.mxu0 %v4014_v3  ;;  %v4042_v35 = vadd.f32 %v883_v30, %v872_v29  ;;  %v825_v19 = vmul.f32 %v3018_v10, %v3984_v27  ;;  %v913_v22 = vmul.f32 %v3040_v17, %v4036_v23 }
 0x1d4   : > { %v910_v37 = vadd.f32 %v909_v31, %v900_v55 }
 0x1d6   : > { %1457 = vrot.lane.b32.xlu1 %v1436_v4, %s4730_s1  ;;  %v3362_v46 = vpack.c.bf16 %v910_v37, %v4042_v35  ;;  %v3015_v4 = vld [vmem:[%s4660_s11 + $0x2] sm:$0x1]  ;;  %s4732_s5 = smov %s4731_s2 }
 0x22e   : > { %v1310_v16 = vpop.permute.xlu1 %1309 }
 0x22f   : > { %v1308_v24 = vpop.permute.xlu0 %1307 }
 0x234   : > { %v1302_v28 = vpop.permute.xlu1 %1301 }
 0x238   : > { %v1292_v32 = vpop.permute.xlu0 %1291  ;;  %v1294_v33 = vpop.permute.xlu1 %1293 }
 0x239   : > { %v1315_v34 = vsel %vm1313_vm5, %v3872_v7, %v1294_v33  ;;  %v1314_v38 = vsel %vm1313_vm5, %v3878_v13, %v1292_v32 }
 0x23a   : > { %v1318_v39 = vsel %vm1316_vm6, %v1315_v34, %v1302_v28  ;;  %v4091_v28 = vsub.s32 0, %v3827_v47 }
 0x23b   : > { %v1321_v7 = vsel %vm1319_vm7, %v1318_v39, %v1310_v16  ;;  %v893_v16 = vmul.f32 %v3034_v5, %v4025_v11  ;;  %v944_v39 = vstv %s3048_s24  ;;  %s4737_s24 = sld [smem:[#allocation27_spill]] }
 0x23c   : > { %v1300_v40 = vpop.permute.xlu1 %1299  ;;  %v1448_v41 = vpop.permute.xlu0 %1447 }
 0x23d   : > { %v1317_v42 = vsel %vm1316_vm6, %v1314_v38, %v1300_v40  ;;  %v904_v21 = vadd.f32 %v903_v14, %v893_v16  ;;  %v940_v38 = vstv %s3047_s23 }
 0x23e   : > { %v1320_v44 = vsel %vm1319_vm7, %v1317_v42, %v1308_v24  ;;  %v952_v42 = vstv %s3050_s6  ;;  %s3590_s6 = smov 120  }
 0x23f   : > { %3219 = vmatprep.mubr.msk.f32.mxu0 %vm1033_vm0, %v1320_v44  ;;  %v914_v29 = vadd.f32 %v913_v22, %v904_v21  ;;  %v4138_v22 = vstv %s4101_s4  ;;  %s3066_s4 = sld [smem:[#allocation3 + $0x2c]] }
 0x240   : > { %3220 = vmatmul.mubr.msk.f32.vlgmr.msra.gmra.mrb[2].mxu0 %vm1033_vm0, %v1321_v7  ;;  %v1440_v48 = vpop.permute.xlu0 %1439  ;;  %v1442_v52 = vpop.permute.xlu1 %1441  ;;  %v953_v7 = vmul.f32 %v3864_v63, %v952_v42 }
 0x241   : > { %v1461_v13 = vsel %vm1313_vm5, %v3876_v12, %v1440_v48  ;;  %3361 = vmatpush3.bf16.msra.mxu0 %v4014_v3  ;;  %v1462_v59 = vsel %vm1313_vm5, %v3870_v6, %v1442_v52  ;;  %v1554_v55 = vrot.slane %v914_v29, %v4091_v28 }
 0x242   : > { %3363 = vmatprep.subr.bf16.mxu0 %v3362_v46  ;;  %v1463_v53 = vsel %vm1316_vm6, %v1461_v13, %v1448_v41  ;;  %v941_v41 = vmul.f32 %v3857_v60, %v940_v38  ;;  %v945_v13 = vmul.f32 %v3857_v60, %v944_v39 }
 0x244   : > { %v1456_v54 = vpop.permute.xlu0 %1455  ;;  %v1450_v56 = vpop.permute.xlu1 %1449 }
 0x245   : > { %v1465_v58 = vsel %vm1319_vm7, %v1463_v53, %v1456_v54  ;;  %3365 = vmatpush3.bf16.msra.mxu0 %v3362_v46  ;;  %v1464_v61 = vsel %vm1316_vm6, %v1462_v59, %v1450_v56  ;;  %v956_v53 = vstv %s3051_s18  ;;  %v954_v54 = vadd.f32 %v953_v7, %v941_v41  ;;  %s3063_s18 = sld [smem:[#allocation3 + $0x29]] }
 0x246   : > { %3230 = vmatprep.mubr.msk.f32.mxu0 %vm1033_vm0, %v1465_v58  ;;  %3395 = vmatprep.subr.bf16.mxu0 %v3969_v20  ;;  %v957_v56 = vmul.f32 %v3864_v63, %v956_v53  ;;  %v948_v58 = vstv %s4095_s28  ;;  %v960_v59 = vstv %s4097_s25  ;;  %s3064_s28 = sld [smem:[#allocation3 + $0x2a]]  ;;  %s3065_s25 = sld [smem:[#allocation3 + $0x2b]] }
 0x247   : > { %v949_v17 = vmul.f32 %v3857_v60, %v948_v58  ;;  %v961_v21 = vmul.f32 %v3864_v63, %v960_v59 }
 0x248   : > { %v1458_v62 = vpop.permute.xlu1 %1457  ;;  %v958_v14 = vadd.f32 %v957_v56, %v945_v13 }
 0x249   : > { %v1466_v0 = vsel %vm1319_vm7, %v1464_v61, %v1458_v62 }
 0x24a   : > { %3231 = vmatmul.mubr.msk.f32.vlgmr.msra.gmra.mrb[2].mxu0 %vm1033_vm0, %v1466_v0 }
 0x24b   : > { %3397 = vmatpush3.bf16.msra.mxu0 %v3969_v20  ;;  %v815_v20 = vmul.f32 %v3015_v4, %v3981_v26 }
 0x24d   : > { %v816_v18 = vadd.f32 %v815_v20, %v805_v9  ;;  %v3054_v20 = vld [vmem:[%s4659_s10 + $0x20] sm:$0xff] }
 0x24f   : > { %v826_v24 = vadd.f32 %v825_v19, %v816_v18 }
 0x251   : > { %v1326_v30 = vrot.slane %v826_v24, %v4091_v28  ;;  %v3057_v24 = vld [vmem:[%s4659_s10 + $0x38] sm:$0xff] }
 0x31d   : > { %v3232_v31 = vpop.f32.mrb[2].mxu0 }
 0x31e   : > { %v3435_v32 = vadd.f32 %v3232_v31, %v1326_v30  ;;  %v1539_v33 = vpop.f32.mrb[3].mxu0  ;;  %v967_v31 = vmul.f32 %v3054_v20, %v4138_v22 }
 0x31f   : > { %v3436_v34 = vadd.f32 %v1539_v33, %v1326_v30 }
 0x320   : > { %v4099_v37 = vadd.f32 %v3435_v32, %v1554_v55  ;;  %v4149_v32 = vstv %s4109_s0 }
 0x321   : > { %v4103_v40 = vadd.f32 %v3436_v34, %v1554_v55  ;;  %v4144_v55 = vpack.c.bf16 %v958_v14, %v954_v54  ;;  %v4152_v34 = vadd.f32 %v961_v21, %v949_v17  ;;  %v977_v38 = vmul.f32 %v3057_v24, %v4149_v32 }
 0x322   : > { %v1559_v44 = vrot.slane %v4099_v37, 7  ;;  %v1563_v46 = vrot.slane %v4099_v37, 1 }
 0x323   : > { %v1558_v48 = vrot.slane %v4103_v40, 7  ;;  %v1562_v52 = vrot.slane %v4103_v40, 1  ;;  %3367 = vmatprep.subr.bf16.mxu1 %v4144_v55  ;;  %v978_v41 = vadd.f32 %v977_v38, %v967_v31  ;;  %v1584_v7 = vmax.f32 %v4103_v40, 0.0 }
 0x324   : > { %3369 = vmatpush3.bf16.msra.mxu1 %v4144_v55  ;;  %v1004_v31 = vstv %s3064_s28  ;;  %s724_s28 = scalar_lea.vmem [#allocation4], %s723_s8 }
 0x325   : > { %v1560_v61 = vsel %vm1261_vm3, %v1558_v48, %v1559_v44  ;;  %v1565_v62 = vsel %vm1266_vm4, %v1563_v46, %v1562_v52  ;;  %v1561_v0 = vsel %vm1261_vm3, %v1559_v44, %v1558_v48  ;;  %v1564_v1 = vsel %vm1266_vm4, %v1562_v52, %v1563_v46 }
 0x326   : > { %v1579_v4 = vmax.f32 %v1560_v61, %v4099_v37  ;;  %v1581_v5 = vadd.f32 %v1565_v62, %v3852_v57  ;;  %v1576_v8 = vadd.f32 %v1561_v0, %v3866_v2  ;;  %v1569_v9 = vadd.f32 %v1560_v61, %v4099_v37 }
 0x327   : > { %v1571_v10 = vmul.f32 %v3832_v50, %v1565_v62  ;;  %v1566_v16 = vmul.f32 %v3835_v51, %v1561_v0  ;;  %v3370_v44 = vpack.c.bf16 %v978_v41, %v4152_v34  ;;  %v1585_v46 = vmax.f32 %v4099_v37, 0.0 }
 0x328   : > { %v1583_v18 = vmax.f32 %v1579_v4, %v1581_v5  ;;  %v1578_v19 = vmax.f32 %v1576_v8, %v4103_v40  ;;  %v3055_v4 = vld [vmem:[%s4660_s11 + $0x4] sm:$0x1]  ;;  %v3058_v5 = vld [vmem:[%s4660_s11 + $0x7] sm:$0x1] }
 0x329   : > { %v1573_v29 = vadd.f32 %v1571_v10, %v1569_v9  ;;  %v1568_v30 = vadd.f32 %v1566_v16, %v4103_v40  ;;  %3371 = vmatprep.subr.bf16.mxu1 %v3370_v44  ;;  %v971_v8 = vmul.f32 %v3055_v4, %v4138_v22  ;;  %v981_v9 = vmul.f32 %v3058_v5, %v4149_v32 }
 0x32a   : > { %1598 = vrot.lane.b32.xlu1 %v1583_v18, %s4729_s3  ;;  %v1582_v60 = vmax.f32 %v1578_v19, %v1564_v1  ;;  %3373 = vmatpush3.bf16.msra.mxu1 %v3370_v44 }
 0x32b   : > { %v1572_v33 = vadd.f32 %v1568_v30, %v1564_v1  ;;  %v1575_v39 = vmul.f32 0.33333334, %v1573_v29  ;;  %v982_v20 = vadd.f32 %v981_v9, %v971_v8 }
 0x32c   : > { %1596 = vrot.lane.b32.xlu0 %v1582_v60, %s4729_s3 }
 0x32d   : > { %v1574_v42 = vmul.f32 0.33333334, %v1572_v33  ;;  %v1703_v10 = vrot.slane %v982_v20, %v4091_v28 }
 0x32e   : > { %1590 = vrot.lane.b32.xlu1 %v1575_v39, %s3589_s9  ;;  %v1005_v39 = vmul.f32 %v3864_v63, %v1004_v31 }
 0x330   : > { %1588 = vrot.lane.b32.xlu0 %v1574_v42, %s3589_s9 }
 0x332   : > { %1606 = vrot.lane.b32.xlu1 %v1585_v46, %s4730_s1 }
 0x334   : > { %1604 = vrot.lane.b32.xlu0 %v1584_v7, %s4730_s1 }
 0x39c   : > { %v1599_v48 = vpop.permute.xlu1 %1598 }
 0x39e   : > { %v1597_v52 = vpop.permute.xlu0 %1596 }
 0x3a0   : > { %v1591_v13 = vpop.permute.xlu1 %1590 }
 0x3a1   : > { %v1611_v56 = vsel %vm1313_vm5, %v4099_v37, %v1591_v13  ;;  %v3067_v13 = vld [vmem:[%s4659_s10 + $0x40] sm:$0xff] }
 0x3a2   : > { %v1589_v53 = vpop.permute.xlu0 %1588  ;;  %v1613_v62 = vsel %vm1316_vm6, %v1611_v56, %v1599_v48 }
 0x3a3   : > { %v1610_v54 = vsel %vm1313_vm5, %v4103_v40, %v1589_v53 }
 0x3a4   : > { %v1607_v58 = vpop.permute.xlu1 %1606  ;;  %v1612_v59 = vsel %vm1316_vm6, %v1610_v54, %v1597_v52 }
 0x3a5   : > { %v1615_v1 = vsel %vm1319_vm7, %v1613_v62, %v1607_v58  ;;  %v1008_v58 = vstv %s3065_s25 }
 0x3a6   : > { %v1605_v61 = vpop.permute.xlu0 %1604  ;;  %v4211_v62 = vmul.f32 %v3864_v63, %v1008_v58 }
 0x3a7   : > { %v1614_v0 = vsel %vm1319_vm7, %v1612_v59, %v1605_v61 }
 0x3a8   : > { %3241 = vmatprep.mubr.msk.f32.mxu1 %vm1033_vm0, %v1614_v0  ;;  %v4213_v0 = vstv %s3066_s4  ;;  %s2912_s4 = scalar_lea.sflag [#allocation5], %s723_s8 }
 0x3a9   : > { %3242 = vmatmul.mubr.msk.f32.vlgmr.msra.gmra.mrb[2].mxu1 %vm1033_vm0, %v1615_v1  ;;  %v1015_v8 = vmul.f32 %v3067_v13, %v4213_v0 }
 0x47c   : > { %v3243_v16 = vpop.f32.mrb[2].mxu1 }
 0x47d   : > { %v1698_v14 = vadd.f32 %v3243_v16, %v4099_v37  ;;  %v1688_v17 = vpop.f32.mrb[3].mxu1 }
 0x47e   : > { %v1697_v18 = vadd.f32 %v1688_v17, %v4103_v40  ;;  %v1000_v40 = vstv %s3063_s18 }
 0x47f   : > { %v4185_v19 = vadd.f32 %v1703_v10, %v1698_v14  ;;  %v1001_v38 = vmul.f32 %v3864_v63, %v1000_v40  ;;  %v3378_v63 = vpack.c.bf16 %v1015_v8, %v4211_v62 }
 0x480   : > { %v4187_v21 = vadd.f32 %v1703_v10, %v1697_v18 }
 0x481   : > { %1711 = vrot.lane.b32.xlu1 %v4185_v19, %s3590_s6  ;;  %v4208_v56 = vpack.c.bf16 %v1005_v39, %v1001_v38  ;;  %v1742_v14 = vmax.f32 %v4185_v19, 0.0 }
 0x482   : > { %1709 = vrot.lane.b32.xlu0 %v4187_v21, %s3590_s6  ;;  %v1741_v17 = vmax.f32 %v4187_v21, 0.0 }
 0x483   : > { %3375 = vmatprep.subr.bf16.mxu1 %v4208_v56 }
 0x484   : > { %3377 = vmatpush3.bf16.msra.mxu1 %v4208_v56 }
 0x485   : > { %3379 = vmatprep.subr.bf16.mxu1 %v3378_v63 }
 0x488   : > { %3381 = vmatpush3.bf16.msra.mxu1 %v3378_v63  ;;  %v1925_v63 = vld [vmem:[%s4665_s16 + $0x10] sm:$0xff] }
 0x4f3   : > { %v1712_v24 = vpop.permute.xlu1 %1711 }
 0x4f4   : > { %v1716_v37 = vrot.slane %v1712_v24, 7  ;;  %v1720_v29 = vrot.slane %v1712_v24, 1  ;;  %v1710_v30 = vpop.permute.xlu0 %1709 }
 0x4f5   : > { %v1715_v60 = vrot.slane %v1710_v30, 7  ;;  %v1719_v33 = vrot.slane %v1710_v30, 1 }
 0x4f7   : > { %v1717_v41 = vsel %vm1261_vm3, %v1715_v60, %v1716_v37  ;;  %v1722_v42 = vsel %vm1266_vm4, %v1720_v29, %v1719_v33  ;;  %v1718_v44 = vsel %vm1261_vm3, %v1716_v37, %v1715_v60  ;;  %v1721_v1 = vsel %vm1266_vm4, %v1719_v33, %v1720_v29 }
 0x4f8   : > { %v1736_v46 = vmax.f32 %v1717_v41, %v1712_v24  ;;  %v1738_v7 = vadd.f32 %v1722_v42, %v3852_v57  ;;  %v1733_v48 = vadd.f32 %v1718_v44, %v3866_v2  ;;  %v1726_v52 = vadd.f32 %v1717_v41, %v1712_v24 }
 0x4f9   : > { %v1728_v53 = vmul.f32 %v3832_v50, %v1722_v42  ;;  %v1723_v54 = vmul.f32 %v3835_v51, %v1718_v44 }
 0x4fa   : > { %v1740_v59 = vmax.f32 %v1736_v46, %v1738_v7  ;;  %v1735_v61 = vmax.f32 %v1733_v48, %v1710_v30 }
 0x4fb   : > { %v1730_v4 = vadd.f32 %v1728_v53, %v1726_v52  ;;  %v1725_v5 = vadd.f32 %v1723_v54, %v1710_v30 }
 0x4fc   : > { %1755 = vrot.lane.b32.xlu1 %v1740_v59, %s4729_s3  ;;  %v1739_v9 = vmax.f32 %v1735_v61, %v1721_v1 }
 0x4fd   : > { %v1729_v20 = vadd.f32 %v1725_v5, %v1721_v1  ;;  %v1732_v10 = vmul.f32 0.33333334, %v1730_v4 }
 0x4fe   : > { %1753 = vrot.lane.b32.xlu0 %v1739_v9, %s4729_s3  ;;  %v1924_v9 = vld [vmem:[%s4665_s16 + $0x8] sm:$0xff] }
 0x4ff   : > { %v1731_v16 = vmul.f32 0.33333334, %v1729_v20 }
 0x500   : > { %1747 = vrot.lane.b32.xlu1 %v1732_v10, %s3589_s9  ;;  %v2014_v10 = vld [vmem:[%s4663_s14] sm:$0xff] }
 0x502   : > { %1745 = vrot.lane.b32.xlu0 %v1731_v16, %s3589_s9  ;;  %v2015_v16 = vld [vmem:[%s4663_s14 + $0x8] sm:$0xff] }
 0x504   : > { %1763 = vrot.lane.b32.xlu1 %v1742_v14, %s4729_s3  ;;  %v3386_v14 = vpack.c.bf16 %v2015_v16, %v2014_v10  ;;  %v827_v16 = vld [vmem:[%s4731_s2] sm:$0xff] }
 0x506   : > { %1761 = vrot.lane.b32.xlu0 %v1741_v17, %s4729_s3 }
 0x508   : > { %1868 = vrot.lane.b32.xlu1 %v3870_v6, %s3590_s6 }
 0x50a   : > { %1866 = vrot.lane.b32.xlu0 %v3876_v12, %s3590_s6  ;;  %v3068_v12 = vld [vmem:[%s4660_s11 + $0x8] sm:$0x1] }
 0x56e   : > { %v1756_v18 = vpop.permute.xlu1 %1755 }
 0x570   : > { %v1754_v37 = vpop.permute.xlu0 %1753 }
 0x572   : > { %v1748_v29 = vpop.permute.xlu1 %1747 }
 0x573   : > { %v1768_v60 = vsel %vm1313_vm5, %v1712_v24, %v1748_v29  ;;  %v1019_v24 = vmul.f32 %v3068_v12, %v4213_v0 }
 0x574   : > { %v1746_v40 = vpop.permute.xlu0 %1745  ;;  %v1770_v41 = vsel %vm1316_vm6, %v1768_v60, %v1756_v18 }
 0x575   : > { %v1767_v31 = vsel %vm1313_vm5, %v1710_v30, %v1746_v40  ;;  %v1860_v30 = vrot.slane %v1019_v24, %v4091_v28 }
 0x576   : > { %v1764_v33 = vpop.permute.xlu1 %1763  ;;  %v1769_v38 = vsel %vm1316_vm6, %v1767_v31, %v1754_v37 }
 0x577   : > { %v1772_v6 = vsel %vm1319_vm7, %v1770_v41, %v1764_v33 }
 0x578   : > { %v1762_v39 = vpop.permute.xlu0 %1761 }
 0x579   : > { %v1771_v42 = vsel %vm1319_vm7, %v1769_v38, %v1762_v39 }
 0x57a   : > { %3252 = vmatprep.mubr.msk.f32.mxu1 %vm1033_vm0, %v1771_v42  ;;  %v1869_v13 = vpop.permute.xlu1 %1868 }
 0x57b   : > { %3253 = vmatmul.mubr.msk.f32.vlgmr.msra.gmra.mrb[4].mxu1 %vm1033_vm0, %v1772_v6 }
 0x57c   : > { %v1867_v54 = vpop.permute.xlu0 %1866 }
 0x64e   : > { %v3254_v44 = vpop.f32.mrb[4].mxu1 }
 0x64f   : > { %v1855_v46 = vadd.f32 %v3254_v44, %v4185_v19  ;;  %v1845_v7 = vpop.f32.mrb[5].mxu1  ;;  %v3087_v44 = vld [vmem:[%s4661_s12] ss:$0 sm:$0xff] }
 0x650   : > { %v1854_v48 = vadd.f32 %v1845_v7, %v4187_v21  ;;  %v1923_v21 = vld [vmem:[%s4665_s16] sm:$0xff] }
 0x651   : > { %v1863_v52 = vadd.f32 %v1860_v30, %v1855_v46  ;;  %v3382_v20 = vpack.c.bf16 %v1924_v9, %v1923_v21  ;;  %v3088_v7 = vld [vmem:[%s4662_s13] ss:$0 sm:$0xff] }
 0x652   : > { %v1862_v53 = vadd.f32 %v1860_v30, %v1854_v48 }
 0x653   : > { %v1873_v58 = vadd.f32 %v1869_v13, %v1863_v52  ;;  %3383 = vmatprep.subr.bf16.mxu1 %v3382_v20 }
 0x654   : > { %v1872_v59 = vadd.f32 %v1867_v54, %v1862_v53  ;;  %3385 = vmatpush3.bf16.msra.mxu1 %v3382_v20 }
 0x655   : > { %v1879_v61 = vsel %vm1319_vm7, %v1873_v58, 0.0  ;;  %v1886_v8 = vmul.f32 %v1873_v58, %v1873_v58  ;;  %3259 = vmatprep.subr.mxu1 %v1925_v63 }
 0x656   : > { %1880 = vadd.xlane.f32.xlu1 %v1879_v61  ;;  %v1876_v1 = vsel %vm1319_vm7, %v1872_v59, 0.0  ;;  %v1885_v4 = vmul.f32 %v1872_v59, %v1872_v59  ;;  %v2016_v61 = vld [vmem:[%s4663_s14 + $0x10] sm:$0xff] }
 0x657   : > { %1877 = vadd.xlane.f32.xlu0 %v1876_v1  ;;  %v1890_v19 = vsel %vm1319_vm7, %v1886_v8, 0.0 }
 0x658   : > { %v1887_v5 = vsel %vm1319_vm7, %v1885_v4, 0.0  ;;  %3260 = vmatpush3.msra.mxu1 %v1925_v63 }
 0x659   : > { %3387 = vmatprep.subr.bf16.mxu1 %v3386_v14 }
 0x65b   : > { %1888 = vadd.xlane.f32.xlu0 %v1887_v5 }
 0x65f   : > { %1891 = vadd.xlane.f32.xlu0 %v1890_v19 }
 0x6e3   : > { %v1881_v37 = vpop.xlane.xlu1 %1880 }
 0x6e4   : > { %v1878_v17 = vpop.xlane.xlu0 %1877  ;;  %v1884_v40 = vmul.f32 0.041666668, %v1881_v37  ;;  %v828_v37 = vmul.f32 %v827_v16, %v3978_v25 }
 0x6e5   : > { %v1883_v18 = vmul.f32 0.041666668, %v1878_v17 }
 0x6e6   : > { %v1896_v39 = vmul.f32 %v1884_v40, %v1884_v40  ;;  %v1900_v48 = vsub.f32 %v1873_v58, %v1884_v40  ;;  %v3089_v58 = vld [vmem:[%s4666_s17] ss:$0 sm:$0xff] }
 0x6e7   : > { %v1895_v31 = vmul.f32 %v1883_v18, %v1883_v18  ;;  %v1899_v24 = vsub.f32 %v1872_v59, %v1883_v18  ;;  %v2017_v59 = vld [vmem:[%s4663_s14 + $0x18] sm:$0xff] }
 0x6e8   : > { %v1889_v29 = vpop.xlane.xlu0 %1888  ;;  %v3390_v5 = vpack.c.bf16 %v2017_v59, %v2016_v61 }
 0x6e9   : > { %v1893_v60 = vmul.f32 0.041666668, %v1889_v29 }
 0x6eb   : > { %v1897_v33 = vsub.f32 %v1893_v60, %v1895_v31 }
 0x6ec   : > { %v1892_v38 = vpop.xlane.xlu0 %1891 }
 0x6ed   : > { %v1901_v41 = vadd.f32 1e-12, %v1897_v33  ;;  %v1894_v42 = vmul.f32 0.041666668, %v1892_v38  ;;  %v3021_v38 = vld [vmem:[%s4732_s5 + $0x28] sm:$0xff] }
 0x6ef   : > { %3497 = vrsqrt.f32 %v1901_v41  ;;  %v1898_v6 = vsub.f32 %v1894_v42, %v1896_v39 }
 0x6f1   : > { %v1902_v12 = vadd.f32 1e-12, %v1898_v6 }
 0x6f3   : > { %3499 = vrsqrt.f32 %v1902_v12 }
 0x6f9   : > { %v3498_v30 = vpop.eup %3497 }
 0x6fa   : > { %v1905_v46 = vmul.f32 %v3498_v30, %v1899_v24  ;;  %v843_v30 = vmul.f32 %v3021_v38, %v3984_v27 }
 0x6fc   : > { %v1913_v52 = vmul.f32 %v3087_v44, %v1905_v46 }
 0x6fd   : > { %v3500_v13 = vpop.eup %3499 }
 0x6fe   : > { %v1906_v53 = vmul.f32 %v3500_v13, %v1900_v48  ;;  %v1921_v54 = vadd.f32 %v3088_v7, %v1913_v52 }
 0x700   : > { %v1914_v1 = vmul.f32 %v3087_v44, %v1906_v53  ;;  %3261 = vmatprep.mubr.msk.f32.mxu1 %vm1319_vm7, %v1921_v54 }
 0x702   : > { %v1922_v4 = vadd.f32 %v3088_v7, %v1914_v1 }
 0x704   : > { %3262 = vmatmul.mubr.msk.f32.vlgmr.msra.gmra.mrb[6].mxu1 %vm1319_vm7, %v1922_v4 }
 0x705   : > { %3389 = vmatpush3.bf16.msra.mxu1 %v3386_v14  ;;  %3272 = vmatprep.mubr.msk.f32.mxu1 %vm1033_vm0, %v3815_v43  ;;  %v3092_v43 = vld [vmem:[%s4664_s15] ss:$0 sm:$0xff]  ;;  %v3019_v14 = vld [vmem:[%s4732_s5 + $0x10] sm:$0xff] }
 0x706   : > { %3391 = vmatprep.subr.bf16.mxu1 %v3390_v5  ;;  %v835_v29 = vmul.f32 %v3019_v14, %v3981_v26 }
 0x708   : > { %v836_v24 = vadd.f32 %v835_v29, %v828_v37 }
 0x709   : > { %3393 = vmatpush3.bf16.msra.mxu1 %v3390_v5 }
 0x70a   : > { %3411 = vmatprep.subr.bf16.mxu1 %v4144_v55  ;;  %v844_v1 = vadd.f32 %v843_v30, %v836_v24  ;;  %v3041_v30 = vld [vmem:[%s4732_s5 + $0x8] sm:$0xff] }
 0x70c   : > { %3273 = vmatmul.mubr.msk.f32.vlgmr.msra.gmra.mrb[8].mxu1 %vm1033_vm0, %v3821_v45 }
 0x70d   : > { %3413 = vmatpush3.bf16.msra.mxu1 %v4144_v55 }
 0x7d7   : > { %v3263_v8 = vpop.f32.mrb[6].mxu1 }
 0x7d8   : > { %v2005_v19 = vpop.f32.mrb[7].mxu1  ;;  %v4290_v21 = vadd.f32 %v3263_v8, %v3089_v58 }
 0x7d9   : > { %v4292_v9 = vadd.f32 %v3089_v58, %v2005_v19 }
 0x7da   : > { %v2246_v45 = vrot.slane %v4290_v21, 7  ;;  %v2250_v33 = vrot.slane %v4290_v21, 1  ;;  %v2272_v24 = vmax.f32 %v4290_v21, 0.0 }
 0x7db   : > { %v2245_v20 = vrot.slane %v4292_v9, 7  ;;  %v2249_v6 = vrot.slane %v4292_v9, 1 }
 0x7dd   : > { %v2248_v18 = vsel %vm1261_vm3, %v2246_v45, %v2245_v20  ;;  %v2247_v61 = vsel %vm1261_vm3, %v2245_v20, %v2246_v45  ;;  %v2252_v59 = vsel %vm1266_vm4, %v2250_v33, %v2249_v6  ;;  %v2251_v45 = vsel %vm1266_vm4, %v2249_v6, %v2250_v33 }
 0x7de   : > { %v2253_v12 = vmul.f32 %v3835_v51, %v2248_v18  ;;  %v2256_v16 = vadd.f32 %v2247_v61, %v4290_v21  ;;  %v2258_v14 = vmul.f32 %v3832_v50, %v2252_v59  ;;  %v2271_v6 = vmax.f32 %v4292_v9, 0.0 }
 0x7df   : > { %v3274_v63 = vpop.f32.mrb[8].mxu1 }
 0x7e0   : > { %v4299_v55 = vadd.f32 %v3274_v63, %v3092_v43  ;;  %v2091_v10 = vpop.f32.mrb[9].mxu1  ;;  %v2255_v8 = vadd.f32 %v2253_v12, %v4292_v9  ;;  %v3398_v63 = vpack.c.bf16 %v844_v1, %v3996_v36  ;;  %v2260_v33 = vadd.f32 %v2258_v14, %v2256_v16 }
 0x7e1   : > { %v4307_v17 = vadd.f32 %v3092_v43, %v2091_v10  ;;  %v2263_v10 = vadd.f32 %v2248_v18, %v3866_v2 }
 0x7e2   : > { %v2127_v40 = vmax.f32 %v4299_v55, 0.0  ;;  %v2101_v31 = vrot.slane %v4299_v55, 7  ;;  %v2105_v60 = vrot.slane %v4299_v55, 1  ;;  %3399 = vmatprep.subr.bf16.mxu0 %v3398_v63 }
 0x7e3   : > { %v2126_v39 = vmax.f32 %v4307_v17, 0.0  ;;  %v2100_v41 = vrot.slane %v4307_v17, 7  ;;  %v2104_v42 = vrot.slane %v4307_v17, 1  ;;  %3401 = vmatpush3.bf16.msra.mxu0 %v3398_v63  ;;  %v2265_v18 = vmax.f32 %v2263_v10, %v4292_v9 }
 0x7e4   : > { %2148 = vrot.lane.b32.xlu1 %v2127_v40, %s4730_s1  ;;  %3403 = vmatprep.subr.bf16.mxu0 %v4014_v3 }
 0x7e5   : > { %2146 = vrot.lane.b32.xlu0 %v2126_v39, %s4730_s1  ;;  %v2102_v44 = vsel %vm1261_vm3, %v2100_v41, %v2101_v31  ;;  %v2107_v46 = vsel %vm1266_vm4, %v2105_v60, %v2104_v42  ;;  %v2103_v7 = vsel %vm1261_vm3, %v2101_v31, %v2100_v41  ;;  %v2106_v19 = vsel %vm1266_vm4, %v2104_v42, %v2105_v60 }
 0x7e6   : > { %v2121_v48 = vmax.f32 %v2102_v44, %v4299_v55  ;;  %v2123_v52 = vadd.f32 %v2107_v46, %v3852_v57  ;;  %v2108_v13 = vmul.f32 %v3835_v51, %v2103_v7  ;;  %v2111_v53 = vadd.f32 %v2102_v44, %v4299_v55  ;;  %v3043_v44 = vld [vmem:[%s4732_s5 + $0x18] sm:$0xff] }
 0x7e7   : > { %v2113_v54 = vmul.f32 %v3832_v50, %v2107_v46  ;;  %v2118_v58 = vadd.f32 %v2103_v7, %v3866_v2  ;;  %v2259_v31 = vadd.f32 %v2255_v8, %v2251_v45  ;;  %v2269_v38 = vmax.f32 %v2265_v18, %v2251_v45  ;;  %v3020_v18 = vld [vmem:[%s4668_s19 + $0x2] sm:$0x1] }
 0x7e8   : > { %v2125_v4 = vmax.f32 %v2121_v48, %v2123_v52  ;;  %v2110_v5 = vadd.f32 %v2108_v13, %v4307_v17  ;;  %v2262_v39 = vmul.f32 0.33333334, %v2260_v33  ;;  %v2266_v41 = vmax.f32 %v2247_v61, %v4290_v21  ;;  %v3045_v52 = vld [vmem:[%s4732_s5 + $0x30] sm:$0xff]  ;;  %v3042_v33 = vld [vmem:[%s4668_s19 + $0x1] sm:$0x1] }
 0x7e9   : > { %v2115_v43 = vadd.f32 %v2113_v54, %v2111_v53  ;;  %v2120_v40 = vmax.f32 %v2118_v58, %v4307_v17  ;;  %v2261_v60 = vmul.f32 0.33333334, %v2259_v31  ;;  %v2268_v42 = vadd.f32 %v2252_v59, %v3852_v57 }
 0x7ea   : > { %2140 = vrot.lane.b32.xlu1 %v2125_v4, %s4729_s3  ;;  %v2114_v20 = vadd.f32 %v2110_v5, %v2106_v19  ;;  %v917_v7 = vmul.f32 %v3041_v30, %v4025_v11  ;;  %v925_v48 = vmul.f32 %v3043_v44, %v4027_v15  ;;  %v933_v61 = vmul.f32 %v3045_v52, %v4036_v23 }
 0x7eb   : > { %v2117_v29 = vmul.f32 0.33333334, %v2115_v43  ;;  %v2124_v36 = vmax.f32 %v2120_v40, %v2106_v19  ;;  %v2270_v12 = vmax.f32 %v2266_v41, %v2268_v42  ;;  %v839_v41 = vmul.f32 %v3020_v18, %v3981_v26  ;;  %v3022_v42 = vld [vmem:[%s4668_s19 + $0x5] sm:$0x1] }
 0x7ec   : > { %v2116_v37 = vmul.f32 0.33333334, %v2114_v20  ;;  %v926_v54 = vadd.f32 %v925_v48, %v917_v7  ;;  %v847_v44 = vmul.f32 %v3022_v42, %v3984_v27 }
 0x7ee   : > { %2130 = vrot.lane.b32.xlu0 %v2116_v37, %s3589_s9  ;;  %2132 = vrot.lane.b32.xlu1 %v2117_v29, %s3589_s9  ;;  %v934_v5 = vadd.f32 %v933_v61, %v926_v54 }
 0x7f0   : > { %v3406_v45 = vpack.c.bf16 %v934_v5, %v4042_v35  ;;  %v3061_v5 = vld [vmem:[%s4732_s5 + $0x38] sm:$0xff] }
 0x7f2   : > { %2138 = vrot.lane.b32.xlu1 %v2124_v36, %s4729_s3  ;;  %2275 = vrot.lane.b32.xlu0 %v2261_v60, %s3589_s9  ;;  %v830_v60 = vld [vmem:[%s4668_s19] sm:$0x1] }
 0x7f6   : > { %2283 = vrot.lane.b32.xlu0 %v2269_v38, %s4729_s3  ;;  %2277 = vrot.lane.b32.xlu1 %v2262_v39, %s3589_s9  ;;  %v3044_v38 = vld [vmem:[%s4668_s19 + $0x3] sm:$0x1]  ;;  %v831_v39 = vmul.f32 %v830_v60, %v3978_v25 }
 0x7f8   : > { %v840_v30 = vadd.f32 %v839_v41, %v831_v39 }
 0x7fa   : > { %2291 = vrot.lane.b32.xlu0 %v2271_v6, %s4730_s1  ;;  %2285 = vrot.lane.b32.xlu1 %v2270_v12, %s4729_s3  ;;  %v921_v6 = vmul.f32 %v3042_v33, %v4025_v11  ;;  %v929_v12 = vmul.f32 %v3044_v38, %v4027_v15  ;;  %v848_v7 = vadd.f32 %v847_v44, %v840_v30 }
 0x7fc   : > { %v2162_v48 = vrot.slane %v848_v7, %v4091_v28 }
 0x7fe   : > { %2293 = vrot.lane.b32.xlu1 %v2272_v24, %s4730_s1  ;;  %v3046_v24 = vld [vmem:[%s4668_s19 + $0x6] sm:$0x1] }
 0x7ff   : > { %v937_v25 = vmul.f32 %v3046_v24, %v4036_v23 }
 0x856   : > { %v2149_v46 = vpop.permute.xlu1 %2148 }
 0x857   : > { %v2147_v13 = vpop.permute.xlu0 %2146 }
 0x85c   : > { %v2141_v53 = vpop.permute.xlu1 %2140 }
 0x860   : > { %v2131_v59 = vpop.permute.xlu0 %2130  ;;  %v2133_v1 = vpop.permute.xlu1 %2132 }
 0x861   : > { %v2153_v4 = vsel %vm1313_vm5, %v4299_v55, %v2133_v1  ;;  %v2152_v58 = vsel %vm1313_vm5, %v4307_v17, %v2131_v59 }
 0x862   : > { %v2155_v8 = vsel %vm1316_vm6, %v2153_v4, %v2141_v53  ;;  %v3059_v4 = vld [vmem:[%s4732_s5 + $0x20] sm:$0xff] }
 0x863   : > { %v2157_v10 = vsel %vm1319_vm7, %v2155_v8, %v2149_v46  ;;  %v930_v46 = vadd.f32 %v929_v12, %v921_v6  ;;  %v993_v8 = vmul.f32 %v3061_v5, %v4149_v32 }
 0x864   : > { %v2139_v19 = vpop.permute.xlu1 %2138  ;;  %v2276_v43 = vpop.permute.xlu0 %2275 }
 0x865   : > { %v2154_v63 = vsel %vm1316_vm6, %v2152_v58, %v2139_v19  ;;  %v2297_v17 = vsel %vm1313_vm5, %v4292_v9, %v2276_v43  ;;  %v938_v26 = vadd.f32 %v937_v25, %v930_v46  ;;  %v985_v58 = vmul.f32 %v3059_v4, %v4138_v22 }
 0x866   : > { %v2156_v20 = vsel %vm1319_vm7, %v2154_v63, %v2147_v13 }
 0x867   : > { %3283 = vmatprep.mubr.msk.f32.mxu0 %vm1033_vm0, %v2156_v20  ;;  %v2390_v52 = vrot.slane %v938_v26, %v4091_v28 }
 0x868   : > { %3284 = vmatmul.mubr.msk.f32.vlgmr.msra.gmra.mrb[4].mxu0 %vm1033_vm0, %v2157_v10  ;;  %v2284_v55 = vpop.permute.xlu0 %2283  ;;  %v2278_v16 = vpop.permute.xlu1 %2277 }
 0x869   : > { %3405 = vmatpush3.bf16.msra.mxu0 %v4014_v3  ;;  %v2299_v14 = vsel %vm1316_vm6, %v2297_v17, %v2284_v55  ;;  %v2298_v40 = vsel %vm1313_vm5, %v4290_v21, %v2278_v16 }
 0x86a   : > { %3407 = vmatprep.subr.bf16.mxu0 %v3406_v45 }
 0x86c   : > { %v2292_v37 = vpop.permute.xlu0 %2291  ;;  %v2286_v29 = vpop.permute.xlu1 %2285 }
 0x86d   : > { %v2301_v35 = vsel %vm1319_vm7, %v2299_v14, %v2292_v37  ;;  %3409 = vmatpush3.bf16.msra.mxu0 %v3406_v45  ;;  %v2300_v31 = vsel %vm1316_vm6, %v2298_v40, %v2286_v29  ;;  %v994_v14 = vadd.f32 %v993_v8, %v985_v58 }
 0x86e   : > { %3294 = vmatprep.mubr.msk.f32.mxu0 %vm1033_vm0, %v2301_v35 }
 0x870   : > { %v2294_v36 = vpop.permute.xlu1 %2293 }
 0x871   : > { %v2302_v3 = vsel %vm1319_vm7, %v2300_v31, %v2294_v36  ;;  %v3414_v36 = vpack.c.bf16 %v994_v14, %v4152_v34 }
 0x872   : > { %3295 = vmatmul.mubr.msk.f32.vlgmr.msra.gmra.mrb[4].mxu0 %vm1033_vm0, %v2302_v3 }
 0x873   : > { %3415 = vmatprep.subr.bf16.mxu1 %v3414_v36  ;;  %3331 = vmatprep.mubr.msk.f32.mxu0 %vm3593_vm9, %v3586_v49 }
 0x874   : > { %3417 = vmatpush3.bf16.msra.mxu1 %v3414_v36 }
 0x875   : > { %3419 = vmatprep.subr.bf16.mxu1 %v4208_v56 }
 0x945   : > { %v3296_v13 = vpop.f32.mrb[4].mxu0 }
 0x946   : > { %v3437_v11 = vadd.f32 %v3296_v13, %v2162_v48  ;;  %v2375_v53 = vpop.f32.mrb[5].mxu0 }
 0x947   : > { %v3438_v15 = vadd.f32 %v2375_v53, %v2162_v48  ;;  %v3060_v48 = vld [vmem:[%s4668_s19 + $0x4] sm:$0x1] }
 0x948   : > { %v4431_v54 = vadd.f32 %v3437_v11, %v2390_v52  ;;  %v989_v13 = vmul.f32 %v3060_v48, %v4138_v22 }
 0x949   : > { %v4433_v61 = vadd.f32 %v3438_v15, %v2390_v52  ;;  %v3062_v52 = vld [vmem:[%s4668_s19 + $0x7] sm:$0x1] }
 0x94a   : > { %v2395_v59 = vrot.slane %v4431_v54, 7  ;;  %v2399_v27 = vrot.slane %v4431_v54, 1  ;;  %v2421_v38 = vmax.f32 %v4431_v54, 0.0  ;;  %v997_v11 = vmul.f32 %v3062_v52, %v4149_v32 }
 0x94b   : > { %v2394_v23 = vrot.slane %v4433_v61, 7  ;;  %v2398_v1 = vrot.slane %v4433_v61, 1  ;;  %v2420_v34 = vmax.f32 %v4433_v61, 0.0 }
 0x94c   : > { %v998_v53 = vadd.f32 %v997_v11, %v989_v13 }
 0x94d   : > { %v2396_v19 = vsel %vm1261_vm3, %v2394_v23, %v2395_v59  ;;  %v2401_v43 = vsel %vm1266_vm4, %v2399_v27, %v2398_v1  ;;  %v2397_v63 = vsel %vm1261_vm3, %v2395_v59, %v2394_v23  ;;  %v2400_v35 = vsel %vm1266_vm4, %v2398_v1, %v2399_v27 }
 0x94e   : > { %v2415_v20 = vmax.f32 %v2396_v19, %v4431_v54  ;;  %v2417_v45 = vadd.f32 %v2401_v43, %v3852_v57  ;;  %v2412_v10 = vadd.f32 %v2397_v63, %v3866_v2  ;;  %v2405_v55 = vadd.f32 %v2396_v19, %v4431_v54 }
 0x94f   : > { %v2407_v16 = vmul.f32 %v3832_v50, %v2401_v43  ;;  %v2402_v17 = vmul.f32 %v3835_v51, %v2397_v63  ;;  %v2539_v15 = vrot.slane %v998_v53, %v4091_v28  ;;  %v3069_v63 = vld [vmem:[%s4732_s5 + $0x40] sm:$0xff] }
 0x950   : > { %v2419_v37 = vmax.f32 %v2415_v20, %v2417_v45  ;;  %v2414_v29 = vmax.f32 %v2412_v10, %v4433_v61  ;;  %v1023_v14 = vmul.f32 %v3069_v63, %v4213_v0 }
 0x951   : > { %v2409_v40 = vadd.f32 %v2407_v16, %v2405_v55  ;;  %v2404_v31 = vadd.f32 %v2402_v17, %v4433_v61 }
 0x952   : > { %2434 = vrot.lane.b32.xlu1 %v2419_v37, %s4729_s3  ;;  %v2418_v3 = vmax.f32 %v2414_v29, %v2400_v35  ;;  %v3422_v36 = vpack.c.bf16 %v1023_v14, %v4211_v62  ;;  %v3592_v14 = vmov 0.0|0.0  }
 0x953   : > { %v2408_v60 = vadd.f32 %v2404_v31, %v2400_v35  ;;  %v2411_v18 = vmul.f32 0.33333334, %v2409_v40  ;;  %3426 = vmatprep.subr.bf16.mxu0 %v3592_v14 }
 0x954   : > { %2432 = vrot.lane.b32.xlu0 %v2418_v3, %s4729_s3 }
 0x955   : > { %v2410_v33 = vmul.f32 0.33333334, %v2408_v60 }
 0x956   : > { %2426 = vrot.lane.b32.xlu1 %v2411_v18, %s3589_s9 }
 0x958   : > { %2424 = vrot.lane.b32.xlu0 %v2410_v33, %s3589_s9 }
 0x95a   : > { %2442 = vrot.lane.b32.xlu1 %v2421_v38, %s4730_s1 }
 0x95c   : > { %2440 = vrot.lane.b32.xlu0 %v2420_v34, %s4730_s1 }
 0x9c4   : > { %v2435_v39 = vpop.permute.xlu1 %2434 }
 0x9c6   : > { %v2433_v41 = vpop.permute.xlu0 %2432 }
 0x9c8   : > { %v2427_v42 = vpop.permute.xlu1 %2426 }
 0x9c9   : > { %v2447_v24 = vsel %vm1313_vm5, %v4431_v54, %v2427_v42 }
 0x9ca   : > { %v2425_v6 = vpop.permute.xlu0 %2424  ;;  %v2449_v25 = vsel %vm1316_vm6, %v2447_v24, %v2435_v39  ;;  %v3070_v24 = vld [vmem:[%s4668_s19 + $0x8] sm:$0x1] }
 0x9cb   : > { %v2446_v12 = vsel %vm1313_vm5, %v4433_v61, %v2425_v6 }
 0x9cc   : > { %v2443_v30 = vpop.permute.xlu1 %2442  ;;  %v2448_v44 = vsel %vm1316_vm6, %v2446_v12, %v2433_v41 }
 0x9cd   : > { %v2451_v26 = vsel %vm1319_vm7, %v2449_v25, %v2443_v30  ;;  %v1027_v30 = vmul.f32 %v3070_v24, %v4213_v0 }
 0x9ce   : > { %v2441_v46 = vpop.permute.xlu0 %2440 }
 0x9cf   : > { %v2450_v7 = vsel %vm1319_vm7, %v2448_v44, %v2441_v46 }
 0x9d0   : > { %3305 = vmatprep.mubr.msk.f32.mxu1 %vm1033_vm0, %v2450_v7 }
 0x9d1   : > { %3306 = vmatmul.mubr.msk.f32.vlgmr.msra.gmra.mrb[10].mxu1 %vm1033_vm0, %v2451_v26  ;;  %v2696_v26 = vrot.slane %v1027_v30, %v4091_v28  ;;  %v3104_v30 = vld [vmem:[%s4670_s21] ss:$0 sm:$0xff] }
 0x9d2   : > { %3421 = vmatpush3.bf16.msra.mxu1 %v4208_v56 }
 0x9d3   : > { %3423 = vmatprep.subr.bf16.mxu1 %v3422_v36 }
 0x9d6   : > { %3425 = vmatpush3.bf16.msra.mxu1 %v3422_v36 }
 0xaa4   : > { %v3307_v59 = vpop.f32.mrb[10].mxu1 }
 0xaa5   : > { %v2534_v27 = vadd.f32 %v3307_v59, %v4431_v54  ;;  %v2524_v23 = vpop.f32.mrb[11].mxu1 }
 0xaa6   : > { %v2533_v56 = vadd.f32 %v2524_v23, %v4433_v61 }
 0xaa7   : > { %v4495_v1 = vadd.f32 %v2539_v15, %v2534_v27 }
 0xaa8   : > { %v4497_v4 = vadd.f32 %v2539_v15, %v2533_v56 }
 0xaa9   : > { %2547 = vrot.lane.b32.xlu1 %v4495_v1, %s3590_s6  ;;  %v2578_v47 = vmax.f32 %v4495_v1, 0.0 }
 0xaaa   : > { %2545 = vrot.lane.b32.xlu0 %v4497_v4, %s3590_s6  ;;  %v2577_v62 = vmax.f32 %v4497_v4, 0.0 }
 0xb1b   : > { %v2548_v22 = vpop.permute.xlu1 %2547 }
 0xb1c   : > { %v2552_v32 = vrot.slane %v2548_v22, 7  ;;  %v2556_v5 = vrot.slane %v2548_v22, 1  ;;  %v2546_v58 = vpop.permute.xlu0 %2545 }
 0xb1d   : > { %v2551_v8 = vrot.slane %v2546_v58, 7  ;;  %v2555_v19 = vrot.slane %v2546_v58, 1 }
 0xb1f   : > { %v2553_v54 = vsel %vm1261_vm3, %v2551_v8, %v2552_v32  ;;  %v2558_v61 = vsel %vm1266_vm4, %v2556_v5, %v2555_v19  ;;  %v2554_v43 = vsel %vm1261_vm3, %v2552_v32, %v2551_v8  ;;  %v2557_v35 = vsel %vm1266_vm4, %v2555_v19, %v2556_v5 }
 0xb20   : > { %v2572_v20 = vmax.f32 %v2553_v54, %v2548_v22  ;;  %v2574_v45 = vadd.f32 %v2558_v61, %v3852_v57  ;;  %v2569_v10 = vadd.f32 %v2554_v43, %v3866_v2  ;;  %v2562_v55 = vadd.f32 %v2553_v54, %v2548_v22 }
 0xb21   : > { %v2564_v16 = vmul.f32 %v3832_v50, %v2558_v61  ;;  %v2559_v17 = vmul.f32 %v3835_v51, %v2554_v43 }
 0xb22   : > { %v2576_v37 = vmax.f32 %v2572_v20, %v2574_v45  ;;  %v2571_v29 = vmax.f32 %v2569_v10, %v2546_v58 }
 0xb23   : > { %v2566_v40 = vadd.f32 %v2564_v16, %v2562_v55  ;;  %v2561_v31 = vadd.f32 %v2559_v17, %v2546_v58  ;;  %v2828_v55 = vld [vmem:[%s4671_s22] sm:$0xff]  ;;  %v2829_v16 = vld [vmem:[%s4671_s22 + $0x8] sm:$0xff]  ;;  %v2830_v17 = vld [vmem:[%s4671_s22 + $0x10] sm:$0xff] }
 0xb24   : > { %2591 = vrot.lane.b32.xlu1 %v2576_v37, %s4729_s3  ;;  %v2575_v57 = vmax.f32 %v2571_v29, %v2557_v35  ;;  %v3427_v37 = vpack.c.bf16 %v2829_v16, %v2828_v55  ;;  %v2831_v29 = vld [vmem:[%s4671_s22 + $0x18] sm:$0xff] }
 0xb25   : > { %v2565_v2 = vadd.f32 %v2561_v31, %v2557_v35  ;;  %v2568_v50 = vmul.f32 0.33333334, %v2566_v40  ;;  %v3430_v35 = vpack.c.bf16 %v2831_v29, %v2830_v17  ;;  %v2832_v40 = vld [vmem:[%s4671_s22 + $0x20] sm:$0xff]  ;;  %v2833_v31 = vld [vmem:[%s4671_s22 + $0x28] sm:$0xff] }
 0xb26   : > { %2589 = vrot.lane.b32.xlu0 %v2575_v57, %s4729_s3  ;;  %3428 = vmatpush3.bf16.msra.mxu0 %v3427_v37  ;;  %v3433_v36 = vpack.c.bf16 %v2833_v31, %v2832_v40 }
 0xb27   : > { %v2567_v51 = vmul.f32 0.33333334, %v2565_v2  ;;  %3429 = vmatprep.subr.bf16.mxu0 %v3592_v14 }
 0xb28   : > { %2583 = vrot.lane.b32.xlu1 %v2568_v50, %s3589_s9 }
 0xb2a   : > { %2581 = vrot.lane.b32.xlu0 %v2567_v51, %s3589_s9  ;;  %3431 = vmatpush3.bf16.msra.mxu0 %v3430_v35 }
 0xb2b   : > { %3432 = vmatprep.subr.bf16.mxu0 %v3592_v14  ;;  %v2834_v14 = vld [vmem:[%s4737_s24] sm:$0x1] }
 0xb2c   : > { %2599 = vrot.lane.b32.xlu1 %v2578_v47, %s4729_s3 }
 0xb2e   : > { %2597 = vrot.lane.b32.xlu0 %v2577_v62, %s4729_s3  ;;  %3434 = vmatpush3.bf16.msra.mxu0 %v3433_v36  ;;  %s4738_s3 = sld [smem:[#allocation28_spill]] }
 0xb30   : > { %2704 = vrot.lane.b32.xlu1 %v4290_v21, %s3590_s6 }
 0xb32   : > { %2702 = vrot.lane.b32.xlu0 %v4292_v9, %s3590_s6  ;;  %v3591_v9 = vmov 0   ;;  %s4733_s6 = sshll.u32 %s3773_s26, 4  ;;  %s4735_s26 = sld [smem:[#allocation11_spill]] }
 0xb33   : > { %3492 = vset.pattern.permute.xlu1 %v3591_v9  ;;  %3491 = vset.pattern.permute.xlu0 %v3591_v9  ;;  %s734_s2 = scalar_lea.vmem %s4734_s27, %s4733_s6  ;;  %v3103_v9 = vld [vmem:[%s4669_s20] ss:$0 sm:$0xff]  ;;  %s3594_s27 = smov [#allocation4]  }
 0xb34   : > { %v2758_v44 = vld [vmem:[%s734_s2] sm:$0xff]  ;;  %v2759_v46 = vld [vmem:[%s734_s2 + $0x8] sm:$0xff]  ;;  %s3523_s2 = sshll.u32 %s3594_s27, 4  ;;  %s3524_s2 = int_to_ptr.vmem [resolvable:$false] %s3523_s2 }
 0xb35   : > { %v2807_v25 = vsel %vm2806_vm8, %v2758_v44, 0.0  ;;  %v2808_v7 = vsel %vm2806_vm8, %v2759_v46, 0.0  ;;  %v2772_v63 = vsub.f32 1.0, %v2758_v44  ;;  %v2773_v20 = vsub.f32 1.0, %v2759_v46 }
 0xb36   : > { %v2809_v11 = vadd.f32 %v2808_v7, %v2807_v25 }
 0xb37   : > { %v2774_v45 = vmul.f32 -10000000.0, %v2772_v63  ;;  %v2775_v10 = vmul.f32 -10000000.0, %v2773_v20 }
 0xb38   : > { %v2810_v0 = vrot.slane %v2809_v11, 4  ;;  %s3106_s18 = sshll.u32 %s4735_s26, 4  ;;  %s3525_s26 = scalar_lea.vmem %s3524_s2, 32 }
 0xb39   : > { %s4607_s6 = scalar_lea.hbm %s4738_s3, %s3106_s18 }
 0xb96   : > { %v2592_v3 = vpop.permute.xlu1 %2591 }
 0xb98   : > { %v2590_v60 = vpop.permute.xlu0 %2589 }
 0xb9a   : > { %v2584_v18 = vpop.permute.xlu1 %2583 }
 0xb9b   : > { %v2604_v34 = vsel %vm1313_vm5, %v2548_v22, %v2584_v18 }
 0xb9c   : > { %v2582_v33 = vpop.permute.xlu0 %2581  ;;  %v2606_v6 = vsel %vm1316_vm6, %v2604_v34, %v2592_v3 }
 0xb9d   : > { %v2603_v38 = vsel %vm1313_vm5, %v2546_v58, %v2582_v33 }
 0xb9e   : > { %v2600_v39 = vpop.permute.xlu1 %2599  ;;  %v2605_v41 = vsel %vm1316_vm6, %v2603_v38, %v2590_v60 }
 0xb9f   : > { %v2608_v12 = vsel %vm1319_vm7, %v2606_v6, %v2600_v39 }
 0xba0   : > { %v2598_v42 = vpop.permute.xlu0 %2597 }
 0xba1   : > { %v2607_v21 = vsel %vm1319_vm7, %v2605_v41, %v2598_v42 }
 0xba2   : > { %3316 = vmatprep.mubr.msk.f32.mxu1 %vm1033_vm0, %v2607_v21  ;;  %v2705_v59 = vpop.permute.xlu1 %2704 }
 0xba3   : > { %3317 = vmatmul.mubr.msk.f32.vlgmr.msra.gmra.mrb[12].mxu1 %vm1033_vm0, %v2608_v12 }
 0xba4   : > { %v2703_v23 = vpop.permute.xlu0 %2702 }
 0xc76   : > { %v3318_v48 = vpop.f32.mrb[12].mxu1 }
 0xc77   : > { %v2691_v52 = vadd.f32 %v3318_v48, %v4495_v1  ;;  %v2681_v13 = vpop.f32.mrb[13].mxu1 }
 0xc78   : > { %v2690_v53 = vadd.f32 %v2681_v13, %v4497_v4  ;;  %v2811_v4 = vadd.f32 %v2810_v0, %v2809_v11 }
 0xc79   : > { %v2699_v15 = vadd.f32 %v2696_v26, %v2691_v52 }
 0xc7a   : > { %v2698_v27 = vadd.f32 %v2696_v26, %v2690_v53  ;;  %v2812_v8 = vrot.slane %v2811_v4, 2 }
 0xc7b   : > { %v4552_v56 = vadd.f32 %v2705_v59, %v2699_v15 }
 0xc7c   : > { %v4554_v22 = vadd.f32 %v2703_v23, %v2698_v27  ;;  %v2813_v54 = vadd.f32 %v2812_v8, %v2811_v4 }
 0xc7d   : > { %v2715_v32 = vsel %vm1319_vm7, %v4552_v56, 0.0  ;;  %v2721_v1 = vmul.f32 %v4552_v56, %v4552_v56 }
 0xc7e   : > { %2716 = vadd.xlane.f32.xlu1 %v2715_v32  ;;  %v2712_v28 = vsel %vm1319_vm7, %v4554_v22, 0.0  ;;  %v2720_v58 = vmul.f32 %v4554_v22, %v4554_v22  ;;  %v2814_v61 = vrot.slane %v2813_v54, 1 }
 0xc7f   : > { %2713 = vadd.xlane.f32.xlu0 %v2712_v28  ;;  %v2725_v5 = vsel %vm1319_vm7, %v2721_v1, 0.0 }
 0xc80   : > { %v2722_v19 = vsel %vm1319_vm7, %v2720_v58, 0.0  ;;  %v2815_v43 = vadd.f32 %v2814_v61, %v2813_v54 }
 0xc83   : > { %2726 = vadd.xlane.f32.xlu0 %v2725_v5 }
 0xc87   : > { %2723 = vadd.xlane.f32.xlu0 %v2722_v19 }
 0xc8f   : > { %2767 = vperm.xlu1 %3492, %v2759_v46  }
 0xc93   : > { %2818 = vperm.xlu1 %3492, %v2815_v43  }
 0xc97   : > { %2778 = vperm.xlu1 %3492, %v2774_v45  }
 0xc9b   : > { %2783 = vperm.xlu1 %3492, %v2775_v10  }
 0xc9d   : > { %2762 = vperm.xlu0 %3491, %v2758_v44  }
 0xd0b   : > { %v2717_v57 = vpop.xlane.xlu1 %2716 }
 0xd0c   : > { %v2714_v2 = vpop.xlane.xlu0 %2713  ;;  %v2719_v50 = vmul.f32 0.041666668, %v2717_v57 }
 0xd0d   : > { %v2718_v62 = vmul.f32 0.041666668, %v2714_v2 }
 0xd0e   : > { %v2731_v47 = vmul.f32 %v2719_v50, %v2719_v50  ;;  %v2735_v21 = vsub.f32 %v4552_v56, %v2719_v50 }
 0xd0f   : > { %v2730_v33 = vmul.f32 %v2718_v62, %v2718_v62  ;;  %v2768_v41 = vpop.permute.xlu1 %2767  ;;  %v2734_v46 = vsub.f32 %v4554_v22, %v2718_v62 }
 0xd10   : > { %v2727_v51 = vpop.xlane.xlu0 %2726 }
 0xd11   : > { %v2729_v3 = vmul.f32 0.041666668, %v2727_v51 }
 0xd13   : > { %v2733_v60 = vsub.f32 %v2729_v3, %v2731_v47  ;;  %v2819_v6 = vpop.permute.xlu1 %2818 }
 0xd14   : > { %v2724_v18 = vpop.xlane.xlu0 %2723 }
 0xd15   : > { %v2737_v38 = vadd.f32 1e-12, %v2733_v60  ;;  %v2728_v34 = vmul.f32 0.041666668, %v2724_v18 }
 0xd17   : > { %3501 = vrsqrt.f32 %v2737_v38  ;;  %v2732_v39 = vsub.f32 %v2728_v34, %v2730_v33  ;;  %v2779_v44 = vpop.permute.xlu1 %2778 }
 0xd19   : > { %v2736_v42 = vadd.f32 1e-12, %v2732_v39 }
 0xd1b   : > { %3503 = vrsqrt.f32 %v2736_v42  ;;  %v2784_v11 = vpop.permute.xlu1 %2783 }
 0xd1c   : > { %v2763_v53 = vpop.permute.xlu0 %2762  ;;  %3505 = vrcp.f32 %v2819_v6 }
 0xd21   : > { %v3502_v12 = vpop.eup %3501 }
 0xd22   : > { %v2741_v24 = vmul.f32 %v3502_v12, %v2735_v21 }
 0xd24   : > { %v2749_v25 = vmul.f32 %v3103_v9, %v2741_v24 }
 0xd25   : > { %v3504_v7 = vpop.eup %3503 }
 0xd26   : > { %v2757_v26 = vadd.f32 %v3104_v30, %v2749_v25  ;;  %v2740_v48 = vmul.f32 %v3504_v7, %v2734_v46  ;;  %v3506_v61 = vpop.eup %3505 }
 0xd28   : > { %v2771_v52 = vmul.f32 %v2768_v41, %v2757_v26  ;;  %v2748_v13 = vmul.f32 %v3103_v9, %v2740_v48 }
 0xd2a   : > { %v2756_v15 = vadd.f32 %v3104_v30, %v2748_v13  ;;  %v2787_v59 = vadd.f32 %v2784_v11, %v2771_v52  ;;  %v2798_v23 = vsel %vm1319_vm7, %v2771_v52, 0.0 }
 0xd2c   : > { %v2770_v27 = vmul.f32 %v2763_v53, %v2756_v15  ;;  %v2789_v28 = vsel %vm1319_vm7, %v2787_v59, -inf }
 0xd2e   : > { %v2786_v56 = vadd.f32 %v2779_v44, %v2770_v27  ;;  %v2797_v0 = vsel %vm1319_vm7, %v2770_v27, 0.0 }
 0xd2f   : > { %v2799_v32 = vadd.f32 %v2798_v23, %v2797_v0 }
 0xd30   : > { %v2788_v22 = vsel %vm1319_vm7, %v2786_v56, -inf }
 0xd31   : > { %v2790_v1 = vmax.f32 %v2788_v22, %v2789_v28  ;;  %v2800_v4 = vrot.slane %v2799_v32, 4 }
 0xd33   : > { %v2801_v5 = vadd.f32 %v2800_v4, %v2799_v32  ;;  %v2791_v63 = vrot.slane %v2790_v1, 4 }
 0xd35   : > { %v2802_v58 = vrot.slane %v2801_v5, 2  ;;  %v2792_v20 = vmax.f32 %v2790_v1, %v2791_v63 }
 0xd37   : > { %v2803_v8 = vadd.f32 %v2802_v58, %v2801_v5  ;;  %v2793_v45 = vrot.slane %v2792_v20, 2 }
 0xd39   : > { %v2804_v19 = vrot.slane %v2803_v8, 1  ;;  %v2794_v10 = vmax.f32 %v2792_v20, %v2793_v45 }
 0xd3b   : > { %v2805_v54 = vadd.f32 %v2804_v19, %v2803_v8  ;;  %v2795_v55 = vrot.slane %v2794_v10, 1 }
 0xd3d   : > { %v2822_v43 = vmul.f32 %v3506_v61, %v2805_v54  ;;  %v2796_v16 = vmax.f32 %v2794_v10, %v2795_v55 }
 0xd3f   : > { %2824 = vrot.lane.b32.xlu1 %v2822_v43, %s4730_s1  ;;  %s2924_s1 = sshll.u32 %s724_s28, 4  ;;  %s4609_s1 = int_to_ptr.vmem [resolvable:$true] %s2924_s1 }
 0xd40   : > { %s3519_s0 = scalar_lea.vmem %s4609_s1, 16  ;;  %p3526_p5 = scmp.lt.s32.totalorder %s4609_s1, %s3524_s2 }
 0xd41   : > { %p3520_p2 = scmp.ne.s32.totalorder %s4609_s1, %s3519_s0  ;;  %p3527_p6 = scmp.lt.s32.totalorder %s3525_s26, %s3519_s0 }
 0xd43   : > { %p3521_p3 = pnand %p3520_p2, %p3761_p10  ;;  %p3528_p7 = por %p3527_p6, %p3526_p5 }
 0xd45   : > { %p3522_p4 = pneg %p3521_p3 }
 0xd47   : > { %p3529_p8 = pnand %p3528_p7, %p3522_p4 }
 0xdb1   : > { %v2825_v17 = vpop.permute.xlu1 %2824 }
 0xdb2   : > { %v2827_v49 = vsel %vm1319_vm7, %v2796_v16, %v2825_v17 }
 0xdb3   : > { %3332 = vmatmul.mubr.msk.f32.vlgmr.msra.gmra.mrb[6].mxu0 %vm2835_vm10, %v2827_v49 }
 0xe86   : > { %v2905_v37 = vpop.f32.mrb[6].mxu0 }
 0xe87   : > { %v2906_v29 = vadd.f32 %v2905_v37, %v2834_v14  ;;  %v3333_v35 = vpop.f32.mrb[7].mxu0 }
 0xe89   : > { %2910 = vst.msk [vmem:[%s724_s28] sm:$0x1] %vm2909_vm11, %v2906_v29 }
 0xe8a   : > { %3532 = shalt.err (!%p3529_p8)
}
 0xe8b   : > { %s3533_s8 = scalar_lea.hbm %s4607_s6, 16  ;;  %s3537_s24 = scalar_lea.hbm %s4738_s3, 32 }
 0xe8c   : > { %p3534_p9 = scmp.ne.s32.totalorder %s4607_s6, %s3533_s8  ;;  %p3538_p0 = scmp.lt.u32.totalorder %s4607_s6, %s4738_s3 }
 0xe8d   : > { %p3539_p1 = scmp.lt.u32.totalorder %s3537_s24, %s3533_s8  ;;  %p3541_p3 = scmp.lt.u32.totalorder %s3533_s8, %s4607_s6 }
 0xe8e   : > { %p3535_p12 = pnand %p3534_p9, %p3761_p10 }
 0xe8f   : > { %p3540_p2 = por %p3539_p1, %p3538_p0 }
 0xe90   : > { %p3536_p13 = pneg %p3535_p12 }
 0xe91   : > { %p3542_p4 = por %p3541_p3, %p3540_p2 }
 0xe93   : > { %p3543_p5 = pnand %p3542_p4, %p3536_p13 }
 0xe95   : > { %3546 = shalt.err (!%p3543_p5)
}
 0xe96   : > { %3443 = dma.vmem_to_hbm [thread:$0]  (%p3761_p10), %s4609_s1, 16, %s4607_s6, %s2912_s4  }
 0xe97 PF: > { %s4739_s25 = sld [smem:[#allocation10_spill]]  ;;  %s4740_s9 = sld [smem:[#allocation8_spill]] }
 0xe9d   : > { %p3449_p6 = scmp.ge.s32.totalorder %s4739_s25, 2  ;;  %s2936_s27 = sand.u32 1, %s4740_s9  }
 0xe9e   : > { %s2937_s2 = scalar_lea.sflag [#allocation5], %s2936_s27 }
 0xe9f   : > { %p3446_p7 = pnand %p3449_p6, %p3765_p11 }
 0xea1   : > { %3566 = dma.done.wait (!%p3446_p7), %s2937_s2, 16  }
 0xea2   : > { %3568 = vsyncadd (!%p3446_p7), %s2937_s2, 4294967280  ;;  %s4742_s7 = sld [smem:[#allocation12_spill]]  ;;  %s4743_s26 = sld [smem:[#allocation9_spill]] }
 0xea3   : > { %s4744_s0 = sld [smem:[#allocation13_spill]]  ;;  %s4745_s2 = smov %s3575_s29 }
 0xea8   : > { %p40_p8 = scmp.ge.s32.totalorder %s4742_s7, 4   ;;  %s4746_s29 = smov %s4743_s26 }
 0xeaa   :  { %42 = sbr.rel (!%p40_p8) target bundleno = 29 (0x1d), region = 184 }
 0xeb1   :  { %2941 = vsyncpa [#allocation5], 1 }
 0xeb2   :  { %2943 = vsyncpa [#allocation5 + $0x1], 1 }

</bundles_post_ra>
